<compile_context>
chip_gen: v7x
topology: tpu7x:2x2x1
jax: 0.10.0
libtpu: 0.0.40
codegen_flags: <defaults>
</compile_context>

<pallas_src>
import functools
import math

import jax
import jax.numpy as jnp
import numpy as np
from jax.experimental import pallas as pl
from jax.experimental.pallas import tpu as pltpu

LN_EPS = 1e-5
NEG_INF = -1e10


def _layernorm(x, gamma, beta):
    # biased variance, like nn.LayerNorm; all in f32
    mean = jnp.mean(x, axis=-1, keepdims=True)
    var = jnp.mean((x - mean) ** 2, axis=-1, keepdims=True)
    return (x - mean) * jax.lax.rsqrt(var + LN_EPS) * gamma + beta


def decoder_layer_kernel(
    xq_ref, xfull_ref, bias_ref,
    wq_ref, bq_ref, wk_ref, bk_ref, wv_ref, bv_ref, wo_ref, bo_ref,
    ln1g_ref, ln1b_ref,
    w1_ref, b1_ref, w2_ref, b2_ref,
    ln2g_ref, ln2b_ref,
    out_ref, attn_ref,
    k_scratch, v_scratch, q_scratch, ctx_scratch,
    *, n_heads, head_dim,
):
    qi = pl.program_id(1)
    Tq, H = xq_ref.shape[1], xq_ref.shape[2]

    # ---- K / V projections for the whole sequence: computed once per batch
    # row (qi == 0), cached head-major in VMEM scratch as bf16.  Correctness
    # relies on the query-tile grid axis being the minor, sequentially
    # executed ("arbitrary") axis. ----
    @pl.when(qi == 0)
    def _():
        xf = xfull_ref[0]                                            # (S, H) bf16
        k = jnp.dot(xf, wk_ref[...], preferred_element_type=jnp.float32) + bk_ref[0]
        v = jnp.dot(xf, wv_ref[...], preferred_element_type=jnp.float32) + bv_ref[0]
        for h in range(n_heads):                                     # static lane slices
            sl = slice(h * head_dim, (h + 1) * head_dim)             # (no XLU transpose)
            k_scratch[h] = k[:, sl].astype(jnp.bfloat16)
            v_scratch[h] = v[:, sl].astype(jnp.bfloat16)

    x = xq_ref[0]                                                    # (Tq, H) f32

    # ---- Q projection; wq/bq are pre-scaled by 1/sqrt(head_dim) ----
    q = jnp.dot(x.astype(jnp.bfloat16), wq_ref[...],
                preferred_element_type=jnp.float32) + bq_ref[0]      # (Tq, H) f32
    for h in range(n_heads):
        q_scratch[h] = q[:, h * head_dim:(h + 1) * head_dim].astype(jnp.bfloat16)

    qh = q_scratch[...]                                              # (nh, Tq, hd) bf16
    kh = k_scratch[...]                                              # (nh, S,  hd) bf16
    vh = v_scratch[...]                                              # (nh, S,  hd) bf16

    # ---- batched attention over all heads (scale already folded into Q) ----
    energy = jnp.einsum("hqd,hkd->hqk", qh, kh,
                        preferred_element_type=jnp.float32)          # (nh, Tq, S) f32
    energy = energy + bias_ref[0, 0].astype(jnp.float32)[None, :, :]

    m = jnp.max(energy, axis=-1, keepdims=True)
    e = jnp.exp(energy - m)
    attn = e * pl.reciprocal(jnp.sum(e, axis=-1, keepdims=True), approx=True)
    attn_ref[0] = attn.astype(jnp.bfloat16)                          # bf16 writeback

    ctx = jnp.einsum("hqk,hkd->hqd", attn.astype(jnp.bfloat16), vh,
                     preferred_element_type=jnp.float32)             # (nh, Tq, hd) f32
    for h in range(n_heads):                                         # merge heads via
        sl = slice(h * head_dim, (h + 1) * head_dim)                 # static lane slices
        ctx_scratch[:, sl] = ctx[h].astype(jnp.bfloat16)

    attn_out = jnp.dot(ctx_scratch[...], wo_ref[...],
                       preferred_element_type=jnp.float32) + bo_ref[0]

    # ---- residual + layernorm 1 (dropout = identity in eval) ----
    x1 = _layernorm(x + attn_out, ln1g_ref[0], ln1b_ref[0])

    # ---- positionwise feedforward ----
    h1 = jnp.maximum(
        jnp.dot(x1.astype(jnp.bfloat16), w1_ref[...],
                preferred_element_type=jnp.float32) + b1_ref[0], 0.0)
    ff = jnp.dot(h1.astype(jnp.bfloat16), w2_ref[...],
                 preferred_element_type=jnp.float32) + b2_ref[0]

    # ---- residual + layernorm 2 ----
    out_ref[0] = _layernorm(x1 + ff, ln2g_ref[0], ln2b_ref[0])


def _vmem_capacity_bytes():
    try:
        return int(pltpu.get_tpu_info().vmem_capacity_bytes)
    except Exception:
        return 64 << 20      # conservative default (v7x-class, 64 MiB per TC)


def _footprint_bytes(S, H, P, nh, hd, Tq):
    f32, bf16 = 4, 2
    stream = 2 * (                      # double-buffered streamed blocks
        Tq * H * f32                    # x query tile (f32)
        + S * H * bf16                  # full-sequence x (bf16)
        + Tq * S * bf16                 # additive mask bias tile (bf16)
        + Tq * H * f32                  # output tile (f32)
        + nh * Tq * S * bf16            # attention tile (bf16)
    )
    const = (4 * H * H + H * P + P * H) * bf16 + (7 * H + P) * f32  # single-buffered params
    scratch = (2 * nh * S * hd + nh * Tq * hd + Tq * H) * bf16      # persistent VMEM scratch
    temps = (3 * nh * Tq * S + nh * Tq * hd + 2 * Tq * P + 2 * S * H) * f32  # softmax/ffn temps
    return stream + const + scratch + temps


def _pick_q_tile(S, H, P, nh, hd, vmem_budget):
    cands = [t for t in (512, 256, 128, 64, 32, 16, 8) if t <= S and S % t == 0]
    if not cands:
        cands = [S]
    for t in cands:
        if _footprint_bytes(S, H, P, nh, hd, t) <= vmem_budget:
            return t
    return cands[-1]


def decoder_layer(x, mask, params, *, n_heads):
    B, S, H = x.shape
    P = params["w1"].shape[1]
    head_dim = H // n_heads

    vmem_cap = _vmem_capacity_bytes()
    Tq = _pick_q_tile(S, H, P, n_heads, head_dim, int(0.80 * vmem_cap))
    nq = S // Tq

    bf16 = lambda w: w.astype(jnp.bfloat16)
    inv_scale = jnp.float32(1.0 / math.sqrt(head_dim))
    # Fold the 1/sqrt(head_dim) softmax scale into the Q projection.
    wq = bf16(params["wq"] * inv_scale)
    bq = params["bq"] * inv_scale
    wk, wv, wo = bf16(params["wk"]), bf16(params["wv"]), bf16(params["wo"])
    w1, w2 = bf16(params["w1"]), bf16(params["w2"])

    x_bf16 = x.astype(jnp.bfloat16)
    # Precompute the additive attention bias once: 0 where kept, -1e10 where masked.
    mask_bias = jnp.where(mask == 0, jnp.float32(NEG_INF),
                          jnp.float32(0.0)).astype(jnp.bfloat16)

    footprint = _footprint_bytes(S, H, P, n_heads, head_dim, Tq)
    vmem_limit = int(min(max(footprint + (8 << 20), 32 << 20), int(0.85 * vmem_cap)))

    def build_specs(single_buffer_consts):
        if single_buffer_consts:
            const_spec = lambda shape: pl.BlockSpec(
                shape, lambda b, qi: (0, 0), pipeline_mode=pl.Buffered(1))
        else:
            const_spec = lambda shape: pl.BlockSpec(shape, lambda b, qi: (0, 0))
        in_specs = [
            pl.BlockSpec((1, Tq, H), lambda b, qi: (b, qi, 0)),        # x (f32 query tile)
            pl.BlockSpec((1, S, H), lambda b, qi: (b, 0, 0)),          # x (bf16 full seq)
            pl.BlockSpec((1, 1, Tq, S), lambda b, qi: (b, 0, qi, 0)),  # mask bias tile
            const_spec((H, H)), const_spec((1, H)),   # wq, bq
            const_spec((H, H)), const_spec((1, H)),   # wk, bk
            const_spec((H, H)), const_spec((1, H)),   # wv, bv
            const_spec((H, H)), const_spec((1, H)),   # wo, bo
            const_spec((1, H)), const_spec((1, H)),   # ln1 gamma, beta
            const_spec((H, P)), const_spec((1, P)),   # w1, b1
            const_spec((P, H)), const_spec((1, H)),   # w2, b2
            const_spec((1, H)), const_spec((1, H)),   # ln2 gamma, beta
        ]
        out_specs = [
            pl.BlockSpec((1, Tq, H), lambda b, qi: (b, qi, 0)),
            pl.BlockSpec((1, n_heads, Tq, S), lambda b, qi: (b, 0, qi, 0)),
        ]
        return in_specs, out_specs

    out_shapes = [
        jax.ShapeDtypeStruct((B, S, H), jnp.float32),
        jax.ShapeDtypeStruct((B, n_heads, S, S), jnp.bfloat16),   # bf16 attn writeback
    ]
    scratch_shapes = [
        pltpu.VMEM((n_heads, S, head_dim), jnp.bfloat16),   # K cache (head-major)
        pltpu.VMEM((n_heads, S, head_dim), jnp.bfloat16),   # V cache (head-major)
        pltpu.VMEM((n_heads, Tq, head_dim), jnp.bfloat16),  # Q tile  (head-major)
        pltpu.VMEM((Tq, H), jnp.bfloat16),                  # merged-head context tile
    ]

    kernel = functools.partial(decoder_layer_kernel,
                               n_heads=n_heads, head_dim=head_dim)
    operands = (
        x, x_bf16, mask_bias,
        wq, bq, wk, params["bk"], wv, params["bv"], wo, params["bo"],
        params["ln1_g"], params["ln1_b"],
        w1, params["b1"], w2, params["b2"],
        params["ln2_g"], params["ln2_b"],
    )

    def run(single_buffer_consts):
        in_specs, out_specs = build_specs(single_buffer_consts)
        return pl.pallas_call(
            kernel,
            out_shape=out_shapes,
            grid_spec=pltpu.PrefetchScalarGridSpec(
                num_scalar_prefetch=0,
                grid=(B, nq),
                in_specs=in_specs,
                out_specs=out_specs,
                scratch_shapes=scratch_shapes,
            ),
            compiler_params=pltpu.CompilerParams(
                # batch axis parallel (megacore); query-tile axis MUST stay
                # "arbitrary"/minor so the per-row K/V scratch reuse is valid.
                dimension_semantics=("parallel", "arbitrary"),
                vmem_limit_bytes=vmem_limit,
            ),
        )(*operands)

    try:
        return run(True)    # single-buffer the constant weight/bias/LN blocks
    except Exception:
        return run(False)   # fallback: default double buffering


def reference(x, mask, params, *, n_heads):
    # pure-JAX f32 reference mirroring the PyTorch forward (eval mode)
    B, S, H = x.shape
    hd = H // n_heads
    q = x @ params["wq"] + params["bq"][0]
    k = x @ params["wk"] + params["bk"][0]
    v = x @ params["wv"] + params["bv"][0]
    reshape = lambda t: t.reshape(B, S, n_heads, hd).transpose(0, 2, 1, 3)
    q, k, v = reshape(q), reshape(k), reshape(v)
    energy = jnp.einsum("bhqd,bhkd->bhqk", q, k) / math.sqrt(hd)
    energy = jnp.where(mask == 0, NEG_INF, energy)
    attn = jax.nn.softmax(energy, axis=-1)
    ctx = jnp.einsum("bhqk,bhkd->bhqd", attn, v).transpose(0, 2, 1, 3).reshape(B, S, H)
    attn_out = ctx @ params["wo"] + params["bo"][0]

    def ln(t, g, b):
        mu = t.mean(-1, keepdims=True)
        var = ((t - mu) ** 2).mean(-1, keepdims=True)
        return (t - mu) / jnp.sqrt(var + LN_EPS) * g[0] + b[0]

    x1 = ln(x + attn_out, params["ln1_g"], params["ln1_b"])
    ff = jnp.maximum(x1 @ params["w1"] + params["b1"][0], 0.0) @ params["w2"] + params["b2"][0]
    x2 = ln(x1 + ff, params["ln2_g"], params["ln2_b"])
    return x2, attn


def make_params(key, hid_dim, pf_dim):
    ks = jax.random.split(key, 12)
    scale = 0.1
    return {
        "wq": scale * jax.random.normal(ks[0], (hid_dim, hid_dim), jnp.float32),
        "bq": scale * jax.random.normal(ks[1], (1, hid_dim), jnp.float32),
        "wk": scale * jax.random.normal(ks[2], (hid_dim, hid_dim), jnp.float32),
        "bk": scale * jax.random.normal(ks[3], (1, hid_dim), jnp.float32),
        "wv": scale * jax.random.normal(ks[4], (hid_dim, hid_dim), jnp.float32),
        "bv": scale * jax.random.normal(ks[5], (1, hid_dim), jnp.float32),
        "wo": scale * jax.random.normal(ks[6], (hid_dim, hid_dim), jnp.float32),
        "bo": scale * jax.random.normal(ks[7], (1, hid_dim), jnp.float32),
        "w1": scale * jax.random.normal(ks[8], (hid_dim, pf_dim), jnp.float32),
        "b1": scale * jax.random.normal(ks[9], (1, pf_dim), jnp.float32),
        "w2": scale * jax.random.normal(ks[10], (pf_dim, hid_dim), jnp.float32),
        "b2": scale * jax.random.normal(ks[11], (1, hid_dim), jnp.float32),
        "ln1_g": jnp.ones((1, hid_dim), jnp.float32),
        "ln1_b": jnp.zeros((1, hid_dim), jnp.float32),
        "ln2_g": jnp.ones((1, hid_dim), jnp.float32),
        "ln2_b": jnp.zeros((1, hid_dim), jnp.float32),
    }


if __name__ == "__main__":
    B, S, H, NH, PF = 2, 8, 32, 4, 64
    key = jax.random.PRNGKey(0)
    kx, kp = jax.random.split(key)
    x = jax.random.normal(kx, (B, S, H), jnp.float32)
    # causal mask, shape (B, 1, S, S), 1 = keep, 0 = masked
    mask = jnp.tril(jnp.ones((S, S), jnp.float32))[None, None].repeat(B, axis=0)
    params = make_params(kp, H, PF)

    out, attn = decoder_layer(x, mask, params, n_heads=NH)
    jax.block_until_ready((out, attn))

    ref_out, ref_attn = reference(x, mask, params, n_heads=NH)
    # bf16 matmul operands / bf16 attn output / approx reciprocal -> loose tolerance
    assert np.allclose(np.asarray(out), np.asarray(ref_out), atol=2e-2, rtol=2e-2)
    assert np.allclose(np.asarray(attn, dtype=np.float32), np.asarray(ref_attn),
                       atol=2e-2, rtol=2e-2)

    print("KERNEL_OK")
</pallas_src>

<mosaic_0001>
module attributes {stable_mosaic.version = 11 : i64} {
  func.func @decoder_layer_kernel(%arg0: i32, %arg1: i32, %arg2: memref<1x8x32xf32, #tpu.memory_space<vmem>>, %arg3: memref<1x8x32xbf16, #tpu.memory_space<vmem>>, %arg4: memref<1x1x8x8xbf16, #tpu.memory_space<vmem>>, %arg5: memref<32x32xbf16, #tpu.memory_space<vmem>>, %arg6: memref<1x32xf32, #tpu.memory_space<vmem>>, %arg7: memref<32x32xbf16, #tpu.memory_space<vmem>>, %arg8: memref<1x32xf32, #tpu.memory_space<vmem>>, %arg9: memref<32x32xbf16, #tpu.memory_space<vmem>>, %arg10: memref<1x32xf32, #tpu.memory_space<vmem>>, %arg11: memref<32x32xbf16, #tpu.memory_space<vmem>>, %arg12: memref<1x32xf32, #tpu.memory_space<vmem>>, %arg13: memref<1x32xf32, #tpu.memory_space<vmem>>, %arg14: memref<1x32xf32, #tpu.memory_space<vmem>>, %arg15: memref<32x64xbf16, #tpu.memory_space<vmem>>, %arg16: memref<1x64xf32, #tpu.memory_space<vmem>>, %arg17: memref<64x32xbf16, #tpu.memory_space<vmem>>, %arg18: memref<1x32xf32, #tpu.memory_space<vmem>>, %arg19: memref<1x32xf32, #tpu.memory_space<vmem>>, %arg20: memref<1x32xf32, #tpu.memory_space<vmem>>, %arg21: memref<1x8x32xf32, #tpu.memory_space<vmem>>, %arg22: memref<1x4x8x8xbf16, #tpu.memory_space<vmem>>, %arg23: memref<4x8x8xbf16, #tpu.memory_space<vmem>>, %arg24: memref<4x8x8xbf16, #tpu.memory_space<vmem>>, %arg25: memref<4x8x8xbf16, #tpu.memory_space<vmem>>, %arg26: memref<8x32xbf16, #tpu.memory_space<vmem>>) attributes {dimension_semantics = [#tpu.dimension_semantics<parallel>, #tpu.dimension_semantics<arbitrary>], iteration_bounds = array<i64: 2, 1>, scalar_prefetch = 0 : i64, scratch_operands = 4 : i64, tpu.core_type = #tpu.core_type<tc>, window_params = [{transform_indices = @transform_0, window_bounds = array<i64: 1, 8, 32>}, {transform_indices = @transform_1, window_bounds = array<i64: 1, 8, 32>}, {transform_indices = @transform_2, window_bounds = array<i64: 1, 1, 8, 8>}, {pipeline_mode = #tpu.pipeline_mode<synchronous>, transform_indices = @transform_3, window_bounds = array<i64: 32, 32>}, {pipeline_mode = #tpu.pipeline_mode<synchronous>, transform_indices = @transform_4, window_bounds = array<i64: 1, 32>}, {pipeline_mode = #tpu.pipeline_mode<synchronous>, transform_indices = @transform_5, window_bounds = array<i64: 32, 32>}, {pipeline_mode = #tpu.pipeline_mode<synchronous>, transform_indices = @transform_6, window_bounds = array<i64: 1, 32>}, {pipeline_mode = #tpu.pipeline_mode<synchronous>, transform_indices = @transform_7, window_bounds = array<i64: 32, 32>}, {pipeline_mode = #tpu.pipeline_mode<synchronous>, transform_indices = @transform_8, window_bounds = array<i64: 1, 32>}, {pipeline_mode = #tpu.pipeline_mode<synchronous>, transform_indices = @transform_9, window_bounds = array<i64: 32, 32>}, {pipeline_mode = #tpu.pipeline_mode<synchronous>, transform_indices = @transform_10, window_bounds = array<i64: 1, 32>}, {pipeline_mode = #tpu.pipeline_mode<synchronous>, transform_indices = @transform_11, window_bounds = array<i64: 1, 32>}, {pipeline_mode = #tpu.pipeline_mode<synchronous>, transform_indices = @transform_12, window_bounds = array<i64: 1, 32>}, {pipeline_mode = #tpu.pipeline_mode<synchronous>, transform_indices = @transform_13, window_bounds = array<i64: 32, 64>}, {pipeline_mode = #tpu.pipeline_mode<synchronous>, transform_indices = @transform_14, window_bounds = array<i64: 1, 64>}, {pipeline_mode = #tpu.pipeline_mode<synchronous>, transform_indices = @transform_15, window_bounds = array<i64: 64, 32>}, {pipeline_mode = #tpu.pipeline_mode<synchronous>, transform_indices = @transform_16, window_bounds = array<i64: 1, 32>}, {pipeline_mode = #tpu.pipeline_mode<synchronous>, transform_indices = @transform_17, window_bounds = array<i64: 1, 32>}, {pipeline_mode = #tpu.pipeline_mode<synchronous>, transform_indices = @transform_18, window_bounds = array<i64: 1, 32>}, {transform_indices = @transform_19, window_bounds = array<i64: 1, 8, 32>}, {transform_indices = @transform_20, window_bounds = array<i64: 1, 4, 8, 8>}]} {
    %c0_i32 = arith.constant 0 : i32
    %0 = arith.cmpi eq, %arg1, %c0_i32 : i32
    %1 = arith.extui %0 : i1 to i32
    %c0_i32_0 = arith.constant 0 : i32
    %2 = arith.cmpi ne, %1, %c0_i32_0 : i32
    scf.if %2 {
      %c0_81 = arith.constant 0 : index
      %c0_82 = arith.constant 0 : index
      %c0_83 = arith.constant 0 : index
      %162 = vector.load %arg3[%c0_81, %c0_82, %c0_83] : memref<1x8x32xbf16, #tpu.memory_space<vmem>>, vector<1x8x32xbf16>
      %163 = vector.shape_cast %162 : vector<1x8x32xbf16> to vector<8x32xbf16>
      %c0_84 = arith.constant 0 : index
      %c0_85 = arith.constant 0 : index
      %164 = vector.load %arg7[%c0_84, %c0_85] : memref<32x32xbf16, #tpu.memory_space<vmem>>, vector<32x32xbf16>
      %cst_86 = arith.constant dense<0.000000e+00> : vector<8x32xf32>
      %165 = tpu.matmul %163, %164, %cst_86 {dimension_numbers = #tpu.dot_dimension_numbers<[1], [0], [0], [1], [0, 0, 1, 1], [], []>} : vector<8x32xbf16>, vector<32x32xbf16>, vector<8x32xf32> -> vector<8x32xf32>
      %c0_87 = arith.constant 0 : index
      %c0_88 = arith.constant 0 : index
      %166 = vector.load %arg8[%c0_87, %c0_88] : memref<1x32xf32, #tpu.memory_space<vmem>>, vector<1x32xf32>
      %167 = vector.shape_cast %166 : vector<1x32xf32> to vector<32xf32>
      %168 = vector.shape_cast %167 : vector<32xf32> to vector<1x32xf32>
      %169 = vector.broadcast %168 : vector<1x32xf32> to vector<8x32xf32>
      %170 = arith.addf %165, %169 : vector<8x32xf32>
      %c0_89 = arith.constant 0 : index
      %c0_90 = arith.constant 0 : index
      %171 = vector.load %arg9[%c0_89, %c0_90] : memref<32x32xbf16, #tpu.memory_space<vmem>>, vector<32x32xbf16>
      %cst_91 = arith.constant dense<0.000000e+00> : vector<8x32xf32>
      %172 = tpu.matmul %163, %171, %cst_91 {dimension_numbers = #tpu.dot_dimension_numbers<[1], [0], [0], [1], [0, 0, 1, 1], [], []>} : vector<8x32xbf16>, vector<32x32xbf16>, vector<8x32xf32> -> vector<8x32xf32>
      %c0_92 = arith.constant 0 : index
      %c0_93 = arith.constant 0 : index
      %173 = vector.load %arg10[%c0_92, %c0_93] : memref<1x32xf32, #tpu.memory_space<vmem>>, vector<1x32xf32>
      %174 = vector.shape_cast %173 : vector<1x32xf32> to vector<32xf32>
      %175 = vector.shape_cast %174 : vector<32xf32> to vector<1x32xf32>
      %176 = vector.broadcast %175 : vector<1x32xf32> to vector<8x32xf32>
      %177 = arith.addf %172, %176 : vector<8x32xf32>
      %178 = vector.extract_strided_slice %170 {offsets = [0, 0], sizes = [8, 8], strides = [1, 1]} : vector<8x32xf32> to vector<8x8xf32>
      %179 = arith.truncf %178 : vector<8x8xf32> to vector<8x8xbf16>
      %c0_94 = arith.constant 0 : index
      %c0_95 = arith.constant 0 : index
      %c0_96 = arith.constant 0 : index
      %180 = vector.load %arg23[%c0_94, %c0_95, %c0_96] : memref<4x8x8xbf16, #tpu.memory_space<vmem>>, vector<1x8x8xbf16>
      %181 = vector.shape_cast %180 : vector<1x8x8xbf16> to vector<8x8xbf16>
      %182 = vector.shape_cast %179 : vector<8x8xbf16> to vector<1x8x8xbf16>
      tpu.vector_store %arg23[%c0_94, %c0_95, %c0_96], %182 {strides = array<i32>} : memref<4x8x8xbf16, #tpu.memory_space<vmem>>, vector<1x8x8xbf16>,
      %183 = vector.extract_strided_slice %177 {offsets = [0, 0], sizes = [8, 8], strides = [1, 1]} : vector<8x32xf32> to vector<8x8xf32>
      %184 = arith.truncf %183 : vector<8x8xf32> to vector<8x8xbf16>
      %c0_97 = arith.constant 0 : index
      %c0_98 = arith.constant 0 : index
      %c0_99 = arith.constant 0 : index
      %185 = vector.load %arg24[%c0_97, %c0_98, %c0_99] : memref<4x8x8xbf16, #tpu.memory_space<vmem>>, vector<1x8x8xbf16>
      %186 = vector.shape_cast %185 : vector<1x8x8xbf16> to vector<8x8xbf16>
      %187 = vector.shape_cast %184 : vector<8x8xbf16> to vector<1x8x8xbf16>
      tpu.vector_store %arg24[%c0_97, %c0_98, %c0_99], %187 {strides = array<i32>} : memref<4x8x8xbf16, #tpu.memory_space<vmem>>, vector<1x8x8xbf16>,
      %188 = vector.extract_strided_slice %170 {offsets = [0, 8], sizes = [8, 8], strides = [1, 1]} : vector<8x32xf32> to vector<8x8xf32>
      %189 = arith.truncf %188 : vector<8x8xf32> to vector<8x8xbf16>
      %c1_100 = arith.constant 1 : index
      %c0_101 = arith.constant 0 : index
      %c0_102 = arith.constant 0 : index
      %190 = vector.load %arg23[%c1_100, %c0_101, %c0_102] : memref<4x8x8xbf16, #tpu.memory_space<vmem>>, vector<1x8x8xbf16>
      %191 = vector.shape_cast %190 : vector<1x8x8xbf16> to vector<8x8xbf16>
      %192 = vector.shape_cast %189 : vector<8x8xbf16> to vector<1x8x8xbf16>
      tpu.vector_store %arg23[%c1_100, %c0_101, %c0_102], %192 {strides = array<i32>} : memref<4x8x8xbf16, #tpu.memory_space<vmem>>, vector<1x8x8xbf16>,
      %193 = vector.extract_strided_slice %177 {offsets = [0, 8], sizes = [8, 8], strides = [1, 1]} : vector<8x32xf32> to vector<8x8xf32>
      %194 = arith.truncf %193 : vector<8x8xf32> to vector<8x8xbf16>
      %c1_103 = arith.constant 1 : index
      %c0_104 = arith.constant 0 : index
      %c0_105 = arith.constant 0 : index
      %195 = vector.load %arg24[%c1_103, %c0_104, %c0_105] : memref<4x8x8xbf16, #tpu.memory_space<vmem>>, vector<1x8x8xbf16>
      %196 = vector.shape_cast %195 : vector<1x8x8xbf16> to vector<8x8xbf16>
      %197 = vector.shape_cast %194 : vector<8x8xbf16> to vector<1x8x8xbf16>
      tpu.vector_store %arg24[%c1_103, %c0_104, %c0_105], %197 {strides = array<i32>} : memref<4x8x8xbf16, #tpu.memory_space<vmem>>, vector<1x8x8xbf16>,
      %198 = vector.extract_strided_slice %170 {offsets = [0, 16], sizes = [8, 8], strides = [1, 1]} : vector<8x32xf32> to vector<8x8xf32>
      %199 = arith.truncf %198 : vector<8x8xf32> to vector<8x8xbf16>
      %c2_106 = arith.constant 2 : index
      %c0_107 = arith.constant 0 : index
      %c0_108 = arith.constant 0 : index
      %200 = vector.load %arg23[%c2_106, %c0_107, %c0_108] : memref<4x8x8xbf16, #tpu.memory_space<vmem>>, vector<1x8x8xbf16>
      %201 = vector.shape_cast %200 : vector<1x8x8xbf16> to vector<8x8xbf16>
      %202 = vector.shape_cast %199 : vector<8x8xbf16> to vector<1x8x8xbf16>
      tpu.vector_store %arg23[%c2_106, %c0_107, %c0_108], %202 {strides = array<i32>} : memref<4x8x8xbf16, #tpu.memory_space<vmem>>, vector<1x8x8xbf16>,
      %203 = vector.extract_strided_slice %177 {offsets = [0, 16], sizes = [8, 8], strides = [1, 1]} : vector<8x32xf32> to vector<8x8xf32>
      %204 = arith.truncf %203 : vector<8x8xf32> to vector<8x8xbf16>
      %c2_109 = arith.constant 2 : index
      %c0_110 = arith.constant 0 : index
      %c0_111 = arith.constant 0 : index
      %205 = vector.load %arg24[%c2_109, %c0_110, %c0_111] : memref<4x8x8xbf16, #tpu.memory_space<vmem>>, vector<1x8x8xbf16>
      %206 = vector.shape_cast %205 : vector<1x8x8xbf16> to vector<8x8xbf16>
      %207 = vector.shape_cast %204 : vector<8x8xbf16> to vector<1x8x8xbf16>
      tpu.vector_store %arg24[%c2_109, %c0_110, %c0_111], %207 {strides = array<i32>} : memref<4x8x8xbf16, #tpu.memory_space<vmem>>, vector<1x8x8xbf16>,
      %208 = vector.extract_strided_slice %170 {offsets = [0, 24], sizes = [8, 8], strides = [1, 1]} : vector<8x32xf32> to vector<8x8xf32>
      %209 = arith.truncf %208 : vector<8x8xf32> to vector<8x8xbf16>
      %c3_112 = arith.constant 3 : index
      %c0_113 = arith.constant 0 : index
      %c0_114 = arith.constant 0 : index
      %210 = vector.load %arg23[%c3_112, %c0_113, %c0_114] : memref<4x8x8xbf16, #tpu.memory_space<vmem>>, vector<1x8x8xbf16>
      %211 = vector.shape_cast %210 : vector<1x8x8xbf16> to vector<8x8xbf16>
      %212 = vector.shape_cast %209 : vector<8x8xbf16> to vector<1x8x8xbf16>
      tpu.vector_store %arg23[%c3_112, %c0_113, %c0_114], %212 {strides = array<i32>} : memref<4x8x8xbf16, #tpu.memory_space<vmem>>, vector<1x8x8xbf16>,
      %213 = vector.extract_strided_slice %177 {offsets = [0, 24], sizes = [8, 8], strides = [1, 1]} : vector<8x32xf32> to vector<8x8xf32>
      %214 = arith.truncf %213 : vector<8x8xf32> to vector<8x8xbf16>
      %c3_115 = arith.constant 3 : index
      %c0_116 = arith.constant 0 : index
      %c0_117 = arith.constant 0 : index
      %215 = vector.load %arg24[%c3_115, %c0_116, %c0_117] : memref<4x8x8xbf16, #tpu.memory_space<vmem>>, vector<1x8x8xbf16>
      %216 = vector.shape_cast %215 : vector<1x8x8xbf16> to vector<8x8xbf16>
      %217 = vector.shape_cast %214 : vector<8x8xbf16> to vector<1x8x8xbf16>
      tpu.vector_store %arg24[%c3_115, %c0_116, %c0_117], %217 {strides = array<i32>} : memref<4x8x8xbf16, #tpu.memory_space<vmem>>, vector<1x8x8xbf16>,
    } else {
    }
    %c0 = arith.constant 0 : index
    %c0_1 = arith.constant 0 : index
    %c0_2 = arith.constant 0 : index
    %3 = vector.load %arg2[%c0, %c0_1, %c0_2] : memref<1x8x32xf32, #tpu.memory_space<vmem>>, vector<1x8x32xf32>
    %4 = vector.shape_cast %3 : vector<1x8x32xf32> to vector<8x32xf32>
    %5 = arith.truncf %4 : vector<8x32xf32> to vector<8x32xbf16>
    %c0_3 = arith.constant 0 : index
    %c0_4 = arith.constant 0 : index
    %6 = vector.load %arg5[%c0_3, %c0_4] : memref<32x32xbf16, #tpu.memory_space<vmem>>, vector<32x32xbf16>
    %cst = arith.constant dense<0.000000e+00> : vector<8x32xf32>
    %7 = tpu.matmul %5, %6, %cst {dimension_numbers = #tpu.dot_dimension_numbers<[1], [0], [0], [1], [0, 0, 1, 1], [], []>} : vector<8x32xbf16>, vector<32x32xbf16>, vector<8x32xf32> -> vector<8x32xf32>
    %c0_5 = arith.constant 0 : index
    %c0_6 = arith.constant 0 : index
    %8 = vector.load %arg6[%c0_5, %c0_6] : memref<1x32xf32, #tpu.memory_space<vmem>>, vector<1x32xf32>
    %9 = vector.shape_cast %8 : vector<1x32xf32> to vector<32xf32>
    %10 = vector.shape_cast %9 : vector<32xf32> to vector<1x32xf32>
    %11 = vector.broadcast %10 : vector<1x32xf32> to vector<8x32xf32>
    %12 = arith.addf %7, %11 : vector<8x32xf32>
    %13 = vector.extract_strided_slice %12 {offsets = [0, 0], sizes = [8, 8], strides = [1, 1]} : vector<8x32xf32> to vector<8x8xf32>
    %14 = arith.truncf %13 : vector<8x8xf32> to vector<8x8xbf16>
    %c0_7 = arith.constant 0 : index
    %c0_8 = arith.constant 0 : index
    %c0_9 = arith.constant 0 : index
    %15 = vector.load %arg25[%c0_7, %c0_8, %c0_9] : memref<4x8x8xbf16, #tpu.memory_space<vmem>>, vector<1x8x8xbf16>
    %16 = vector.shape_cast %15 : vector<1x8x8xbf16> to vector<8x8xbf16>
    %17 = vector.shape_cast %14 : vector<8x8xbf16> to vector<1x8x8xbf16>
    tpu.vector_store %arg25[%c0_7, %c0_8, %c0_9], %17 {strides = array<i32>} : memref<4x8x8xbf16, #tpu.memory_space<vmem>>, vector<1x8x8xbf16>,
    %18 = vector.extract_strided_slice %12 {offsets = [0, 8], sizes = [8, 8], strides = [1, 1]} : vector<8x32xf32> to vector<8x8xf32>
    %19 = arith.truncf %18 : vector<8x8xf32> to vector<8x8xbf16>
    %c1 = arith.constant 1 : index
    %c0_10 = arith.constant 0 : index
    %c0_11 = arith.constant 0 : index
    %20 = vector.load %arg25[%c1, %c0_10, %c0_11] : memref<4x8x8xbf16, #tpu.memory_space<vmem>>, vector<1x8x8xbf16>
    %21 = vector.shape_cast %20 : vector<1x8x8xbf16> to vector<8x8xbf16>
    %22 = vector.shape_cast %19 : vector<8x8xbf16> to vector<1x8x8xbf16>
    tpu.vector_store %arg25[%c1, %c0_10, %c0_11], %22 {strides = array<i32>} : memref<4x8x8xbf16, #tpu.memory_space<vmem>>, vector<1x8x8xbf16>,
    %23 = vector.extract_strided_slice %12 {offsets = [0, 16], sizes = [8, 8], strides = [1, 1]} : vector<8x32xf32> to vector<8x8xf32>
    %24 = arith.truncf %23 : vector<8x8xf32> to vector<8x8xbf16>
    %c2 = arith.constant 2 : index
    %c0_12 = arith.constant 0 : index
    %c0_13 = arith.constant 0 : index
    %25 = vector.load %arg25[%c2, %c0_12, %c0_13] : memref<4x8x8xbf16, #tpu.memory_space<vmem>>, vector<1x8x8xbf16>
    %26 = vector.shape_cast %25 : vector<1x8x8xbf16> to vector<8x8xbf16>
    %27 = vector.shape_cast %24 : vector<8x8xbf16> to vector<1x8x8xbf16>
    tpu.vector_store %arg25[%c2, %c0_12, %c0_13], %27 {strides = array<i32>} : memref<4x8x8xbf16, #tpu.memory_space<vmem>>, vector<1x8x8xbf16>,
    %28 = vector.extract_strided_slice %12 {offsets = [0, 24], sizes = [8, 8], strides = [1, 1]} : vector<8x32xf32> to vector<8x8xf32>
    %29 = arith.truncf %28 : vector<8x8xf32> to vector<8x8xbf16>
    %c3 = arith.constant 3 : index
    %c0_14 = arith.constant 0 : index
    %c0_15 = arith.constant 0 : index
    %30 = vector.load %arg25[%c3, %c0_14, %c0_15] : memref<4x8x8xbf16, #tpu.memory_space<vmem>>, vector<1x8x8xbf16>
    %31 = vector.shape_cast %30 : vector<1x8x8xbf16> to vector<8x8xbf16>
    %32 = vector.shape_cast %29 : vector<8x8xbf16> to vector<1x8x8xbf16>
    tpu.vector_store %arg25[%c3, %c0_14, %c0_15], %32 {strides = array<i32>} : memref<4x8x8xbf16, #tpu.memory_space<vmem>>, vector<1x8x8xbf16>,
    %c0_16 = arith.constant 0 : index
    %c0_17 = arith.constant 0 : index
    %c0_18 = arith.constant 0 : index
    %33 = vector.load %arg25[%c0_16, %c0_17, %c0_18] : memref<4x8x8xbf16, #tpu.memory_space<vmem>>, vector<4x8x8xbf16>
    %c0_19 = arith.constant 0 : index
    %c0_20 = arith.constant 0 : index
    %c0_21 = arith.constant 0 : index
    %34 = vector.load %arg23[%c0_19, %c0_20, %c0_21] : memref<4x8x8xbf16, #tpu.memory_space<vmem>>, vector<4x8x8xbf16>
    %c0_22 = arith.constant 0 : index
    %c0_23 = arith.constant 0 : index
    %c0_24 = arith.constant 0 : index
    %35 = vector.load %arg24[%c0_22, %c0_23, %c0_24] : memref<4x8x8xbf16, #tpu.memory_space<vmem>>, vector<4x8x8xbf16>
    "tpu.trace_start"() <{level = 10 : i32, message = "hqd,hkd->hqk"}> : () -> ()
    %cst_25 = arith.constant dense<0.000000e+00> : vector<4x8x8xf32>
    %36 = tpu.matmul %33, %34, %cst_25 {dimension_numbers = #tpu.dot_dimension_numbers<[2], [2], [1], [1], [0, 0, 0, 1, 1, 1], [0], [0]>} : vector<4x8x8xbf16>, vector<4x8x8xbf16>, vector<4x8x8xf32> -> vector<4x8x8xf32>
    "tpu.trace_stop"() : () -> ()
    %c0_26 = arith.constant 0 : index
    %c0_27 = arith.constant 0 : index
    %c0_28 = arith.constant 0 : index
    %c0_29 = arith.constant 0 : index
    %37 = vector.load %arg4[%c0_26, %c0_27, %c0_28, %c0_29] : memref<1x1x8x8xbf16, #tpu.memory_space<vmem>>, vector<1x1x8x8xbf16>
    %38 = vector.shape_cast %37 : vector<1x1x8x8xbf16> to vector<8x8xbf16>
    %39 = arith.extf %38 : vector<8x8xbf16> to vector<8x8xf32>
    %40 = vector.shape_cast %39 : vector<8x8xf32> to vector<1x8x8xf32>
    %41 = vector.broadcast %40 : vector<1x8x8xf32> to vector<4x8x8xf32>
    %42 = arith.addf %36, %41 : vector<4x8x8xf32>
    %cst_30 = arith.constant dense<0xFF800000> : vector<4x8xf32>
    %43 = vector.multi_reduction <maximumf>, %42, %cst_30 [2] : vector<4x8x8xf32> to vector<4x8xf32>
    %44 = vector.shape_cast %43 : vector<4x8xf32> to vector<4x8x1xf32>
    %45 = vector.broadcast %44 : vector<4x8x1xf32> to vector<4x8x8xf32>
    %46 = arith.subf %42, %45 : vector<4x8x8xf32>
    %47 = math.exp %46 : vector<4x8x8xf32>
    %cst_31 = arith.constant dense<0.000000e+00> : vector<4x8xf32>
    %48 = vector.multi_reduction <add>, %47, %cst_31 [2] : vector<4x8x8xf32> to vector<4x8xf32>
    %49 = vector.shape_cast %48 : vector<4x8xf32> to vector<4x8x1xf32>
    %50 = tpu.reciprocal %49 {approx = true} : vector<4x8x1xf32> -> vector<4x8x1xf32>
    %51 = vector.broadcast %50 : vector<4x8x1xf32> to vector<4x8x8xf32>
    %52 = arith.mulf %47, %51 : vector<4x8x8xf32>
    %53 = arith.truncf %52 : vector<4x8x8xf32> to vector<4x8x8xbf16>
    %c0_32 = arith.constant 0 : index
    %c0_33 = arith.constant 0 : index
    %c0_34 = arith.constant 0 : index
    %c0_35 = arith.constant 0 : index
    %54 = vector.load %arg22[%c0_32, %c0_33, %c0_34, %c0_35] : memref<1x4x8x8xbf16, #tpu.memory_space<vmem>>, vector<1x4x8x8xbf16>
    %55 = vector.shape_cast %54 : vector<1x4x8x8xbf16> to vector<4x8x8xbf16>
    %56 = vector.shape_cast %53 : vector<4x8x8xbf16> to vector<1x4x8x8xbf16>
    tpu.vector_store %arg22[%c0_32, %c0_33, %c0_34, %c0_35], %56 {strides = array<i32>} : memref<1x4x8x8xbf16, #tpu.memory_space<vmem>>, vector<1x4x8x8xbf16>,
    %57 = arith.truncf %52 : vector<4x8x8xf32> to vector<4x8x8xbf16>
    "tpu.trace_start"() <{level = 10 : i32, message = "hqk,hkd->hqd"}> : () -> ()
    %cst_36 = arith.constant dense<0.000000e+00> : vector<4x8x8xf32>
    %58 = tpu.matmul %57, %35, %cst_36 {dimension_numbers = #tpu.dot_dimension_numbers<[2], [1], [1], [2], [0, 0, 0, 1, 1, 2], [0], [0]>} : vector<4x8x8xbf16>, vector<4x8x8xbf16>, vector<4x8x8xf32> -> vector<4x8x8xf32>
    "tpu.trace_stop"() : () -> ()
    %59 = vector.extract_strided_slice %58 {offsets = [0, 0, 0], sizes = [1, 8, 8], strides = [1, 1, 1]} : vector<4x8x8xf32> to vector<1x8x8xf32>
    %60 = vector.shape_cast %59 : vector<1x8x8xf32> to vector<8x8xf32>
    %61 = arith.truncf %60 : vector<8x8xf32> to vector<8x8xbf16>
    %c0_37 = arith.constant 0 : index
    %c0_38 = arith.constant 0 : index
    %62 = vector.load %arg26[%c0_37, %c0_38] : memref<8x32xbf16, #tpu.memory_space<vmem>>, vector<8x8xbf16>
    tpu.vector_store %arg26[%c0_37, %c0_38], %61 {strides = array<i32>} : memref<8x32xbf16, #tpu.memory_space<vmem>>, vector<8x8xbf16>,
    %63 = vector.extract_strided_slice %58 {offsets = [1, 0, 0], sizes = [1, 8, 8], strides = [1, 1, 1]} : vector<4x8x8xf32> to vector<1x8x8xf32>
    %64 = vector.shape_cast %63 : vector<1x8x8xf32> to vector<8x8xf32>
    %65 = arith.truncf %64 : vector<8x8xf32> to vector<8x8xbf16>
    %c0_39 = arith.constant 0 : index
    %c8 = arith.constant 8 : index
    %66 = vector.load %arg26[%c0_39, %c8] : memref<8x32xbf16, #tpu.memory_space<vmem>>, vector<8x8xbf16>
    tpu.vector_store %arg26[%c0_39, %c8], %65 {strides = array<i32>} : memref<8x32xbf16, #tpu.memory_space<vmem>>, vector<8x8xbf16>,
    %67 = vector.extract_strided_slice %58 {offsets = [2, 0, 0], sizes = [1, 8, 8], strides = [1, 1, 1]} : vector<4x8x8xf32> to vector<1x8x8xf32>
    %68 = vector.shape_cast %67 : vector<1x8x8xf32> to vector<8x8xf32>
    %69 = arith.truncf %68 : vector<8x8xf32> to vector<8x8xbf16>
    %c0_40 = arith.constant 0 : index
    %c16 = arith.constant 16 : index
    %70 = vector.load %arg26[%c0_40, %c16] : memref<8x32xbf16, #tpu.memory_space<vmem>>, vector<8x8xbf16>
    tpu.vector_store %arg26[%c0_40, %c16], %69 {strides = array<i32>} : memref<8x32xbf16, #tpu.memory_space<vmem>>, vector<8x8xbf16>,
    %71 = vector.extract_strided_slice %58 {offsets = [3, 0, 0], sizes = [1, 8, 8], strides = [1, 1, 1]} : vector<4x8x8xf32> to vector<1x8x8xf32>
    %72 = vector.shape_cast %71 : vector<1x8x8xf32> to vector<8x8xf32>
    %73 = arith.truncf %72 : vector<8x8xf32> to vector<8x8xbf16>
    %c0_41 = arith.constant 0 : index
    %c24 = arith.constant 24 : index
    %74 = vector.load %arg26[%c0_41, %c24] : memref<8x32xbf16, #tpu.memory_space<vmem>>, vector<8x8xbf16>
    tpu.vector_store %arg26[%c0_41, %c24], %73 {strides = array<i32>} : memref<8x32xbf16, #tpu.memory_space<vmem>>, vector<8x8xbf16>,
    %c0_42 = arith.constant 0 : index
    %c0_43 = arith.constant 0 : index
    %75 = vector.load %arg26[%c0_42, %c0_43] : memref<8x32xbf16, #tpu.memory_space<vmem>>, vector<8x32xbf16>
    %c0_44 = arith.constant 0 : index
    %c0_45 = arith.constant 0 : index
    %76 = vector.load %arg11[%c0_44, %c0_45] : memref<32x32xbf16, #tpu.memory_space<vmem>>, vector<32x32xbf16>
    %cst_46 = arith.constant dense<0.000000e+00> : vector<8x32xf32>
    %77 = tpu.matmul %75, %76, %cst_46 {dimension_numbers = #tpu.dot_dimension_numbers<[1], [0], [0], [1], [0, 0, 1, 1], [], []>} : vector<8x32xbf16>, vector<32x32xbf16>, vector<8x32xf32> -> vector<8x32xf32>
    %c0_47 = arith.constant 0 : index
    %c0_48 = arith.constant 0 : index
    %78 = vector.load %arg12[%c0_47, %c0_48] : memref<1x32xf32, #tpu.memory_space<vmem>>, vector<1x32xf32>
    %79 = vector.shape_cast %78 : vector<1x32xf32> to vector<32xf32>
    %80 = vector.shape_cast %79 : vector<32xf32> to vector<1x32xf32>
    %81 = vector.broadcast %80 : vector<1x32xf32> to vector<8x32xf32>
    %82 = arith.addf %77, %81 : vector<8x32xf32>
    %83 = arith.addf %4, %82 : vector<8x32xf32>
    %c0_49 = arith.constant 0 : index
    %c0_50 = arith.constant 0 : index
    %84 = vector.load %arg13[%c0_49, %c0_50] : memref<1x32xf32, #tpu.memory_space<vmem>>, vector<1x32xf32>
    %85 = vector.shape_cast %84 : vector<1x32xf32> to vector<32xf32>
    %c0_51 = arith.constant 0 : index
    %c0_52 = arith.constant 0 : index
    %86 = vector.load %arg14[%c0_51, %c0_52] : memref<1x32xf32, #tpu.memory_space<vmem>>, vector<1x32xf32>
    %87 = vector.shape_cast %86 : vector<1x32xf32> to vector<32xf32>
    %cst_53 = arith.constant dense<0.000000e+00> : vector<8xf32>
    %88 = vector.multi_reduction <add>, %83, %cst_53 [1] : vector<8x32xf32> to vector<8xf32>
    %89 = vector.shape_cast %88 : vector<8xf32> to vector<8x1xf32>
    %cst_54 = arith.constant 3.200000e+01 : f32
    %90 = vector.broadcast %cst_54 : f32 to vector<8x1xf32>
    %91 = arith.divf %89, %90 : vector<8x1xf32>
    %92 = vector.broadcast %91 : vector<8x1xf32> to vector<8x32xf32>
    %93 = arith.subf %83, %92 : vector<8x32xf32>
    %94 = arith.mulf %93, %93 : vector<8x32xf32>
    %cst_55 = arith.constant dense<0.000000e+00> : vector<8xf32>
    %95 = vector.multi_reduction <add>, %94, %cst_55 [1] : vector<8x32xf32> to vector<8xf32>
    %96 = vector.shape_cast %95 : vector<8xf32> to vector<8x1xf32>
    %cst_56 = arith.constant 3.200000e+01 : f32
    %97 = vector.broadcast %cst_56 : f32 to vector<8x1xf32>
    %98 = arith.divf %96, %97 : vector<8x1xf32>
    %99 = vector.broadcast %91 : vector<8x1xf32> to vector<8x32xf32>
    %100 = arith.subf %83, %99 : vector<8x32xf32>
    %cst_57 = arith.constant 9.99999974E-6 : f32
    %101 = vector.broadcast %cst_57 : f32 to vector<8x1xf32>
    %102 = arith.addf %98, %101 : vector<8x1xf32>
    %103 = math.rsqrt %102 : vector<8x1xf32>
    %104 = vector.broadcast %103 : vector<8x1xf32> to vector<8x32xf32>
    %105 = arith.mulf %100, %104 : vector<8x32xf32>
    %106 = vector.shape_cast %85 : vector<32xf32> to vector<1x32xf32>
    %107 = vector.broadcast %106 : vector<1x32xf32> to vector<8x32xf32>
    %108 = arith.mulf %105, %107 : vector<8x32xf32>
    %109 = vector.shape_cast %87 : vector<32xf32> to vector<1x32xf32>
    %110 = vector.broadcast %109 : vector<1x32xf32> to vector<8x32xf32>
    %111 = arith.addf %108, %110 : vector<8x32xf32>
    %112 = arith.truncf %111 : vector<8x32xf32> to vector<8x32xbf16>
    %c0_58 = arith.constant 0 : index
    %c0_59 = arith.constant 0 : index
    %113 = vector.load %arg15[%c0_58, %c0_59] : memref<32x64xbf16, #tpu.memory_space<vmem>>, vector<32x64xbf16>
    %cst_60 = arith.constant dense<0.000000e+00> : vector<8x64xf32>
    %114 = tpu.matmul %112, %113, %cst_60 {dimension_numbers = #tpu.dot_dimension_numbers<[1], [0], [0], [1], [0, 0, 1, 1], [], []>} : vector<8x32xbf16>, vector<32x64xbf16>, vector<8x64xf32> -> vector<8x64xf32>
    %c0_61 = arith.constant 0 : index
    %c0_62 = arith.constant 0 : index
    %115 = vector.load %arg16[%c0_61, %c0_62] : memref<1x64xf32, #tpu.memory_space<vmem>>, vector<1x64xf32>
    %116 = vector.shape_cast %115 : vector<1x64xf32> to vector<64xf32>
    %117 = vector.shape_cast %116 : vector<64xf32> to vector<1x64xf32>
    %118 = vector.broadcast %117 : vector<1x64xf32> to vector<8x64xf32>
    %119 = arith.addf %114, %118 : vector<8x64xf32>
    %cst_63 = arith.constant 0.000000e+00 : f32
    %120 = vector.broadcast %cst_63 : f32 to vector<8x64xf32>
    %121 = arith.maximumf %119, %120 : vector<8x64xf32>
    %122 = arith.truncf %121 : vector<8x64xf32> to vector<8x64xbf16>
    %c0_64 = arith.constant 0 : index
    %c0_65 = arith.constant 0 : index
    %123 = vector.load %arg17[%c0_64, %c0_65] : memref<64x32xbf16, #tpu.memory_space<vmem>>, vector<64x32xbf16>
    %cst_66 = arith.constant dense<0.000000e+00> : vector<8x32xf32>
    %124 = tpu.matmul %122, %123, %cst_66 {dimension_numbers = #tpu.dot_dimension_numbers<[1], [0], [0], [1], [0, 0, 1, 1], [], []>} : vector<8x64xbf16>, vector<64x32xbf16>, vector<8x32xf32> -> vector<8x32xf32>
    %c0_67 = arith.constant 0 : index
    %c0_68 = arith.constant 0 : index
    %125 = vector.load %arg18[%c0_67, %c0_68] : memref<1x32xf32, #tpu.memory_space<vmem>>, vector<1x32xf32>
    %126 = vector.shape_cast %125 : vector<1x32xf32> to vector<32xf32>
    %127 = vector.shape_cast %126 : vector<32xf32> to vector<1x32xf32>
    %128 = vector.broadcast %127 : vector<1x32xf32> to vector<8x32xf32>
    %129 = arith.addf %124, %128 : vector<8x32xf32>
    %130 = arith.addf %111, %129 : vector<8x32xf32>
    %c0_69 = arith.constant 0 : index
    %c0_70 = arith.constant 0 : index
    %131 = vector.load %arg19[%c0_69, %c0_70] : memref<1x32xf32, #tpu.memory_space<vmem>>, vector<1x32xf32>
    %132 = vector.shape_cast %131 : vector<1x32xf32> to vector<32xf32>
    %c0_71 = arith.constant 0 : index
    %c0_72 = arith.constant 0 : index
    %133 = vector.load %arg20[%c0_71, %c0_72] : memref<1x32xf32, #tpu.memory_space<vmem>>, vector<1x32xf32>
    %134 = vector.shape_cast %133 : vector<1x32xf32> to vector<32xf32>
    %cst_73 = arith.constant dense<0.000000e+00> : vector<8xf32>
    %135 = vector.multi_reduction <add>, %130, %cst_73 [1] : vector<8x32xf32> to vector<8xf32>
    %136 = vector.shape_cast %135 : vector<8xf32> to vector<8x1xf32>
    %cst_74 = arith.constant 3.200000e+01 : f32
    %137 = vector.broadcast %cst_74 : f32 to vector<8x1xf32>
    %138 = arith.divf %136, %137 : vector<8x1xf32>
    %139 = vector.broadcast %138 : vector<8x1xf32> to vector<8x32xf32>
    %140 = arith.subf %130, %139 : vector<8x32xf32>
    %141 = arith.mulf %140, %140 : vector<8x32xf32>
    %cst_75 = arith.constant dense<0.000000e+00> : vector<8xf32>
    %142 = vector.multi_reduction <add>, %141, %cst_75 [1] : vector<8x32xf32> to vector<8xf32>
    %143 = vector.shape_cast %142 : vector<8xf32> to vector<8x1xf32>
    %cst_76 = arith.constant 3.200000e+01 : f32
    %144 = vector.broadcast %cst_76 : f32 to vector<8x1xf32>
    %145 = arith.divf %143, %144 : vector<8x1xf32>
    %146 = vector.broadcast %138 : vector<8x1xf32> to vector<8x32xf32>
    %147 = arith.subf %130, %146 : vector<8x32xf32>
    %cst_77 = arith.constant 9.99999974E-6 : f32
    %148 = vector.broadcast %cst_77 : f32 to vector<8x1xf32>
    %149 = arith.addf %145, %148 : vector<8x1xf32>
    %150 = math.rsqrt %149 : vector<8x1xf32>
    %151 = vector.broadcast %150 : vector<8x1xf32> to vector<8x32xf32>
    %152 = arith.mulf %147, %151 : vector<8x32xf32>
    %153 = vector.shape_cast %132 : vector<32xf32> to vector<1x32xf32>
    %154 = vector.broadcast %153 : vector<1x32xf32> to vector<8x32xf32>
    %155 = arith.mulf %152, %154 : vector<8x32xf32>
    %156 = vector.shape_cast %134 : vector<32xf32> to vector<1x32xf32>
    %157 = vector.broadcast %156 : vector<1x32xf32> to vector<8x32xf32>
    %158 = arith.addf %155, %157 : vector<8x32xf32>
    %c0_78 = arith.constant 0 : index
    %c0_79 = arith.constant 0 : index
    %c0_80 = arith.constant 0 : index
    %159 = vector.load %arg21[%c0_78, %c0_79, %c0_80] : memref<1x8x32xf32, #tpu.memory_space<vmem>>, vector<1x8x32xf32>
    %160 = vector.shape_cast %159 : vector<1x8x32xf32> to vector<8x32xf32>
    %161 = vector.shape_cast %158 : vector<8x32xf32> to vector<1x8x32xf32>
    tpu.vector_store %arg21[%c0_78, %c0_79, %c0_80], %161 {strides = array<i32>} : memref<1x8x32xf32, #tpu.memory_space<vmem>>, vector<1x8x32xf32>,
    return
  }
  func.func @transform_0(%arg0: i32, %arg1: i32) -> (i32, i32, i32) {
    %c0_i32 = arith.constant 0 : i32
    %c0_i32_0 = arith.constant 0 : i32
    return %arg0, %arg1, %c0_i32 : i32, i32, i32
  }
  func.func @transform_1(%arg0: i32, %arg1: i32) -> (i32, i32, i32) {
    %c0_i32 = arith.constant 0 : i32
    %c0_i32_0 = arith.constant 0 : i32
    %c0_i32_1 = arith.constant 0 : i32
    return %arg0, %c0_i32, %c0_i32_0 : i32, i32, i32
  }
  func.func @transform_2(%arg0: i32, %arg1: i32) -> (i32, i32, i32, i32) {
    %c0_i32 = arith.constant 0 : i32
    %c0_i32_0 = arith.constant 0 : i32
    %c0_i32_1 = arith.constant 0 : i32
    return %arg0, %c0_i32, %arg1, %c0_i32_0 : i32, i32, i32, i32
  }
  func.func @transform_3(%arg0: i32, %arg1: i32) -> (i32, i32) {
    %c0_i32 = arith.constant 0 : i32
    %c0_i32_0 = arith.constant 0 : i32
    %c0_i32_1 = arith.constant 0 : i32
    return %c0_i32, %c0_i32_0 : i32, i32
  }
  func.func @transform_4(%arg0: i32, %arg1: i32) -> (i32, i32) {
    %c0_i32 = arith.constant 0 : i32
    %c0_i32_0 = arith.constant 0 : i32
    %c0_i32_1 = arith.constant 0 : i32
    return %c0_i32, %c0_i32_0 : i32, i32
  }
  func.func @transform_5(%arg0: i32, %arg1: i32) -> (i32, i32) {
    %c0_i32 = arith.constant 0 : i32
    %c0_i32_0 = arith.constant 0 : i32
    %c0_i32_1 = arith.constant 0 : i32
    return %c0_i32, %c0_i32_0 : i32, i32
  }
  func.func @transform_6(%arg0: i32, %arg1: i32) -> (i32, i32) {
    %c0_i32 = arith.constant 0 : i32
    %c0_i32_0 = arith.constant 0 : i32
    %c0_i32_1 = arith.constant 0 : i32
    return %c0_i32, %c0_i32_0 : i32, i32
  }
  func.func @transform_7(%arg0: i32, %arg1: i32) -> (i32, i32) {
    %c0_i32 = arith.constant 0 : i32
    %c0_i32_0 = arith.constant 0 : i32
    %c0_i32_1 = arith.constant 0 : i32
    return %c0_i32, %c0_i32_0 : i32, i32
  }
  func.func @transform_8(%arg0: i32, %arg1: i32) -> (i32, i32) {
    %c0_i32 = arith.constant 0 : i32
    %c0_i32_0 = arith.constant 0 : i32
    %c0_i32_1 = arith.constant 0 : i32
    return %c0_i32, %c0_i32_0 : i32, i32
  }
  func.func @transform_9(%arg0: i32, %arg1: i32) -> (i32, i32) {
    %c0_i32 = arith.constant 0 : i32
    %c0_i32_0 = arith.constant 0 : i32
    %c0_i32_1 = arith.constant 0 : i32
    return %c0_i32, %c0_i32_0 : i32, i32
  }
  func.func @transform_10(%arg0: i32, %arg1: i32) -> (i32, i32) {
    %c0_i32 = arith.constant 0 : i32
    %c0_i32_0 = arith.constant 0 : i32
    %c0_i32_1 = arith.constant 0 : i32
    return %c0_i32, %c0_i32_0 : i32, i32
  }
  func.func @transform_11(%arg0: i32, %arg1: i32) -> (i32, i32) {
    %c0_i32 = arith.constant 0 : i32
    %c0_i32_0 = arith.constant 0 : i32
    %c0_i32_1 = arith.constant 0 : i32
    return %c0_i32, %c0_i32_0 : i32, i32
  }
  func.func @transform_12(%arg0: i32, %arg1: i32) -> (i32, i32) {
    %c0_i32 = arith.constant 0 : i32
    %c0_i32_0 = arith.constant 0 : i32
    %c0_i32_1 = arith.constant 0 : i32
    return %c0_i32, %c0_i32_0 : i32, i32
  }
  func.func @transform_13(%arg0: i32, %arg1: i32) -> (i32, i32) {
    %c0_i32 = arith.constant 0 : i32
    %c0_i32_0 = arith.constant 0 : i32
    %c0_i32_1 = arith.constant 0 : i32
    return %c0_i32, %c0_i32_0 : i32, i32
  }
  func.func @transform_14(%arg0: i32, %arg1: i32) -> (i32, i32) {
    %c0_i32 = arith.constant 0 : i32
    %c0_i32_0 = arith.constant 0 : i32
    %c0_i32_1 = arith.constant 0 : i32
    return %c0_i32, %c0_i32_0 : i32, i32
  }
  func.func @transform_15(%arg0: i32, %arg1: i32) -> (i32, i32) {
    %c0_i32 = arith.constant 0 : i32
    %c0_i32_0 = arith.constant 0 : i32
    %c0_i32_1 = arith.constant 0 : i32
    return %c0_i32, %c0_i32_0 : i32, i32
  }
  func.func @transform_16(%arg0: i32, %arg1: i32) -> (i32, i32) {
    %c0_i32 = arith.constant 0 : i32
    %c0_i32_0 = arith.constant 0 : i32
    %c0_i32_1 = arith.constant 0 : i32
    return %c0_i32, %c0_i32_0 : i32, i32
  }
  func.func @transform_17(%arg0: i32, %arg1: i32) -> (i32, i32) {
    %c0_i32 = arith.constant 0 : i32
    %c0_i32_0 = arith.constant 0 : i32
    %c0_i32_1 = arith.constant 0 : i32
    return %c0_i32, %c0_i32_0 : i32, i32
  }
  func.func @transform_18(%arg0: i32, %arg1: i32) -> (i32, i32) {
    %c0_i32 = arith.constant 0 : i32
    %c0_i32_0 = arith.constant 0 : i32
    %c0_i32_1 = arith.constant 0 : i32
    return %c0_i32, %c0_i32_0 : i32, i32
  }
  func.func @transform_19(%arg0: i32, %arg1: i32) -> (i32, i32, i32) {
    %c0_i32 = arith.constant 0 : i32
    %c0_i32_0 = arith.constant 0 : i32
    return %arg0, %arg1, %c0_i32 : i32, i32, i32
  }
  func.func @transform_20(%arg0: i32, %arg1: i32) -> (i32, i32, i32, i32) {
    %c0_i32 = arith.constant 0 : i32
    %c0_i32_0 = arith.constant 0 : i32
    %c0_i32_1 = arith.constant 0 : i32
    return %arg0, %c0_i32, %arg1, %c0_i32_0 : i32, i32, i32, i32
  }
}

module attributes {stable_mosaic.version = 11 : i64} {
  func.func @decoder_layer_kernel(%arg0: i32, %arg1: i32, %arg2: memref<1x8x32xf32, #tpu.memory_space<vmem>>, %arg3: memref<1x8x32xbf16, #tpu.memory_space<vmem>>, %arg4: memref<1x1x8x8xbf16, #tpu.memory_space<vmem>>, %arg5: memref<32x32xbf16, #tpu.memory_space<vmem>>, %arg6: memref<1x32xf32, #tpu.memory_space<vmem>>, %arg7: memref<32x32xbf16, #tpu.memory_space<vmem>>, %arg8: memref<1x32xf32, #tpu.memory_space<vmem>>, %arg9: memref<32x32xbf16, #tpu.memory_space<vmem>>, %arg10: memref<1x32xf32, #tpu.memory_space<vmem>>, %arg11: memref<32x32xbf16, #tpu.memory_space<vmem>>, %arg12: memref<1x32xf32, #tpu.memory_space<vmem>>, %arg13: memref<1x32xf32, #tpu.memory_space<vmem>>, %arg14: memref<1x32xf32, #tpu.memory_space<vmem>>, %arg15: memref<32x64xbf16, #tpu.memory_space<vmem>>, %arg16: memref<1x64xf32, #tpu.memory_space<vmem>>, %arg17: memref<64x32xbf16, #tpu.memory_space<vmem>>, %arg18: memref<1x32xf32, #tpu.memory_space<vmem>>, %arg19: memref<1x32xf32, #tpu.memory_space<vmem>>, %arg20: memref<1x32xf32, #tpu.memory_space<vmem>>, %arg21: memref<1x8x32xf32, #tpu.memory_space<vmem>>, %arg22: memref<1x4x8x8xbf16, #tpu.memory_space<vmem>>, %arg23: memref<4x8x8xbf16, #tpu.memory_space<vmem>>, %arg24: memref<4x8x8xbf16, #tpu.memory_space<vmem>>, %arg25: memref<4x8x8xbf16, #tpu.memory_space<vmem>>, %arg26: memref<8x32xbf16, #tpu.memory_space<vmem>>) attributes {dimension_semantics = [#tpu.dimension_semantics<parallel>, #tpu.dimension_semantics<arbitrary>], iteration_bounds = array<i64: 2, 1>, scalar_prefetch = 0 : i64, scratch_operands = 4 : i64, tpu.core_type = #tpu.core_type<tc>, window_params = [{transform_indices = @transform_0, window_bounds = array<i64: 1, 8, 32>}, {transform_indices = @transform_1, window_bounds = array<i64: 1, 8, 32>}, {transform_indices = @transform_2, window_bounds = array<i64: 1, 1, 8, 8>}, {pipeline_mode = #tpu.pipeline_mode<synchronous>, transform_indices = @transform_3, window_bounds = array<i64: 32, 32>}, {pipeline_mode = #tpu.pipeline_mode<synchronous>, transform_indices = @transform_4, window_bounds = array<i64: 1, 32>}, {pipeline_mode = #tpu.pipeline_mode<synchronous>, transform_indices = @transform_5, window_bounds = array<i64: 32, 32>}, {pipeline_mode = #tpu.pipeline_mode<synchronous>, transform_indices = @transform_6, window_bounds = array<i64: 1, 32>}, {pipeline_mode = #tpu.pipeline_mode<synchronous>, transform_indices = @transform_7, window_bounds = array<i64: 32, 32>}, {pipeline_mode = #tpu.pipeline_mode<synchronous>, transform_indices = @transform_8, window_bounds = array<i64: 1, 32>}, {pipeline_mode = #tpu.pipeline_mode<synchronous>, transform_indices = @transform_9, window_bounds = array<i64: 32, 32>}, {pipeline_mode = #tpu.pipeline_mode<synchronous>, transform_indices = @transform_10, window_bounds = array<i64: 1, 32>}, {pipeline_mode = #tpu.pipeline_mode<synchronous>, transform_indices = @transform_11, window_bounds = array<i64: 1, 32>}, {pipeline_mode = #tpu.pipeline_mode<synchronous>, transform_indices = @transform_12, window_bounds = array<i64: 1, 32>}, {pipeline_mode = #tpu.pipeline_mode<synchronous>, transform_indices = @transform_13, window_bounds = array<i64: 32, 64>}, {pipeline_mode = #tpu.pipeline_mode<synchronous>, transform_indices = @transform_14, window_bounds = array<i64: 1, 64>}, {pipeline_mode = #tpu.pipeline_mode<synchronous>, transform_indices = @transform_15, window_bounds = array<i64: 64, 32>}, {pipeline_mode = #tpu.pipeline_mode<synchronous>, transform_indices = @transform_16, window_bounds = array<i64: 1, 32>}, {pipeline_mode = #tpu.pipeline_mode<synchronous>, transform_indices = @transform_17, window_bounds = array<i64: 1, 32>}, {pipeline_mode = #tpu.pipeline_mode<synchronous>, transform_indices = @transform_18, window_bounds = array<i64: 1, 32>}, {transform_indices = @transform_19, window_bounds = array<i64: 1, 8, 32>}, {transform_indices = @transform_20, window_bounds = array<i64: 1, 4, 8, 8>}]} {
    %c0_i32 = arith.constant 0 : i32
    %0 = arith.cmpi eq, %arg1, %c0_i32 : i32
    %1 = arith.extui %0 : i1 to i32
    %c0_i32_0 = arith.constant 0 : i32
    %2 = arith.cmpi ne, %1, %c0_i32_0 : i32
    scf.if %2 {
      %c0_81 = arith.constant 0 : index
      %c0_82 = arith.constant 0 : index
      %c0_83 = arith.constant 0 : index
      %162 = vector.load %arg3[%c0_81, %c0_82, %c0_83] : memref<1x8x32xbf16, #tpu.memory_space<vmem>>, vector<1x8x32xbf16>
      %163 = vector.shape_cast %162 : vector<1x8x32xbf16> to vector<8x32xbf16>
      %c0_84 = arith.constant 0 : index
      %c0_85 = arith.constant 0 : index
      %164 = vector.load %arg7[%c0_84, %c0_85] : memref<32x32xbf16, #tpu.memory_space<vmem>>, vector<32x32xbf16>
      %cst_86 = arith.constant dense<0.000000e+00> : vector<8x32xf32>
      %165 = tpu.matmul %163, %164, %cst_86 {dimension_numbers = #tpu.dot_dimension_numbers<[1], [0], [0], [1], [0, 0, 1, 1], [], []>} : vector<8x32xbf16>, vector<32x32xbf16>, vector<8x32xf32> -> vector<8x32xf32>
      %c0_87 = arith.constant 0 : index
      %c0_88 = arith.constant 0 : index
      %166 = vector.load %arg8[%c0_87, %c0_88] : memref<1x32xf32, #tpu.memory_space<vmem>>, vector<1x32xf32>
      %167 = vector.shape_cast %166 : vector<1x32xf32> to vector<32xf32>
      %168 = vector.shape_cast %167 : vector<32xf32> to vector<1x32xf32>
      %169 = vector.broadcast %168 : vector<1x32xf32> to vector<8x32xf32>
      %170 = arith.addf %165, %169 : vector<8x32xf32>
      %c0_89 = arith.constant 0 : index
      %c0_90 = arith.constant 0 : index
      %171 = vector.load %arg9[%c0_89, %c0_90] : memref<32x32xbf16, #tpu.memory_space<vmem>>, vector<32x32xbf16>
      %cst_91 = arith.constant dense<0.000000e+00> : vector<8x32xf32>
      %172 = tpu.matmul %163, %171, %cst_91 {dimension_numbers = #tpu.dot_dimension_numbers<[1], [0], [0], [1], [0, 0, 1, 1], [], []>} : vector<8x32xbf16>, vector<32x32xbf16>, vector<8x32xf32> -> vector<8x32xf32>
      %c0_92 = arith.constant 0 : index
      %c0_93 = arith.constant 0 : index
      %173 = vector.load %arg10[%c0_92, %c0_93] : memref<1x32xf32, #tpu.memory_space<vmem>>, vector<1x32xf32>
      %174 = vector.shape_cast %173 : vector<1x32xf32> to vector<32xf32>
      %175 = vector.shape_cast %174 : vector<32xf32> to vector<1x32xf32>
      %176 = vector.broadcast %175 : vector<1x32xf32> to vector<8x32xf32>
      %177 = arith.addf %172, %176 : vector<8x32xf32>
      %178 = vector.extract_strided_slice %170 {offsets = [0, 0], sizes = [8, 8], strides = [1, 1]} : vector<8x32xf32> to vector<8x8xf32>
      %179 = arith.truncf %178 : vector<8x8xf32> to vector<8x8xbf16>
      %c0_94 = arith.constant 0 : index
      %c0_95 = arith.constant 0 : index
      %c0_96 = arith.constant 0 : index
      %180 = vector.load %arg23[%c0_94, %c0_95, %c0_96] : memref<4x8x8xbf16, #tpu.memory_space<vmem>>, vector<1x8x8xbf16>
      %181 = vector.shape_cast %180 : vector<1x8x8xbf16> to vector<8x8xbf16>
      %182 = vector.shape_cast %179 : vector<8x8xbf16> to vector<1x8x8xbf16>
      tpu.vector_store %arg23[%c0_94, %c0_95, %c0_96], %182 {strides = array<i32>} : memref<4x8x8xbf16, #tpu.memory_space<vmem>>, vector<1x8x8xbf16>,
      %183 = vector.extract_strided_slice %177 {offsets = [0, 0], sizes = [8, 8], strides = [1, 1]} : vector<8x32xf32> to vector<8x8xf32>
      %184 = arith.truncf %183 : vector<8x8xf32> to vector<8x8xbf16>
      %c0_97 = arith.constant 0 : index
      %c0_98 = arith.constant 0 : index
      %c0_99 = arith.constant 0 : index
      %185 = vector.load %arg24[%c0_97, %c0_98, %c0_99] : memref<4x8x8xbf16, #tpu.memory_space<vmem>>, vector<1x8x8xbf16>
      %186 = vector.shape_cast %185 : vector<1x8x8xbf16> to vector<8x8xbf16>
      %187 = vector.shape_cast %184 : vector<8x8xbf16> to vector<1x8x8xbf16>
      tpu.vector_store %arg24[%c0_97, %c0_98, %c0_99], %187 {strides = array<i32>} : memref<4x8x8xbf16, #tpu.memory_space<vmem>>, vector<1x8x8xbf16>,
      %188 = vector.extract_strided_slice %170 {offsets = [0, 8], sizes = [8, 8], strides = [1, 1]} : vector<8x32xf32> to vector<8x8xf32>
      %189 = arith.truncf %188 : vector<8x8xf32> to vector<8x8xbf16>
      %c1_100 = arith.constant 1 : index
      %c0_101 = arith.constant 0 : index
      %c0_102 = arith.constant 0 : index
      %190 = vector.load %arg23[%c1_100, %c0_101, %c0_102] : memref<4x8x8xbf16, #tpu.memory_space<vmem>>, vector<1x8x8xbf16>
      %191 = vector.shape_cast %190 : vector<1x8x8xbf16> to vector<8x8xbf16>
      %192 = vector.shape_cast %189 : vector<8x8xbf16> to vector<1x8x8xbf16>
      tpu.vector_store %arg23[%c1_100, %c0_101, %c0_102], %192 {strides = array<i32>} : memref<4x8x8xbf16, #tpu.memory_space<vmem>>, vector<1x8x8xbf16>,
      %193 = vector.extract_strided_slice %177 {offsets = [0, 8], sizes = [8, 8], strides = [1, 1]} : vector<8x32xf32> to vector<8x8xf32>
      %194 = arith.truncf %193 : vector<8x8xf32> to vector<8x8xbf16>
      %c1_103 = arith.constant 1 : index
      %c0_104 = arith.constant 0 : index
      %c0_105 = arith.constant 0 : index
      %195 = vector.load %arg24[%c1_103, %c0_104, %c0_105] : memref<4x8x8xbf16, #tpu.memory_space<vmem>>, vector<1x8x8xbf16>
      %196 = vector.shape_cast %195 : vector<1x8x8xbf16> to vector<8x8xbf16>
      %197 = vector.shape_cast %194 : vector<8x8xbf16> to vector<1x8x8xbf16>
      tpu.vector_store %arg24[%c1_103, %c0_104, %c0_105], %197 {strides = array<i32>} : memref<4x8x8xbf16, #tpu.memory_space<vmem>>, vector<1x8x8xbf16>,
      %198 = vector.extract_strided_slice %170 {offsets = [0, 16], sizes = [8, 8], strides = [1, 1]} : vector<8x32xf32> to vector<8x8xf32>
      %199 = arith.truncf %198 : vector<8x8xf32> to vector<8x8xbf16>
      %c2_106 = arith.constant 2 : index
      %c0_107 = arith.constant 0 : index
      %c0_108 = arith.constant 0 : index
      %200 = vector.load %arg23[%c2_106, %c0_107, %c0_108] : memref<4x8x8xbf16, #tpu.memory_space<vmem>>, vector<1x8x8xbf16>
      %201 = vector.shape_cast %200 : vector<1x8x8xbf16> to vector<8x8xbf16>
      %202 = vector.shape_cast %199 : vector<8x8xbf16> to vector<1x8x8xbf16>
      tpu.vector_store %arg23[%c2_106, %c0_107, %c0_108], %202 {strides = array<i32>} : memref<4x8x8xbf16, #tpu.memory_space<vmem>>, vector<1x8x8xbf16>,
      %203 = vector.extract_strided_slice %177 {offsets = [0, 16], sizes = [8, 8], strides = [1, 1]} : vector<8x32xf32> to vector<8x8xf32>
      %204 = arith.truncf %203 : vector<8x8xf32> to vector<8x8xbf16>
      %c2_109 = arith.constant 2 : index
      %c0_110 = arith.constant 0 : index
      %c0_111 = arith.constant 0 : index
      %205 = vector.load %arg24[%c2_109, %c0_110, %c0_111] : memref<4x8x8xbf16, #tpu.memory_space<vmem>>, vector<1x8x8xbf16>
      %206 = vector.shape_cast %205 : vector<1x8x8xbf16> to vector<8x8xbf16>
      %207 = vector.shape_cast %204 : vector<8x8xbf16> to vector<1x8x8xbf16>
      tpu.vector_store %arg24[%c2_109, %c0_110, %c0_111], %207 {strides = array<i32>} : memref<4x8x8xbf16, #tpu.memory_space<vmem>>, vector<1x8x8xbf16>,
      %208 = vector.extract_strided_slice %170 {offsets = [0, 24], sizes = [8, 8], strides = [1, 1]} : vector<8x32xf32> to vector<8x8xf32>
      %209 = arith.truncf %208 : vector<8x8xf32> to vector<8x8xbf16>
      %c3_112 = arith.constant 3 : index
      %c0_113 = arith.constant 0 : index
      %c0_114 = arith.constant 0 : index
      %210 = vector.load %arg23[%c3_112, %c0_113, %c0_114] : memref<4x8x8xbf16, #tpu.memory_space<vmem>>, vector<1x8x8xbf16>
      %211 = vector.shape_cast %210 : vector<1x8x8xbf16> to vector<8x8xbf16>
      %212 = vector.shape_cast %209 : vector<8x8xbf16> to vector<1x8x8xbf16>
      tpu.vector_store %arg23[%c3_112, %c0_113, %c0_114], %212 {strides = array<i32>} : memref<4x8x8xbf16, #tpu.memory_space<vmem>>, vector<1x8x8xbf16>,
      %213 = vector.extract_strided_slice %177 {offsets = [0, 24], sizes = [8, 8], strides = [1, 1]} : vector<8x32xf32> to vector<8x8xf32>
      %214 = arith.truncf %213 : vector<8x8xf32> to vector<8x8xbf16>
      %c3_115 = arith.constant 3 : index
      %c0_116 = arith.constant 0 : index
      %c0_117 = arith.constant 0 : index
      %215 = vector.load %arg24[%c3_115, %c0_116, %c0_117] : memref<4x8x8xbf16, #tpu.memory_space<vmem>>, vector<1x8x8xbf16>
      %216 = vector.shape_cast %215 : vector<1x8x8xbf16> to vector<8x8xbf16>
      %217 = vector.shape_cast %214 : vector<8x8xbf16> to vector<1x8x8xbf16>
      tpu.vector_store %arg24[%c3_115, %c0_116, %c0_117], %217 {strides = array<i32>} : memref<4x8x8xbf16, #tpu.memory_space<vmem>>, vector<1x8x8xbf16>,
    } else {
    }
    %c0 = arith.constant 0 : index
    %c0_1 = arith.constant 0 : index
    %c0_2 = arith.constant 0 : index
    %3 = vector.load %arg2[%c0, %c0_1, %c0_2] : memref<1x8x32xf32, #tpu.memory_space<vmem>>, vector<1x8x32xf32>
    %4 = vector.shape_cast %3 : vector<1x8x32xf32> to vector<8x32xf32>
    %5 = arith.truncf %4 : vector<8x32xf32> to vector<8x32xbf16>
    %c0_3 = arith.constant 0 : index
    %c0_4 = arith.constant 0 : index
    %6 = vector.load %arg5[%c0_3, %c0_4] : memref<32x32xbf16, #tpu.memory_space<vmem>>, vector<32x32xbf16>
    %cst = arith.constant dense<0.000000e+00> : vector<8x32xf32>
    %7 = tpu.matmul %5, %6, %cst {dimension_numbers = #tpu.dot_dimension_numbers<[1], [0], [0], [1], [0, 0, 1, 1], [], []>} : vector<8x32xbf16>, vector<32x32xbf16>, vector<8x32xf32> -> vector<8x32xf32>
    %c0_5 = arith.constant 0 : index
    %c0_6 = arith.constant 0 : index
    %8 = vector.load %arg6[%c0_5, %c0_6] : memref<1x32xf32, #tpu.memory_space<vmem>>, vector<1x32xf32>
    %9 = vector.shape_cast %8 : vector<1x32xf32> to vector<32xf32>
    %10 = vector.shape_cast %9 : vector<32xf32> to vector<1x32xf32>
    %11 = vector.broadcast %10 : vector<1x32xf32> to vector<8x32xf32>
    %12 = arith.addf %7, %11 : vector<8x32xf32>
    %13 = vector.extract_strided_slice %12 {offsets = [0, 0], sizes = [8, 8], strides = [1, 1]} : vector<8x32xf32> to vector<8x8xf32>
    %14 = arith.truncf %13 : vector<8x8xf32> to vector<8x8xbf16>
    %c0_7 = arith.constant 0 : index
    %c0_8 = arith.constant 0 : index
    %c0_9 = arith.constant 0 : index
    %15 = vector.load %arg25[%c0_7, %c0_8, %c0_9] : memref<4x8x8xbf16, #tpu.memory_space<vmem>>, vector<1x8x8xbf16>
    %16 = vector.shape_cast %15 : vector<1x8x8xbf16> to vector<8x8xbf16>
    %17 = vector.shape_cast %14 : vector<8x8xbf16> to vector<1x8x8xbf16>
    tpu.vector_store %arg25[%c0_7, %c0_8, %c0_9], %17 {strides = array<i32>} : memref<4x8x8xbf16, #tpu.memory_space<vmem>>, vector<1x8x8xbf16>,
    %18 = vector.extract_strided_slice %12 {offsets = [0, 8], sizes = [8, 8], strides = [1, 1]} : vector<8x32xf32> to vector<8x8xf32>
    %19 = arith.truncf %18 : vector<8x8xf32> to vector<8x8xbf16>
    %c1 = arith.constant 1 : index
    %c0_10 = arith.constant 0 : index
    %c0_11 = arith.constant 0 : index
    %20 = vector.load %arg25[%c1, %c0_10, %c0_11] : memref<4x8x8xbf16, #tpu.memory_space<vmem>>, vector<1x8x8xbf16>
    %21 = vector.shape_cast %20 : vector<1x8x8xbf16> to vector<8x8xbf16>
    %22 = vector.shape_cast %19 : vector<8x8xbf16> to vector<1x8x8xbf16>
    tpu.vector_store %arg25[%c1, %c0_10, %c0_11], %22 {strides = array<i32>} : memref<4x8x8xbf16, #tpu.memory_space<vmem>>, vector<1x8x8xbf16>,
    %23 = vector.extract_strided_slice %12 {offsets = [0, 16], sizes = [8, 8], strides = [1, 1]} : vector<8x32xf32> to vector<8x8xf32>
    %24 = arith.truncf %23 : vector<8x8xf32> to vector<8x8xbf16>
    %c2 = arith.constant 2 : index
    %c0_12 = arith.constant 0 : index
    %c0_13 = arith.constant 0 : index
    %25 = vector.load %arg25[%c2, %c0_12, %c0_13] : memref<4x8x8xbf16, #tpu.memory_space<vmem>>, vector<1x8x8xbf16>
    %26 = vector.shape_cast %25 : vector<1x8x8xbf16> to vector<8x8xbf16>
    %27 = vector.shape_cast %24 : vector<8x8xbf16> to vector<1x8x8xbf16>
    tpu.vector_store %arg25[%c2, %c0_12, %c0_13], %27 {strides = array<i32>} : memref<4x8x8xbf16, #tpu.memory_space<vmem>>, vector<1x8x8xbf16>,
    %28 = vector.extract_strided_slice %12 {offsets = [0, 24], sizes = [8, 8], strides = [1, 1]} : vector<8x32xf32> to vector<8x8xf32>
    %29 = arith.truncf %28 : vector<8x8xf32> to vector<8x8xbf16>
    %c3 = arith.constant 3 : index
    %c0_14 = arith.constant 0 : index
    %c0_15 = arith.constant 0 : index
    %30 = vector.load %arg25[%c3, %c0_14, %c0_15] : memref<4x8x8xbf16, #tpu.memory_space<vmem>>, vector<1x8x8xbf16>
    %31 = vector.shape_cast %30 : vector<1x8x8xbf16> to vector<8x8xbf16>
    %32 = vector.shape_cast %29 : vector<8x8xbf16> to vector<1x8x8xbf16>
    tpu.vector_store %arg25[%c3, %c0_14, %c0_15], %32 {strides = array<i32>} : memref<4x8x8xbf16, #tpu.memory_space<vmem>>, vector<1x8x8xbf16>,
    %c0_16 = arith.constant 0 : index
    %c0_17 = arith.constant 0 : index
    %c0_18 = arith.constant 0 : index
    %33 = vector.load %arg25[%c0_16, %c0_17, %c0_18] : memref<4x8x8xbf16, #tpu.memory_space<vmem>>, vector<4x8x8xbf16>
    %c0_19 = arith.constant 0 : index
    %c0_20 = arith.constant 0 : index
    %c0_21 = arith.constant 0 : index
    %34 = vector.load %arg23[%c0_19, %c0_20, %c0_21] : memref<4x8x8xbf16, #tpu.memory_space<vmem>>, vector<4x8x8xbf16>
    %c0_22 = arith.constant 0 : index
    %c0_23 = arith.constant 0 : index
    %c0_24 = arith.constant 0 : index
    %35 = vector.load %arg24[%c0_22, %c0_23, %c0_24] : memref<4x8x8xbf16, #tpu.memory_space<vmem>>, vector<4x8x8xbf16>
    "tpu.trace_start"() <{level = 10 : i32, message = "hqd,hkd->hqk"}> : () -> ()
    %cst_25 = arith.constant dense<0.000000e+00> : vector<4x8x8xf32>
    %36 = tpu.matmul %33, %34, %cst_25 {dimension_numbers = #tpu.dot_dimension_numbers<[2], [2], [1], [1], [0, 0, 0, 1, 1, 1], [0], [0]>} : vector<4x8x8xbf16>, vector<4x8x8xbf16>, vector<4x8x8xf32> -> vector<4x8x8xf32>
    "tpu.trace_stop"() : () -> ()
    %c0_26 = arith.constant 0 : index
    %c0_27 = arith.constant 0 : index
    %c0_28 = arith.constant 0 : index
    %c0_29 = arith.constant 0 : index
    %37 = vector.load %arg4[%c0_26, %c0_27, %c0_28, %c0_29] : memref<1x1x8x8xbf16, #tpu.memory_space<vmem>>, vector<1x1x8x8xbf16>
    %38 = vector.shape_cast %37 : vector<1x1x8x8xbf16> to vector<8x8xbf16>
    %39 = arith.extf %38 : vector<8x8xbf16> to vector<8x8xf32>
    %40 = vector.shape_cast %39 : vector<8x8xf32> to vector<1x8x8xf32>
    %41 = vector.broadcast %40 : vector<1x8x8xf32> to vector<4x8x8xf32>
    %42 = arith.addf %36, %41 : vector<4x8x8xf32>
    %cst_30 = arith.constant dense<0xFF800000> : vector<4x8xf32>
    %43 = vector.multi_reduction <maximumf>, %42, %cst_30 [2] : vector<4x8x8xf32> to vector<4x8xf32>
    %44 = vector.shape_cast %43 : vector<4x8xf32> to vector<4x8x1xf32>
    %45 = vector.broadcast %44 : vector<4x8x1xf32> to vector<4x8x8xf32>
    %46 = arith.subf %42, %45 : vector<4x8x8xf32>
    %47 = math.exp %46 : vector<4x8x8xf32>
    %cst_31 = arith.constant dense<0.000000e+00> : vector<4x8xf32>
    %48 = vector.multi_reduction <add>, %47, %cst_31 [2] : vector<4x8x8xf32> to vector<4x8xf32>
    %49 = vector.shape_cast %48 : vector<4x8xf32> to vector<4x8x1xf32>
    %50 = tpu.reciprocal %49 {approx = true} : vector<4x8x1xf32> -> vector<4x8x1xf32>
    %51 = vector.broadcast %50 : vector<4x8x1xf32> to vector<4x8x8xf32>
    %52 = arith.mulf %47, %51 : vector<4x8x8xf32>
    %53 = arith.truncf %52 : vector<4x8x8xf32> to vector<4x8x8xbf16>
    %c0_32 = arith.constant 0 : index
    %c0_33 = arith.constant 0 : index
    %c0_34 = arith.constant 0 : index
    %c0_35 = arith.constant 0 : index
    %54 = vector.load %arg22[%c0_32, %c0_33, %c0_34, %c0_35] : memref<1x4x8x8xbf16, #tpu.memory_space<vmem>>, vector<1x4x8x8xbf16>
    %55 = vector.shape_cast %54 : vector<1x4x8x8xbf16> to vector<4x8x8xbf16>
    %56 = vector.shape_cast %53 : vector<4x8x8xbf16> to vector<1x4x8x8xbf16>
    tpu.vector_store %arg22[%c0_32, %c0_33, %c0_34, %c0_35], %56 {strides = array<i32>} : memref<1x4x8x8xbf16, #tpu.memory_space<vmem>>, vector<1x4x8x8xbf16>,
    %57 = arith.truncf %52 : vector<4x8x8xf32> to vector<4x8x8xbf16>
    "tpu.trace_start"() <{level = 10 : i32, message = "hqk,hkd->hqd"}> : () -> ()
    %cst_36 = arith.constant dense<0.000000e+00> : vector<4x8x8xf32>
    %58 = tpu.matmul %57, %35, %cst_36 {dimension_numbers = #tpu.dot_dimension_numbers<[2], [1], [1], [2], [0, 0, 0, 1, 1, 2], [0], [0]>} : vector<4x8x8xbf16>, vector<4x8x8xbf16>, vector<4x8x8xf32> -> vector<4x8x8xf32>
    "tpu.trace_stop"() : () -> ()
    %59 = vector.extract_strided_slice %58 {offsets = [0, 0, 0], sizes = [1, 8, 8], strides = [1, 1, 1]} : vector<4x8x8xf32> to vector<1x8x8xf32>
    %60 = vector.shape_cast %59 : vector<1x8x8xf32> to vector<8x8xf32>
    %61 = arith.truncf %60 : vector<8x8xf32> to vector<8x8xbf16>
    %c0_37 = arith.constant 0 : index
    %c0_38 = arith.constant 0 : index
    %62 = vector.load %arg26[%c0_37, %c0_38] : memref<8x32xbf16, #tpu.memory_space<vmem>>, vector<8x8xbf16>
    tpu.vector_store %arg26[%c0_37, %c0_38], %61 {strides = array<i32>} : memref<8x32xbf16, #tpu.memory_space<vmem>>, vector<8x8xbf16>,
    %63 = vector.extract_strided_slice %58 {offsets = [1, 0, 0], sizes = [1, 8, 8], strides = [1, 1, 1]} : vector<4x8x8xf32> to vector<1x8x8xf32>
    %64 = vector.shape_cast %63 : vector<1x8x8xf32> to vector<8x8xf32>
    %65 = arith.truncf %64 : vector<8x8xf32> to vector<8x8xbf16>
    %c0_39 = arith.constant 0 : index
    %c8 = arith.constant 8 : index
    %66 = vector.load %arg26[%c0_39, %c8] : memref<8x32xbf16, #tpu.memory_space<vmem>>, vector<8x8xbf16>
    tpu.vector_store %arg26[%c0_39, %c8], %65 {strides = array<i32>} : memref<8x32xbf16, #tpu.memory_space<vmem>>, vector<8x8xbf16>,
    %67 = vector.extract_strided_slice %58 {offsets = [2, 0, 0], sizes = [1, 8, 8], strides = [1, 1, 1]} : vector<4x8x8xf32> to vector<1x8x8xf32>
    %68 = vector.shape_cast %67 : vector<1x8x8xf32> to vector<8x8xf32>
    %69 = arith.truncf %68 : vector<8x8xf32> to vector<8x8xbf16>
    %c0_40 = arith.constant 0 : index
    %c16 = arith.constant 16 : index
    %70 = vector.load %arg26[%c0_40, %c16] : memref<8x32xbf16, #tpu.memory_space<vmem>>, vector<8x8xbf16>
    tpu.vector_store %arg26[%c0_40, %c16], %69 {strides = array<i32>} : memref<8x32xbf16, #tpu.memory_space<vmem>>, vector<8x8xbf16>,
    %71 = vector.extract_strided_slice %58 {offsets = [3, 0, 0], sizes = [1, 8, 8], strides = [1, 1, 1]} : vector<4x8x8xf32> to vector<1x8x8xf32>
    %72 = vector.shape_cast %71 : vector<1x8x8xf32> to vector<8x8xf32>
    %73 = arith.truncf %72 : vector<8x8xf32> to vector<8x8xbf16>
    %c0_41 = arith.constant 0 : index
    %c24 = arith.constant 24 : index
    %74 = vector.load %arg26[%c0_41, %c24] : memref<8x32xbf16, #tpu.memory_space<vmem>>, vector<8x8xbf16>
    tpu.vector_store %arg26[%c0_41, %c24], %73 {strides = array<i32>} : memref<8x32xbf16, #tpu.memory_space<vmem>>, vector<8x8xbf16>,
    %c0_42 = arith.constant 0 : index
    %c0_43 = arith.constant 0 : index
    %75 = vector.load %arg26[%c0_42, %c0_43] : memref<8x32xbf16, #tpu.memory_space<vmem>>, vector<8x32xbf16>
    %c0_44 = arith.constant 0 : index
    %c0_45 = arith.constant 0 : index
    %76 = vector.load %arg11[%c0_44, %c0_45] : memref<32x32xbf16, #tpu.memory_space<vmem>>, vector<32x32xbf16>
    %cst_46 = arith.constant dense<0.000000e+00> : vector<8x32xf32>
    %77 = tpu.matmul %75, %76, %cst_46 {dimension_numbers = #tpu.dot_dimension_numbers<[1], [0], [0], [1], [0, 0, 1, 1], [], []>} : vector<8x32xbf16>, vector<32x32xbf16>, vector<8x32xf32> -> vector<8x32xf32>
    %c0_47 = arith.constant 0 : index
    %c0_48 = arith.constant 0 : index
    %78 = vector.load %arg12[%c0_47, %c0_48] : memref<1x32xf32, #tpu.memory_space<vmem>>, vector<1x32xf32>
    %79 = vector.shape_cast %78 : vector<1x32xf32> to vector<32xf32>
    %80 = vector.shape_cast %79 : vector<32xf32> to vector<1x32xf32>
    %81 = vector.broadcast %80 : vector<1x32xf32> to vector<8x32xf32>
    %82 = arith.addf %77, %81 : vector<8x32xf32>
    %83 = arith.addf %4, %82 : vector<8x32xf32>
    %c0_49 = arith.constant 0 : index
    %c0_50 = arith.constant 0 : index
    %84 = vector.load %arg13[%c0_49, %c0_50] : memref<1x32xf32, #tpu.memory_space<vmem>>, vector<1x32xf32>
    %85 = vector.shape_cast %84 : vector<1x32xf32> to vector<32xf32>
    %c0_51 = arith.constant 0 : index
    %c0_52 = arith.constant 0 : index
    %86 = vector.load %arg14[%c0_51, %c0_52] : memref<1x32xf32, #tpu.memory_space<vmem>>, vector<1x32xf32>
    %87 = vector.shape_cast %86 : vector<1x32xf32> to vector<32xf32>
    %cst_53 = arith.constant dense<0.000000e+00> : vector<8xf32>
    %88 = vector.multi_reduction <add>, %83, %cst_53 [1] : vector<8x32xf32> to vector<8xf32>
    %89 = vector.shape_cast %88 : vector<8xf32> to vector<8x1xf32>
    %cst_54 = arith.constant 3.200000e+01 : f32
    %90 = vector.broadcast %cst_54 : f32 to vector<8x1xf32>
    %91 = arith.divf %89, %90 : vector<8x1xf32>
    %92 = vector.broadcast %91 : vector<8x1xf32> to vector<8x32xf32>
    %93 = arith.subf %83, %92 : vector<8x32xf32>
    %94 = arith.mulf %93, %93 : vector<8x32xf32>
    %cst_55 = arith.constant dense<0.000000e+00> : vector<8xf32>
    %95 = vector.multi_reduction <add>, %94, %cst_55 [1] : vector<8x32xf32> to vector<8xf32>
    %96 = vector.shape_cast %95 : vector<8xf32> to vector<8x1xf32>
    %cst_56 = arith.constant 3.200000e+01 : f32
    %97 = vector.broadcast %cst_56 : f32 to vector<8x1xf32>
    %98 = arith.divf %96, %97 : vector<8x1xf32>
    %99 = vector.broadcast %91 : vector<8x1xf32> to vector<8x32xf32>
    %100 = arith.subf %83, %99 : vector<8x32xf32>
    %cst_57 = arith.constant 9.99999974E-6 : f32
    %101 = vector.broadcast %cst_57 : f32 to vector<8x1xf32>
    %102 = arith.addf %98, %101 : vector<8x1xf32>
    %103 = math.rsqrt %102 : vector<8x1xf32>
    %104 = vector.broadcast %103 : vector<8x1xf32> to vector<8x32xf32>
    %105 = arith.mulf %100, %104 : vector<8x32xf32>
    %106 = vector.shape_cast %85 : vector<32xf32> to vector<1x32xf32>
    %107 = vector.broadcast %106 : vector<1x32xf32> to vector<8x32xf32>
    %108 = arith.mulf %105, %107 : vector<8x32xf32>
    %109 = vector.shape_cast %87 : vector<32xf32> to vector<1x32xf32>
    %110 = vector.broadcast %109 : vector<1x32xf32> to vector<8x32xf32>
    %111 = arith.addf %108, %110 : vector<8x32xf32>
    %112 = arith.truncf %111 : vector<8x32xf32> to vector<8x32xbf16>
    %c0_58 = arith.constant 0 : index
    %c0_59 = arith.constant 0 : index
    %113 = vector.load %arg15[%c0_58, %c0_59] : memref<32x64xbf16, #tpu.memory_space<vmem>>, vector<32x64xbf16>
    %cst_60 = arith.constant dense<0.000000e+00> : vector<8x64xf32>
    %114 = tpu.matmul %112, %113, %cst_60 {dimension_numbers = #tpu.dot_dimension_numbers<[1], [0], [0], [1], [0, 0, 1, 1], [], []>} : vector<8x32xbf16>, vector<32x64xbf16>, vector<8x64xf32> -> vector<8x64xf32>
    %c0_61 = arith.constant 0 : index
    %c0_62 = arith.constant 0 : index
    %115 = vector.load %arg16[%c0_61, %c0_62] : memref<1x64xf32, #tpu.memory_space<vmem>>, vector<1x64xf32>
    %116 = vector.shape_cast %115 : vector<1x64xf32> to vector<64xf32>
    %117 = vector.shape_cast %116 : vector<64xf32> to vector<1x64xf32>
    %118 = vector.broadcast %117 : vector<1x64xf32> to vector<8x64xf32>
    %119 = arith.addf %114, %118 : vector<8x64xf32>
    %cst_63 = arith.constant 0.000000e+00 : f32
    %120 = vector.broadcast %cst_63 : f32 to vector<8x64xf32>
    %121 = arith.maximumf %119, %120 : vector<8x64xf32>
    %122 = arith.truncf %121 : vector<8x64xf32> to vector<8x64xbf16>
    %c0_64 = arith.constant 0 : index
    %c0_65 = arith.constant 0 : index
    %123 = vector.load %arg17[%c0_64, %c0_65] : memref<64x32xbf16, #tpu.memory_space<vmem>>, vector<64x32xbf16>
    %cst_66 = arith.constant dense<0.000000e+00> : vector<8x32xf32>
    %124 = tpu.matmul %122, %123, %cst_66 {dimension_numbers = #tpu.dot_dimension_numbers<[1], [0], [0], [1], [0, 0, 1, 1], [], []>} : vector<8x64xbf16>, vector<64x32xbf16>, vector<8x32xf32> -> vector<8x32xf32>
    %c0_67 = arith.constant 0 : index
    %c0_68 = arith.constant 0 : index
    %125 = vector.load %arg18[%c0_67, %c0_68] : memref<1x32xf32, #tpu.memory_space<vmem>>, vector<1x32xf32>
    %126 = vector.shape_cast %125 : vector<1x32xf32> to vector<32xf32>
    %127 = vector.shape_cast %126 : vector<32xf32> to vector<1x32xf32>
    %128 = vector.broadcast %127 : vector<1x32xf32> to vector<8x32xf32>
    %129 = arith.addf %124, %128 : vector<8x32xf32>
    %130 = arith.addf %111, %129 : vector<8x32xf32>
    %c0_69 = arith.constant 0 : index
    %c0_70 = arith.constant 0 : index
    %131 = vector.load %arg19[%c0_69, %c0_70] : memref<1x32xf32, #tpu.memory_space<vmem>>, vector<1x32xf32>
    %132 = vector.shape_cast %131 : vector<1x32xf32> to vector<32xf32>
    %c0_71 = arith.constant 0 : index
    %c0_72 = arith.constant 0 : index
    %133 = vector.load %arg20[%c0_71, %c0_72] : memref<1x32xf32, #tpu.memory_space<vmem>>, vector<1x32xf32>
    %134 = vector.shape_cast %133 : vector<1x32xf32> to vector<32xf32>
    %cst_73 = arith.constant dense<0.000000e+00> : vector<8xf32>
    %135 = vector.multi_reduction <add>, %130, %cst_73 [1] : vector<8x32xf32> to vector<8xf32>
    %136 = vector.shape_cast %135 : vector<8xf32> to vector<8x1xf32>
    %cst_74 = arith.constant 3.200000e+01 : f32
    %137 = vector.broadcast %cst_74 : f32 to vector<8x1xf32>
    %138 = arith.divf %136, %137 : vector<8x1xf32>
    %139 = vector.broadcast %138 : vector<8x1xf32> to vector<8x32xf32>
    %140 = arith.subf %130, %139 : vector<8x32xf32>
    %141 = arith.mulf %140, %140 : vector<8x32xf32>
    %cst_75 = arith.constant dense<0.000000e+00> : vector<8xf32>
    %142 = vector.multi_reduction <add>, %141, %cst_75 [1] : vector<8x32xf32> to vector<8xf32>
    %143 = vector.shape_cast %142 : vector<8xf32> to vector<8x1xf32>
    %cst_76 = arith.constant 3.200000e+01 : f32
    %144 = vector.broadcast %cst_76 : f32 to vector<8x1xf32>
    %145 = arith.divf %143, %144 : vector<8x1xf32>
    %146 = vector.broadcast %138 : vector<8x1xf32> to vector<8x32xf32>
    %147 = arith.subf %130, %146 : vector<8x32xf32>
    %cst_77 = arith.constant 9.99999974E-6 : f32
    %148 = vector.broadcast %cst_77 : f32 to vector<8x1xf32>
    %149 = arith.addf %145, %148 : vector<8x1xf32>
    %150 = math.rsqrt %149 : vector<8x1xf32>
    %151 = vector.broadcast %150 : vector<8x1xf32> to vector<8x32xf32>
    %152 = arith.mulf %147, %151 : vector<8x32xf32>
    %153 = vector.shape_cast %132 : vector<32xf32> to vector<1x32xf32>
    %154 = vector.broadcast %153 : vector<1x32xf32> to vector<8x32xf32>
    %155 = arith.mulf %152, %154 : vector<8x32xf32>
    %156 = vector.shape_cast %134 : vector<32xf32> to vector<1x32xf32>
    %157 = vector.broadcast %156 : vector<1x32xf32> to vector<8x32xf32>
    %158 = arith.addf %155, %157 : vector<8x32xf32>
    %c0_78 = arith.constant 0 : index
    %c0_79 = arith.constant 0 : index
    %c0_80 = arith.constant 0 : index
    %159 = vector.load %arg21[%c0_78, %c0_79, %c0_80] : memref<1x8x32xf32, #tpu.memory_space<vmem>>, vector<1x8x32xf32>
    %160 = vector.shape_cast %159 : vector<1x8x32xf32> to vector<8x32xf32>
    %161 = vector.shape_cast %158 : vector<8x32xf32> to vector<1x8x32xf32>
    tpu.vector_store %arg21[%c0_78, %c0_79, %c0_80], %161 {strides = array<i32>} : memref<1x8x32xf32, #tpu.memory_space<vmem>>, vector<1x8x32xf32>,
    return
  }
  func.func @transform_0(%arg0: i32, %arg1: i32) -> (i32, i32, i32) {
    %c0_i32 = arith.constant 0 : i32
    %c0_i32_0 = arith.constant 0 : i32
    return %arg0, %arg1, %c0_i32 : i32, i32, i32
  }
  func.func @transform_1(%arg0: i32, %arg1: i32) -> (i32, i32, i32) {
    %c0_i32 = arith.constant 0 : i32
    %c0_i32_0 = arith.constant 0 : i32
    %c0_i32_1 = arith.constant 0 : i32
    return %arg0, %c0_i32, %c0_i32_0 : i32, i32, i32
  }
  func.func @transform_2(%arg0: i32, %arg1: i32) -> (i32, i32, i32, i32) {
    %c0_i32 = arith.constant 0 : i32
    %c0_i32_0 = arith.constant 0 : i32
    %c0_i32_1 = arith.constant 0 : i32
    return %arg0, %c0_i32, %arg1, %c0_i32_0 : i32, i32, i32, i32
  }
  func.func @transform_3(%arg0: i32, %arg1: i32) -> (i32, i32) {
    %c0_i32 = arith.constant 0 : i32
    %c0_i32_0 = arith.constant 0 : i32
    %c0_i32_1 = arith.constant 0 : i32
    return %c0_i32, %c0_i32_0 : i32, i32
  }
  func.func @transform_4(%arg0: i32, %arg1: i32) -> (i32, i32) {
    %c0_i32 = arith.constant 0 : i32
    %c0_i32_0 = arith.constant 0 : i32
    %c0_i32_1 = arith.constant 0 : i32
    return %c0_i32, %c0_i32_0 : i32, i32
  }
  func.func @transform_5(%arg0: i32, %arg1: i32) -> (i32, i32) {
    %c0_i32 = arith.constant 0 : i32
    %c0_i32_0 = arith.constant 0 : i32
    %c0_i32_1 = arith.constant 0 : i32
    return %c0_i32, %c0_i32_0 : i32, i32
  }
  func.func @transform_6(%arg0: i32, %arg1: i32) -> (i32, i32) {
    %c0_i32 = arith.constant 0 : i32
    %c0_i32_0 = arith.constant 0 : i32
    %c0_i32_1 = arith.constant 0 : i32
    return %c0_i32, %c0_i32_0 : i32, i32
  }
  func.func @transform_7(%arg0: i32, %arg1: i32) -> (i32, i32) {
    %c0_i32 = arith.constant 0 : i32
    %c0_i32_0 = arith.constant 0 : i32
    %c0_i32_1 = arith.constant 0 : i32
    return %c0_i32, %c0_i32_0 : i32, i32
  }
  func.func @transform_8(%arg0: i32, %arg1: i32) -> (i32, i32) {
    %c0_i32 = arith.constant 0 : i32
    %c0_i32_0 = arith.constant 0 : i32
    %c0_i32_1 = arith.constant 0 : i32
    return %c0_i32, %c0_i32_0 : i32, i32
  }
  func.func @transform_9(%arg0: i32, %arg1: i32) -> (i32, i32) {
    %c0_i32 = arith.constant 0 : i32
    %c0_i32_0 = arith.constant 0 : i32
    %c0_i32_1 = arith.constant 0 : i32
    return %c0_i32, %c0_i32_0 : i32, i32
  }
  func.func @transform_10(%arg0: i32, %arg1: i32) -> (i32, i32) {
    %c0_i32 = arith.constant 0 : i32
    %c0_i32_0 = arith.constant 0 : i32
    %c0_i32_1 = arith.constant 0 : i32
    return %c0_i32, %c0_i32_0 : i32, i32
  }
  func.func @transform_11(%arg0: i32, %arg1: i32) -> (i32, i32) {
    %c0_i32 = arith.constant 0 : i32
    %c0_i32_0 = arith.constant 0 : i32
    %c0_i32_1 = arith.constant 0 : i32
    return %c0_i32, %c0_i32_0 : i32, i32
  }
  func.func @transform_12(%arg0: i32, %arg1: i32) -> (i32, i32) {
    %c0_i32 = arith.constant 0 : i32
    %c0_i32_0 = arith.constant 0 : i32
    %c0_i32_1 = arith.constant 0 : i32
    return %c0_i32, %c0_i32_0 : i32, i32
  }
  func.func @transform_13(%arg0: i32, %arg1: i32) -> (i32, i32) {
    %c0_i32 = arith.constant 0 : i32
    %c0_i32_0 = arith.constant 0 : i32
    %c0_i32_1 = arith.constant 0 : i32
    return %c0_i32, %c0_i32_0 : i32, i32
  }
  func.func @transform_14(%arg0: i32, %arg1: i32) -> (i32, i32) {
    %c0_i32 = arith.constant 0 : i32
    %c0_i32_0 = arith.constant 0 : i32
    %c0_i32_1 = arith.constant 0 : i32
    return %c0_i32, %c0_i32_0 : i32, i32
  }
  func.func @transform_15(%arg0: i32, %arg1: i32) -> (i32, i32) {
    %c0_i32 = arith.constant 0 : i32
    %c0_i32_0 = arith.constant 0 : i32
    %c0_i32_1 = arith.constant 0 : i32
    return %c0_i32, %c0_i32_0 : i32, i32
  }
  func.func @transform_16(%arg0: i32, %arg1: i32) -> (i32, i32) {
    %c0_i32 = arith.constant 0 : i32
    %c0_i32_0 = arith.constant 0 : i32
    %c0_i32_1 = arith.constant 0 : i32
    return %c0_i32, %c0_i32_0 : i32, i32
  }
  func.func @transform_17(%arg0: i32, %arg1: i32) -> (i32, i32) {
    %c0_i32 = arith.constant 0 : i32
    %c0_i32_0 = arith.constant 0 : i32
    %c0_i32_1 = arith.constant 0 : i32
    return %c0_i32, %c0_i32_0 : i32, i32
  }
  func.func @transform_18(%arg0: i32, %arg1: i32) -> (i32, i32) {
    %c0_i32 = arith.constant 0 : i32
    %c0_i32_0 = arith.constant 0 : i32
    %c0_i32_1 = arith.constant 0 : i32
    return %c0_i32, %c0_i32_0 : i32, i32
  }
  func.func @transform_19(%arg0: i32, %arg1: i32) -> (i32, i32, i32) {
    %c0_i32 = arith.constant 0 : i32
    %c0_i32_0 = arith.constant 0 : i32
    return %arg0, %arg1, %c0_i32 : i32, i32, i32
  }
  func.func @transform_20(%arg0: i32, %arg1: i32) -> (i32, i32, i32, i32) {
    %c0_i32 = arith.constant 0 : i32
    %c0_i32_0 = arith.constant 0 : i32
    %c0_i32_1 = arith.constant 0 : i32
    return %arg0, %c0_i32, %arg1, %c0_i32_0 : i32, i32, i32, i32
  }
}

</mosaic_0001>

<bundles_post_ra>
// kernel: tpu_custom_call.1
= control target key start
LH: loop header
LB: loop body
LE: loop exit
PB: predicated region body
PF: predicated region fallthrough
CT: control target
= control target key end

     0   :  { %s3549_s0 = inlined_call_operand.vmem [shape: f32[2,8,32], index: 0, kind: input, shape index: {}]   ;;  %s3550_s1 = inlined_call_operand.hbm [shape: bf16[2,8,32], index: 1, kind: input, shape index: {}]   ;;  %s3551_s2 = inlined_call_operand.hbm [shape: bf16[2,1,8,8], index: 2, kind: input, shape index: {}]   ;;  %s3552_s3 = inlined_call_operand.vmem [shape: bf16[32,32], index: 3, kind: input, shape index: {}]   ;;  %s3553_s4 = inlined_call_operand.vmem [shape: f32[1,32], index: 4, kind: input, shape index: {}]   ;;  %s3554_s5 = inlined_call_operand.vmem [shape: bf16[32,32], index: 5, kind: input, shape index: {}]   ;;  %s3555_s6 = inlined_call_operand.hbm [shape: f32[1,32], index: 6, kind: input, shape index: {}]   ;;  %s3556_s7 = inlined_call_operand.hbm [shape: bf16[32,32], index: 7, kind: input, shape index: {}]   ;;  %s3557_s8 = inlined_call_operand.hbm [shape: f32[1,32], index: 8, kind: input, shape index: {}]   ;;  %s3558_s9 = inlined_call_operand.vmem [shape: bf16[32,32], index: 9, kind: input, shape index: {}]   ;;  %s3559_s10 = inlined_call_operand.hbm [shape: f32[1,32], index: 10, kind: input, shape index: {}]   ;;  %s3560_s11 = inlined_call_operand.hbm [shape: f32[1,32], index: 11, kind: input, shape index: {}]   ;;  %s3561_s12 = inlined_call_operand.hbm [shape: f32[1,32], index: 12, kind: input, shape index: {}]   ;;  %s3562_s13 = inlined_call_operand.vmem [shape: bf16[32,64], index: 13, kind: input, shape index: {}]   ;;  %s3563_s14 = inlined_call_operand.vmem [shape: f32[1,64], index: 14, kind: input, shape index: {}]   ;;  %s3564_s15 = inlined_call_operand.vmem [shape: bf16[64,32], index: 15, kind: input, shape index: {}]   ;;  %s3565_s16 = inlined_call_operand.vmem [shape: f32[1,32], index: 16, kind: input, shape index: {}]   ;;  %s3566_s17 = inlined_call_operand.vmem [shape: f32[1,32], index: 17, kind: input, shape index: {}]   ;;  %s3567_s18 = inlined_call_operand.vmem [shape: f32[1,32], index: 18, kind: input, shape index: {}]   ;;  %s3568_s19 = inlined_call_operand.hbm [shape: f32[2,8,32], index: 19, kind: output, shape index: {0}]   ;;  %s3569_s20 = inlined_call_operand.hbm [shape: bf16[2,4,8,8], index: 20, kind: output, shape index: {1}]  }
   0x1   :  { %3582 = sst [smem:[#allocation34_spill]] %s3549_s0 }
   0x2   :  { %3583 = sst [smem:[#allocation35_spill]] %s3550_s1 }
   0x3   :  { %3584 = sst [smem:[#allocation36_spill]] %s3551_s2 }
   0x4   :  { %3585 = sst [smem:[#allocation37_spill]] %s3552_s3 }
   0x5   :  { %3586 = sst [smem:[#allocation38_spill]] %s3553_s4 }
   0x6   :  { %3587 = sst [smem:[#allocation39_spill]] %s3555_s6 }
   0x7   :  { %3588 = sst [smem:[#allocation40_spill]] %s3556_s7 }
   0x8   :  { %3589 = sst [smem:[#allocation41_spill]] %s3557_s8 }
   0x9   :  { %3590 = sst [smem:[#allocation42_spill]] %s3559_s10 }
   0xa   :  { %3591 = sst [smem:[#allocation43_spill]] %s3560_s11 }
   0xb   :  { %3592 = sst [smem:[#allocation44_spill]] %s3561_s12 }
   0xc   :  { %3593 = sst [smem:[#allocation45_spill]] %s3563_s14 }
   0xd   :  { %3594 = sst [smem:[#allocation46_spill]] %s3564_s15 }
   0xe   :  { %3595 = sst [smem:[#allocation47_spill]] %s3565_s16 }
   0xf   :  { %3596 = sst [smem:[#allocation48_spill]] %s3566_s17 }
  0x10   :  { %3597 = sst [smem:[#allocation49_spill]] %s3567_s18 }
  0x11   :  { %3598 = sst [smem:[#allocation50_spill]] %s3568_s19 }
  0x12   :  { %3599 = sst [smem:[#allocation51_spill]] %s3569_s20 }
  0x13   :  { %26 = vsyncpa [#allocation7], 0 }
  0x14   :  { %28 = vsyncpa [#allocation7 + $0x1], 0 }
  0x15   :  { %29 = vsyncpa [#allocation10], 0 }
  0x16   :  { %31 = vsyncpa [#allocation10 + $0x1], 0 }
  0x17   :  { %32 = vsyncpa [#allocation13], 0 }
  0x18   :  { %33 = vsyncpa [#allocation16], 0 }
  0x19   :  { %34 = vsyncpa [#allocation19], 0 }
  0x1a   :  { %35 = vsyncpa [#allocation8], 0 }
  0x1b   :  { %37 = vsyncpa [#allocation8 + $0x1], 0 }
  0x1c   :  { %38 = vsyncpa [#allocation22], 0 }
  0x1d   :  { %40 = vsyncpa [#allocation22 + $0x1], 0  ;;  %s2966_s1 = smov 0   ;;  %s2968_s22 = smov 0  }
  0x1e   :  { %s2970_s23 = smov 0   ;;  %s2972_s24 = smov 0  }
  0x1f   :  { %s2974_s2 = smov 0   ;;  %s2976_s25 = smov 0  }
  0x20 LB: > { %3600 = sst [smem:[#allocation31_spill]] %s2833_s2  ;;  %s2997_s3 = sadd.s32 4294967295, %s2837_s25   ;;  %s2837_s25 = sphi %s2976_s25, %s46_s25   ;;  %s2833_s2 = sphi %s2974_s2, %s3645_s2   ;;  %s2829_s24 = sphi %s2972_s24, %s3644_s24   ;;  %s2825_s23 = sphi %s2970_s23, %s3648_s23   ;;  %s2821_s22 = sphi %s2968_s22, %s3647_s22   ;;  %s2817_s1 = sphi %s2966_s1, %s3646_s1  }
  0x21   : > { %p2078_p0 = scmp.ge.s32.totalorder %s2837_s25, 1  ;;  %p3575_p1 = scmp.eq.s32.totalorder %s2997_s3, 0 }
  0x22   : > { %p537_p2 = scmp.lt.s32.totalorder %s2837_s25, 3  ;;  %s2839_s27 = smov [#allocation11]  }
  0x23   : > { %s559_s28 = sshll.u32 %s2839_s27, 4  ;;  %s2840_s4 = smov [#allocation12]   ;;  %s560_s28 = int_to_ptr.vmem [resolvable:$true] %s559_s28 }
  0x24   : > { %p3002_p3 = pnand %p2078_p0, %p537_p2  ;;  %s569_s29 = sshll.u32 %s2840_s4, 4  ;;  %s3015_s29 = int_to_ptr.vmem [resolvable:$true] %s569_s29 }
  0x25   : > { %s2841_s0 = smov [#allocation15]   ;;  %s3603_s6 = sld [smem:[#allocation39_spill]] }
  0x26   : > { %s3601_s26 = scalar_select %p3002_p3, 1, 0 }
  0x27   : > { %p2328_p5 = pneg %p3002_p3  ;;  %s3017_s21 = sshll.u32 %s2841_s0, 4  ;;  %s598_s21 = int_to_ptr.vmem [resolvable:$true] %s3017_s21 }
  0x29   : > { %p3011_p6 = pnand %p2328_p5, %p3575_p1 }
  0x2b   : > { %s2475_s27 = scalar_lea.hbm %s3603_s6, 16  ;;  %p3027_p8 = pneg %p3011_p6 }
  0x2c   : > { %p2476_p7 = scmp.ne.s32.totalorder %s3603_s6, %s2475_s27  ;;  %p2482_p11 = scmp.lt.u32.totalorder %s2475_s27, %s3603_s6 }
  0x2e   : > { %p2478_p9 = pnand %p3027_p8, %p2476_p7 }
  0x30   : > { %p2479_p10 = pneg %p2478_p9 }
  0x32   : > { %p2484_p12 = pnand %p2482_p11, %p2479_p10 }
  0x34   : > { %2487 = shalt.err (!%p2484_p12)
}
  0x35   : > { %s2488_s18 = scalar_lea.vmem %s560_s28, 16  ;;  %s2495_s17 = scalar_lea.vmem %s560_s28, 32 }
  0x36   : > { %p2489_p13 = scmp.ne.s32.totalorder %s560_s28, %s2488_s18  ;;  %p2496_p5 = scmp.lt.s32.totalorder %s560_s28, %s560_s28 }
  0x37   : > { %p2497_p4 = scmp.lt.s32.totalorder %s2495_s17, %s2488_s18 }
  0x38   : > { %p2491_p0 = pnand %p2489_p13, %p3027_p8 }
  0x39   : > { %p2498_p1 = por %p2497_p4, %p2496_p5 }
  0x3a   : > { %p2492_p2 = pneg %p2491_p0 }
  0x3c   : > { %p2499_p3 = pnand %p2498_p1, %p2492_p2 }
  0x3e   : > { %2502 = shalt.err (!%p2499_p3)
}
  0x3f   : > { %2331 = dma.hbm_to_vmem [thread:$0]  (!%p3011_p6), %s3603_s6, 16, %s560_s28, [#allocation10]  }
  0x40   : > { %s3605_s7 = sld [smem:[#allocation40_spill]] }
  0x46   : > { %s2503_s0 = scalar_lea.hbm %s3605_s7, 256 }
  0x47   : > { %p2504_p7 = scmp.ne.s32.totalorder %s3605_s7, %s2503_s0  ;;  %p2510_p1 = scmp.lt.u32.totalorder %s2503_s0, %s3605_s7 }
  0x49   : > { %p2506_p9 = pnand %p2504_p7, %p3027_p8 }
  0x4b   : > { %p2507_p4 = pneg %p2506_p9 }
  0x4d   : > { %p2512_p3 = pnand %p2510_p1, %p2507_p4 }
  0x4f   : > { %2515 = shalt.err (!%p2512_p3)
}
  0x50   : > { %s2516_s28 = scalar_lea.vmem %s3015_s29, 256  ;;  %p2524_p13 = scmp.lt.s32.totalorder %s3015_s29, %s3015_s29 }
  0x51   : > { %p2517_p10 = scmp.ne.s32.totalorder %s3015_s29, %s2516_s28  ;;  %p2525_p0 = scmp.lt.s32.totalorder %s2516_s28, %s2516_s28 }
  0x53   : > { %p2519_p11 = pnand %p2517_p10, %p3027_p8  ;;  %p2526_p2 = por %p2525_p0, %p2524_p13 }
  0x55   : > { %p2520_p12 = pneg %p2519_p11 }
  0x57   : > { %p2527_p5 = pnand %p2526_p2, %p2520_p12 }
  0x59   : > { %2530 = shalt.err (!%p2527_p5)
}
  0x5a   : > { %s2842_s14 = smov 64   ;;  %s2843_s15 = smov 4  }
  0x5b   : > { %2334 = dma.hbm_to_vmem [thread:$0]  (!%p3011_p6), %s3605_s7, 256, %s3015_s29, [#allocation13], %s2842_s14, %s2842_s14, %s2843_s15  }
  0x5c   : > { %s3606_s10 = sld [smem:[#allocation42_spill]] }
  0x62   : > { %s2531_s0 = scalar_lea.hbm %s3606_s10, 16 }
  0x63   : > { %p2532_p7 = scmp.ne.s32.totalorder %s3606_s10, %s2531_s0  ;;  %p2538_p1 = scmp.lt.u32.totalorder %s2531_s0, %s3606_s10 }
  0x65   : > { %p2534_p9 = pnand %p2532_p7, %p3027_p8 }
  0x67   : > { %p2535_p4 = pneg %p2534_p9 }
  0x69   : > { %p2540_p3 = pnand %p2538_p1, %p2535_p4 }
  0x6b   : > { %2543 = shalt.err (!%p2540_p3)
}
  0x6c   : > { %s2544_s19 = scalar_lea.vmem %s598_s21, 16  ;;  %s2551_s29 = scalar_lea.vmem %s598_s21, 32 }
  0x6d   : > { %p2545_p10 = scmp.ne.s32.totalorder %s598_s21, %s2544_s19  ;;  %p2552_p13 = scmp.lt.s32.totalorder %s598_s21, %s598_s21 }
  0x6e   : > { %p2553_p0 = scmp.lt.s32.totalorder %s2551_s29, %s2544_s19 }
  0x6f   : > { %p2547_p11 = pnand %p2545_p10, %p3027_p8 }
  0x70   : > { %p2554_p2 = por %p2553_p0, %p2552_p13 }
  0x71   : > { %p2548_p12 = pneg %p2547_p11 }
  0x73   : > { %p2555_p5 = pnand %p2554_p2, %p2548_p12 }
  0x75   : > { %2558 = shalt.err (!%p2555_p5)
}
  0x76   : > { %2340 = dma.hbm_to_vmem [thread:$0]  (!%p3011_p6), %s3606_s10, 16, %s598_s21, [#allocation16]  }
  0x77   : > { %s2844_s6 = smov [#allocation14]   ;;  %s2845_s16 = smov [#allocation17]  }
  0x78   : > { %s583_s20 = sshll.u32 %s2844_s6, 4  ;;  %s608_s27 = sshll.u32 %s2845_s16, 4  ;;  %s584_s20 = int_to_ptr.vmem [resolvable:$true] %s583_s20  ;;  %s609_s27 = int_to_ptr.vmem [resolvable:$true] %s608_s27 }
  0x79   : > { %s3607_s8 = sld [smem:[#allocation41_spill]] }
  0x7f   : > { %s2559_s17 = scalar_lea.hbm %s3607_s8, 16 }
  0x80   : > { %p2560_p7 = scmp.ne.s32.totalorder %s3607_s8, %s2559_s17  ;;  %p2566_p1 = scmp.lt.u32.totalorder %s2559_s17, %s3607_s8 }
  0x82   : > { %p2562_p9 = pnand %p2560_p7, %p3027_p8 }
  0x84   : > { %p2563_p4 = pneg %p2562_p9 }
  0x86   : > { %p2568_p3 = pnand %p2566_p1, %p2563_p4 }
  0x88   : > { %2571 = shalt.err (!%p2568_p3)
}
  0x89   : > { %s2572_s21 = scalar_lea.vmem %s584_s20, 16  ;;  %s2579_s15 = scalar_lea.vmem %s584_s20, 32 }
  0x8a   : > { %p2573_p10 = scmp.ne.s32.totalorder %s584_s20, %s2572_s21  ;;  %p2580_p13 = scmp.lt.s32.totalorder %s584_s20, %s584_s20 }
  0x8b   : > { %p2581_p0 = scmp.lt.s32.totalorder %s2579_s15, %s2572_s21 }
  0x8c   : > { %p2575_p11 = pnand %p2573_p10, %p3027_p8 }
  0x8d   : > { %p2582_p2 = por %p2581_p0, %p2580_p13 }
  0x8e   : > { %p2576_p12 = pneg %p2575_p11 }
  0x90   : > { %p2583_p5 = pnand %p2582_p2, %p2576_p12 }
  0x92   : > { %2586 = shalt.err (!%p2583_p5)
}
  0x93   : > { %2337 = dma.hbm_to_vmem [thread:$0]  (!%p3011_p6), %s3607_s8, 16, %s584_s20, [#allocation13]  }
  0x94   : > { %s3608_s11 = sld [smem:[#allocation43_spill]] }
  0x9a   : > { %s2587_s17 = scalar_lea.hbm %s3608_s11, 16 }
  0x9b   : > { %p2588_p7 = scmp.ne.s32.totalorder %s3608_s11, %s2587_s17  ;;  %p2594_p1 = scmp.lt.u32.totalorder %s2587_s17, %s3608_s11 }
  0x9d   : > { %p2590_p9 = pnand %p2588_p7, %p3027_p8 }
  0x9f   : > { %p2591_p4 = pneg %p2590_p9 }
  0xa1   : > { %p2596_p3 = pnand %p2594_p1, %p2591_p4 }
  0xa3   : > { %2599 = shalt.err (!%p2596_p3)
}
  0xa4   : > { %s2600_s21 = scalar_lea.vmem %s609_s27, 16  ;;  %s2607_s20 = scalar_lea.vmem %s609_s27, 32 }
  0xa5   : > { %p2601_p10 = scmp.ne.s32.totalorder %s609_s27, %s2600_s21  ;;  %p2608_p13 = scmp.lt.s32.totalorder %s609_s27, %s609_s27 }
  0xa6   : > { %p2609_p0 = scmp.lt.s32.totalorder %s2607_s20, %s2600_s21 }
  0xa7   : > { %p2603_p11 = pnand %p2601_p10, %p3027_p8 }
  0xa8   : > { %p2610_p2 = por %p2609_p0, %p2608_p13 }
  0xa9   : > { %p2604_p12 = pneg %p2603_p11 }
  0xab   : > { %p2611_p5 = pnand %p2610_p2, %p2604_p12 }
  0xad   : > { %2614 = shalt.err (!%p2611_p5)
}
  0xae   : > { %2343 = dma.hbm_to_vmem [thread:$0]  (!%p3011_p6), %s3608_s11, 16, %s609_s27, [#allocation16]  }
  0xaf   : > { %s2846_s16 = smov [#allocation18]   ;;  %s3609_s12 = sld [smem:[#allocation44_spill]] }
  0xb0   : > { %s619_s0 = sshll.u32 %s2846_s16, 4  ;;  %s620_s0 = int_to_ptr.vmem [resolvable:$true] %s619_s0 }
  0xb5   : > { %s2615_s28 = scalar_lea.hbm %s3609_s12, 16 }
  0xb6   : > { %p2616_p7 = scmp.ne.s32.totalorder %s3609_s12, %s2615_s28  ;;  %p2622_p1 = scmp.lt.u32.totalorder %s2615_s28, %s3609_s12 }
  0xb8   : > { %p2618_p9 = pnand %p2616_p7, %p3027_p8 }
  0xba   : > { %p2619_p4 = pneg %p2618_p9 }
  0xbc   : > { %p2624_p3 = pnand %p2622_p1, %p2619_p4 }
  0xbe   : > { %2627 = shalt.err (!%p2624_p3)
}
  0xbf   : > { %s2628_s27 = scalar_lea.vmem %s620_s0, 16  ;;  %s2635_s20 = scalar_lea.vmem %s620_s0, 32 }
  0xc0   : > { %p2629_p10 = scmp.ne.s32.totalorder %s620_s0, %s2628_s27  ;;  %p2636_p13 = scmp.lt.s32.totalorder %s620_s0, %s620_s0 }
  0xc1   : > { %p2637_p0 = scmp.lt.s32.totalorder %s2635_s20, %s2628_s27 }
  0xc2   : > { %p2631_p11 = pnand %p2629_p10, %p3027_p8 }
  0xc3   : > { %p2638_p2 = por %p2637_p0, %p2636_p13 }
  0xc4   : > { %p2632_p12 = pneg %p2631_p11 }
  0xc6   : > { %p2639_p5 = pnand %p2638_p2, %p2632_p12 }
  0xc8   : > { %2642 = shalt.err (!%p2639_p5)
}
  0xc9   : > { %2346 = dma.hbm_to_vmem [thread:$0]  (!%p3011_p6), %s3609_s12, 16, %s620_s0, [#allocation19]  }
  0xca   : > { %s2077_s4 = sadd.s32 4294967294, %s2837_s25   ;;  %s58_s16 = sadd.s32 1, %s2833_s2 }
  0xcb   : > { %p60_p8 = scmp.ge.s32.totalorder %s58_s16, 2  ;;  %s93_s30 = sadd.s32 1, %s2825_s23 }
  0xcc   : > { %p100_p7 = scmp.ne.s32.totalorder %s2825_s23, %s2821_s22  ;;  %p101_p9 = scmp.eq.s32.totalorder %s2837_s25, 0 }
  0xcd   : > { %s3650_s16 = smov (%p60_p8, %s58_s16), 0  ;;  %p106_p1 = scmp.ne.s32.totalorder %s2821_s22, %s2817_s1 }
  0xce   : > { %3610 = sst [smem:[#allocation32_spill]] %s3650_s16  ;;  %p3147_p4 = por %p101_p9, %p100_p7 }
  0xcf   : > { %s90_s0 = ssub.s32 %s2833_s2, %s3650_s16  ;;  %p496_p6 = scmp.eq.s32.totalorder %s2997_s3, 1 }
  0xd0   : > { %p91_p3 = scmp.eq.s32.totalorder %s90_s0, 0  ;;  %p3612_p10 = scmp.eq.s32.totalorder %s2997_s3, 0 }
  0xd1   : > { %p3162_p12 = por %p496_p6, %p100_p7  ;;  %p502_p13 = scmp.eq.s32.totalorder %s2077_s4, 1 }
  0xd2   : > { %p3158_p11 = por %p3612_p10, %p106_p1  ;;  %p2367_p2 = scmp.lt.s32.totalorder %s2837_s25, 2 }
  0xd3   : > { %s3614_s28 = scalar_select %p3162_p12, 1, 0 }
  0xd4   : > { %s3613_s17 = scalar_select %p3158_p11, 1, 0 }
  0xd5   : > { %s3167_s19 = scalar_select %p91_p3, %s2825_s23, %s93_s30  }
  0xd6   : > { %p3169_p0 = por %p502_p13, %p106_p1  ;;  %s658_s14 = sand.u32 1, %s2825_s23  }
  0xd7   : > { %3615 = sst [smem:[#allocation33_spill]] %s3167_s19  ;;  %s2087_s21 = sshll.u32 %s2833_s2, 6 }
  0xd8   : > { %s3616_s29 = scalar_select %p3169_p0, 1, 0 }
  0xd9   : > { %s3176_s27 = sshll.u32 %s658_s14, 2  ;;  %s3617_s6 = sld [smem:[#allocation35_spill]] }
  0xda   : > { %s662_s4 = scalar_lea.vmem [#allocation6], %s3176_s27  ;;  %p3186_p5 = pnand %p2367_p2, %p3147_p4 }
  0xdb   : > { %s669_s30 = sshll.u32 %s662_s4, 4  ;;  %s3619_s15 = sld [smem:[#allocation36_spill]]  ;;  %s3190_s30 = int_to_ptr.vmem [resolvable:$true] %s669_s30 }
  0xdc   : > { %s659_s11 = scalar_lea.sflag [#allocation7], %s658_s14  ;;  %p2645_p7 = pneg %p3186_p5 }
  0xdf   : > { %s3181_s0 = scalar_lea.hbm %s3617_s6, %s2087_s21  ;;  %s2648_s16 = scalar_lea.hbm %s3617_s6, 128 }
  0xe0   : > { %s2643_s12 = scalar_lea.hbm %s3181_s0, 64  ;;  %p2649_p1 = scmp.lt.u32.totalorder %s3181_s0, %s3617_s6 }
  0xe1   : > { %s3195_s10 = scalar_lea.hbm %s3619_s15, %s2087_s21  ;;  %p2644_p8 = scmp.ne.s32.totalorder %s3181_s0, %s2643_s12 }
  0xe2   : > { %p2650_p6 = scmp.lt.u32.totalorder %s2648_s16, %s2643_s12  ;;  %p2652_p10 = scmp.lt.u32.totalorder %s2643_s12, %s3181_s0 }
  0xe3   : > { %p2646_p9 = pnand %p2645_p7, %p2644_p8 }
  0xe4   : > { %p2651_p3 = por %p2650_p6, %p2649_p1 }
  0xe5   : > { %p2647_p4 = pneg %p2646_p9 }
  0xe6   : > { %p2653_p13 = por %p2652_p10, %p2651_p3 }
  0xe8   : > { %p2654_p2 = pnand %p2653_p13, %p2647_p4 }
  0xea   : > { %2657 = shalt.err (!%p2654_p2)
}
  0xeb   : > { %s2658_s8 = scalar_lea.vmem %s3190_s30, 64  ;;  %s2847_s14 = smov [#allocation6]  }
  0xec   : > { %p2659_p8 = scmp.ne.s32.totalorder %s3190_s30, %s2658_s8  ;;  %s2663_s21 = sshll.u32 %s2847_s14, 4  ;;  %s2664_s21 = int_to_ptr.vmem [resolvable:$false] %s2663_s21 }
  0xed   : > { %s2665_s2 = scalar_lea.vmem %s2664_s21, 128  ;;  %p2666_p12 = scmp.lt.s32.totalorder %s3190_s30, %s2664_s21 }
  0xee   : > { %p2661_p9 = pnand %p2659_p8, %p2645_p7  ;;  %p2667_p1 = scmp.lt.s32.totalorder %s2665_s2, %s2658_s8 }
  0xf0   : > { %p2662_p0 = pneg %p2661_p9  ;;  %p2668_p6 = por %p2667_p1, %p2666_p12 }
  0xf2   : > { %p2669_p3 = pnand %p2668_p6, %p2662_p0 }
  0xf4   : > { %2672 = shalt.err (!%p2669_p3)
}
  0xf5   : > { %2350 = dma.hbm_to_vmem [thread:$0]  (!%p3186_p5), %s3181_s0, 64, %s3190_s30, %s659_s11  }
  0xf6   : > { %s676_s12 = sand.u32 1, %s2837_s25   ;;  %s680_s16 = scalar_lea.vmem [#allocation9], %s3176_s27 }
  0xf7   : > { %s688_s19 = sshll.u32 %s680_s16, 4  ;;  %s677_s20 = scalar_lea.sflag [#allocation10], %s676_s12  ;;  %s689_s19 = int_to_ptr.vmem [resolvable:$true] %s688_s19 }
  0xf8   : > { %s2673_s18 = scalar_lea.hbm %s3195_s10, 64  ;;  %s2678_s14 = scalar_lea.hbm %s3619_s15, 128 }
  0xf9   : > { %p2674_p12 = scmp.ne.s32.totalorder %s3195_s10, %s2673_s18  ;;  %p2679_p10 = scmp.lt.u32.totalorder %s3195_s10, %s3619_s15 }
  0xfa   : > { %p2680_p13 = scmp.lt.u32.totalorder %s2678_s14, %s2673_s18  ;;  %p2682_p8 = scmp.lt.u32.totalorder %s2673_s18, %s3195_s10 }
  0xfb   : > { %p2676_p0 = pnand %p2674_p12, %p2645_p7 }
  0xfc   : > { %p2681_p2 = por %p2680_p13, %p2679_p10 }
  0xfd   : > { %p2677_p4 = pneg %p2676_p0 }
  0xfe   : > { %p2683_p9 = por %p2682_p8, %p2681_p2 }
 0x100   : > { %p2684_p1 = pnand %p2683_p9, %p2677_p4 }
 0x102   : > { %2687 = shalt.err (!%p2684_p1)
}
 0x103   : > { %s2688_s11 = scalar_lea.vmem %s689_s19, 64  ;;  %s2848_s27 = smov [#allocation9]  }
 0x104   : > { %p2689_p6 = scmp.ne.s32.totalorder %s689_s19, %s2688_s11  ;;  %s2693_s0 = sshll.u32 %s2848_s27, 4  ;;  %s2694_s0 = int_to_ptr.vmem [resolvable:$false] %s2693_s0 }
 0x105   : > { %s2695_s30 = scalar_lea.vmem %s2694_s0, 128  ;;  %p2696_p0 = scmp.lt.s32.totalorder %s689_s19, %s2694_s0 }
 0x106   : > { %p2691_p3 = pnand %p2689_p6, %p2645_p7  ;;  %p2697_p11 = scmp.lt.s32.totalorder %s2695_s30, %s2688_s11 }
 0x108   : > { %p2692_p12 = pneg %p2691_p3  ;;  %p2698_p10 = por %p2697_p11, %p2696_p0 }
 0x10a   : > { %p2699_p13 = pnand %p2698_p10, %p2692_p12 }
 0x10c   : > { %2702 = shalt.err (!%p2699_p13)
}
 0x10d   : > { %2353 = dma.hbm_to_vmem [thread:$0]  (!%p3186_p5), %s3195_s10, 64, %s689_s19, %s677_s20  }
 0x10e   : > { %p3620_p4 = scmp.ne.s32.totalorder %s3601_s26, 0 }
 0x10f   : > { %s3246_s12 = sand.u32 (!%p3620_p4), 1, %s2821_s22   ;;  %p3621_p7 = scmp.ne.s32.totalorder (!%p3620_p4), %s3613_s17, 0 }
 0x110   : > { %697 = sbr.rel (%p3620_p4) target bundleno = 2823 (0xb07), region = 96  ;;  %s2091_s16 = sshll.u32 (!%p3620_p4), %s3246_s12, 2 }
 0x111   : > { %s700_s18 = scalar_lea.sflag (!%p3620_p4), [#allocation7], %s3246_s12  ;;  %s703_s4 = scalar_lea.vmem (!%p3620_p4), [#allocation6], %s2091_s16 }
 0x117   : > { %2784 = dma.done.wait (%p3621_p7), %s700_s18, 64  }
 0x118   : > { %2786 = vsyncadd (%p3621_p7), %s700_s18, 4294967232  ;;  %s708_s7 = sand.u32 1, %s2997_s3   ;;  %s3255_s26 = scalar_lea.vmem [#allocation9], %s2091_s16 }
 0x119   : > { %s709_s10 = scalar_lea.sflag [#allocation10], %s708_s7 }
 0x11a   : > { %2788 = dma.done.wait (%p3621_p7), %s709_s10, 64  }
 0x11b   : > { %2790 = vsyncadd (%p3621_p7), %s709_s10, 4294967232  ;;  %p3622_p11 = scmp.eq.s32.totalorder %s2997_s3, 0 }
 0x11d   : > { %2792 = dma.done.wait (%p3622_p11), [#allocation10], 16   ;;  %p3623_p5 = pmov %p3622_p11 }
 0x11f   : > { %2794 = vsyncadd (%p3623_p5), [#allocation10], 4294967280  ;;  %p3624_p2 = pmov %p3623_p5 }
 0x121   : > { %2796 = dma.done.wait (%p3624_p2), [#allocation13], 272   ;;  %p3625_p8 = pmov %p3624_p2 }
 0x122   : > { %p3626_p9 = pmov %p3624_p2 }
 0x123   : > { %2798 = vsyncadd (%p3625_p8), [#allocation13], 4294967024 }
 0x124   : > { %2800 = dma.done.wait (%p3626_p9), [#allocation16], 32   ;;  %p3627_p1 = pmov %p3624_p2 }
 0x126   : > { %2802 = vsyncadd (%p3627_p1), [#allocation16], 4294967264  ;;  %p3628_p6 = pmov %p3627_p1 }
 0x127   : > { %p3629_p3 = pmov %p3627_p1 }
 0x128   : > { %2804 = dma.done.wait (%p3628_p6), [#allocation19], 16  }
 0x129   : > { %2806 = vsyncadd (%p3629_p3), [#allocation19], 4294967280  ;;  %v2849_v0 = vmov 0.0   ;;  %vm2850_vm0 = vmmov 0   ;;  %p810_p12 = scmp.lt.s32.totalorder %s2829_s24, 1  ;;  %v2441_v1 = vld [vmem:[%s3554_s5] sm:$0xff]  }
 0x12a   : > { %2196 = vmatprep.subr.bf16.mxu0 %v2849_v0  ;;  %2200 = vmatprep.mubr.msk.bf16.mxu0 %vm2850_vm0, %v2849_v0  ;;  %v2442_v2 = vld [vmem:[%s3554_s5 + $0x8] sm:$0xff]   ;;  %v822_v3 = vld [vmem:[%s703_s4] sm:$0xf]  ;;  %vm846_vm1 = vcmask 261120   ;;  %s3630_s11 = sld [smem:[#allocation37_spill]]  ;;  %s3631_s30 = sld [smem:[#allocation34_spill]] }
 0x12b   : > { %2204 = vmatprep.subr.bf16.mxu1 %v2849_v0  ;;  %2208 = vmatprep.mubr.msk.bf16.mxu1 %vm2850_vm0, %v2849_v0  ;;  %s811_s17 = scalar_select %p810_p12, %s2829_s24, 1  ;;  %v2445_v8 = vld [vmem:[#allocation12] sm:$0xff]   ;;  %v2446_v9 = vld [vmem:[#allocation12 + $0x8] sm:$0xff]   ;;  %v2102_v10 = vld [vmem:[#allocation11] ss:$0 sm:$0xff]  ;;  %vm954_vm2 = vcmask 60416  }
 0x12c   : > { %2197 = vmatpush3.bf16.msra.mxu0 %v2441_v1  ;;  %2205 = vmatpush3.bf16.msra.mxu1 %v2445_v8  ;;  %s2851_s4 = smov 104   ;;  %s2852_s10 = smov 120   ;;  %vm1098_vm3 = vcmask 64512   ;;  %v2106_v27 = vld [vmem:[#allocation14] ss:$0 sm:$0xff]  ;;  %vm1338_vm4 = vcmask 1043456  }
 0x12d   : > { %s2101_s14 = sshll.u32 %s811_s17, 3  ;;  %2198 = vmatprep.subr.bf16.mxu0 %v2849_v0  ;;  %2206 = vmatprep.subr.bf16.mxu1 %v2849_v0  ;;  %s3632_s20 = sld [smem:[#allocation38_spill]]  ;;  %v1096_v51 = vld [vmem:[%s3255_s26] sm:$0xf]  ;;  %vm1529_vm5 = vcmask 126016   ;;  %vm1538_vm6 = vcmask 191616  }
 0x12e   : > { %s2853_s3 = smov 112   ;;  %v1097_v52 = vunpack.c.l.bf16 %v1096_v51  ;;  %s2100_s26 = sshll.u32 %s3246_s12, 4  ;;  %vm1547_vm7 = vcmask 257216   ;;  %vm1755_vm8 = vcmask 523264  }
 0x12f   : > { %s3381_s8 = scalar_lea.vmem [#allocation21], %s2100_s26  ;;  %s2854_s0 = smov 8  }
 0x130   : > { %v2443_v4 = vld [vmem:[%s3630_s11] sm:$0xff]   ;;  %s816_s16 = scalar_lea.vmem %s3631_s30, %s2101_s14  ;;  %2199 = vmatpush3.bf16.msra.mxu0 %v2442_v2  ;;  %v2444_v5 = vld [vmem:[%s3630_s11 + $0x8] sm:$0xff]   ;;  %2207 = vmatpush3.bf16.msra.mxu1 %v2446_v9  ;;  %s2855_s30 = smov 24  }
 0x131   : > { %2212 = vmatprep.subr.bf16.mxu0 %v2849_v0  ;;  %v3302_v6 = vld [vmem:[%s816_s16] sm:$0xff]  ;;  %2220 = vmatprep.subr.bf16.mxu1 %v2849_v0  ;;  %s2856_s16 = smov 16   ;;  %s1864_s17 = sshll.u32 %s3381_s8, 4  ;;  %s3462_s17 = int_to_ptr.vmem [resolvable:$true] %s1864_s17 }
 0x132   : > { %v995_v7 = vpack.c.bf16 %v3302_v6, %v3302_v6  ;;  %s3636_s26 = sld [smem:[#allocation51_spill]]  ;;  %s1836_s21 = scalar_lea.sflag [#allocation22], %s3246_s12 }
 0x133   : > { %2201 = vmatmul.mubr.msk.bf16.vlgmr.msra.gmra.mrb[0].mxu0 %vm846_vm1, %v822_v3  ;;  %2209 = vmatmul.mubr.msk.bf16.vlgmr.msra.gmra.mrb[0].mxu1 %vm846_vm1, %v822_v3  ;;  %v2112_v17 = vld [vmem:[%s3632_s20] ss:$0 sm:$0xff]  ;;  %s3633_s20 = sld [smem:[#allocation46_spill]]  ;;  %s2703_s2 = scalar_lea.vmem %s3462_s17, 256 }
 0x134   : > { %2213 = vmatpush3.bf16.msra.mxu0 %v2443_v4  ;;  %2216 = vmatprep.mubr.msk.bf16.mxu0 %vm2850_vm0, %v2849_v0  ;;  %p2704_p0 = scmp.ne.s32.totalorder %s3462_s17, %s2703_s2  ;;  %p3637_p10 = scmp.ne.s32.totalorder %s3614_s28, 0 }
 0x135   : > { %2214 = vmatprep.subr.bf16.mxu0 %v2849_v0  ;;  %2222 = vmatprep.mubr.msk.bf16.mxu1 %vm2850_vm0, %v2849_v0  ;;  %s2857_s27 = smov [#allocation21]  }
 0x136   : > { %p2705_p13 = pnand %p2704_p0, %p3637_p10 }
 0x138   : > { %2215 = vmatpush3.bf16.msra.mxu0 %v2444_v5  ;;  %p2706_p4 = pneg %p2705_p13 }
 0x139   : > { %2226 = vmatprep.subr.bf16.mxu0 %v2849_v0 }
 0x13b   : > { %2217 = vmatmul.mubr.msk.bf16.vlgmr.msra.gmra.mrb[4].mxu0 %vm846_vm1, %v995_v7 }
 0x13c   : > { %2228 = vmatprep.mubr.msk.bf16.mxu0 %vm2850_vm0, %v2849_v0 }
 0x206   : > { %v884_v11 = vpop.f32.mrb[0].mxu0  ;;  %v947_v28 = vpop.f32.mrb[0].mxu1 }
 0x207   : > { %v885_v12 = vadd.f32 %v2102_v10, %v884_v11  ;;  %v2202_v13 = vpop.f32.mrb[1].mxu0  ;;  %v948_v29 = vadd.f32 %v2106_v27, %v947_v28  ;;  %v2210_v30 = vpop.f32.mrb[1].mxu1 }
 0x208   : > { %v887_v14 = vpop.f32.mrb[2].mxu0  ;;  %v950_v31 = vpop.f32.mrb[2].mxu1 }
 0x209   : > { %v953_v15 = vpack.c.bf16 %v885_v12, %v885_v12  ;;  %v2203_v16 = vpop.f32.mrb[3].mxu0  ;;  %v3335_v32 = vpack.c.bf16 %v948_v29, %v948_v29  ;;  %v2211_v33 = vpop.f32.mrb[3].mxu1 }
 0x20b   : > { %955 = vst.msk [vmem:[#allocation2] sm:$0xf] %vm954_vm2, %v953_v15  ;;  %984 = vrot.lane.b32.xlu1 %v953_v15, %s2851_s4  ;;  %961 = vrot.lane.b32.xlu0 %v953_v15, %s2852_s10  ;;  %957 = vst.msk [vmem:[#allocation3] sm:$0xf] %vm954_vm2, %v3335_v32 }
 0x20e   : > { %v1057_v18 = vpop.f32.mrb[4].mxu0 }
 0x20f   : > { %v1058_v19 = vadd.f32 %v2112_v17, %v1057_v18  ;;  %974 = vrot.lane.b32.xlu0 %v953_v15, %s2853_s3  ;;  %v2218_v20 = vpop.f32.mrb[5].mxu0 }
 0x210   : > { %v1060_v21 = vpop.f32.mrb[6].mxu0 }
 0x211   : > { %v1063_v22 = vpack.c.bf16 %v1058_v19, %v1058_v19  ;;  %v2219_v23 = vpop.f32.mrb[7].mxu0 }
 0x212   : > { %v1088_v24 = vld [vmem:[#allocation2] sm:$0xf]  ;;  %v1092_v49 = vld [vmem:[#allocation3] sm:$0xf] }
 0x213   : > { %1065 = vst.msk [vmem:[#allocation4] sm:$0xf] %vm954_vm2, %v1063_v22  ;;  %1074 = vrot.lane.b32.xlu0 %v1063_v22, %s2853_s3  ;;  %1069 = vrot.lane.b32.xlu1 %v1063_v22, %s2852_s10  ;;  %v1103_v25 = vsel %vm1098_vm3, %v1088_v24, 0  ;;  %v1340_v50 = vsel %vm1338_vm4, %v1092_v49, 0 }
 0x214   : > { %2221 = vmatpush3.bf16.xpose.msra.mxu1 %v1103_v25 }
 0x215   : > { %2232 = vmatprep.subr.bf16.mxu1 %v2849_v0 }
 0x217   : > { %1079 = vrot.lane.b32.xlu1 %v1063_v22, %s2851_s4 }
 0x21a   : > { %v1084_v26 = vld [vmem:[#allocation4] sm:$0xf] }
 0x21b   : > { %2223 = vmatmul.mubr.msk.bf16.vlgmr.msra.gmra.mrb[4].mxu1 %vm1098_vm3, %v1084_v26 }
 0x21c   : > { %2234 = vmatprep.mubr.msk.bf16.mxu1 %vm2850_vm0, %v2849_v0 }
 0x27d   : > { %v985_v34 = vpop.permute.xlu1 %984  ;;  %v962_v35 = vpop.permute.xlu0 %961 }
 0x27e   : > { %988 = vst.msk [vmem:[#allocation2 + $0xc] sm:$0xf] %vm954_vm2, %v985_v34  ;;  %965 = vst.msk [vmem:[#allocation2 + $0x4] sm:$0xf] %vm954_vm2, %v962_v35 }
 0x281   : > { %v975_v36 = vpop.permute.xlu0 %974 }
 0x282   : > { %978 = vst.msk [vmem:[#allocation2 + $0x8] sm:$0xf] %vm954_vm2, %v975_v36 }
 0x285   : > { %v1075_v37 = vpop.permute.xlu0 %1074  ;;  %v1070_v38 = vpop.permute.xlu1 %1069  ;;  %v1089_v39 = vld [vmem:[#allocation2 + $0x4] sm:$0xf]  ;;  %v1091_v44 = vld [vmem:[#allocation2 + $0xc] sm:$0xf] }
 0x286   : > { %1078 = vst.msk [vmem:[#allocation4 + $0x8] sm:$0xf] %vm954_vm2, %v1075_v37  ;;  %1073 = vst.msk [vmem:[#allocation4 + $0x4] sm:$0xf] %vm954_vm2, %v1070_v38  ;;  %v1149_v40 = vsel %vm1098_vm3, %v1089_v39, 0  ;;  %v1241_v46 = vsel %vm1098_vm3, %v1091_v44, 0 }
 0x287   : > { %2227 = vmatpush3.bf16.xpose.msra.mxu0 %v1149_v40 }
 0x288   : > { %2238 = vmatprep.subr.bf16.mxu0 %v2849_v0 }
 0x289   : > { %v1080_v41 = vpop.permute.xlu1 %1079  ;;  %v1090_v42 = vld [vmem:[#allocation2 + $0x8] sm:$0xf] }
 0x28a   : > { %1083 = vst.msk [vmem:[#allocation4 + $0xc] sm:$0xf] %vm954_vm2, %v1080_v41  ;;  %v1195_v43 = vsel %vm1098_vm3, %v1090_v42, 0 }
 0x28b   : > { %2233 = vmatpush3.bf16.xpose.msra.mxu1 %v1195_v43 }
 0x28c   : > { %2244 = vmatprep.subr.bf16.mxu1 %v2849_v0 }
 0x28d   : > { %v1085_v45 = vld [vmem:[#allocation4 + $0x4] sm:$0xf]  ;;  %v1086_v47 = vld [vmem:[#allocation4 + $0x8] sm:$0xf] }
 0x28e   : > { %2229 = vmatmul.mubr.msk.bf16.vlgmr.msra.gmra.mrb[8].mxu0 %vm1098_vm3, %v1085_v45 }
 0x28f   : > { %2239 = vmatpush3.bf16.xpose.msra.mxu0 %v1241_v46  ;;  %2240 = vmatprep.mubr.msk.bf16.mxu0 %vm2850_vm0, %v2849_v0 }
 0x290   : > { %2250 = vmatprep.subr.bf16.mxu0 %v2849_v0 }
 0x291   : > { %v1087_v48 = vld [vmem:[#allocation4 + $0xc] sm:$0xf] }
 0x292   : > { %2235 = vmatmul.mubr.msk.bf16.vlgmr.msra.gmra.mrb[8].mxu1 %vm1098_vm3, %v1086_v47 }
 0x293   : > { %2246 = vmatprep.mubr.msk.bf16.mxu1 %vm2850_vm0, %v2849_v0  ;;  %2245 = vmatpush3.bf16.msra.mxu1 %v1340_v50 }
 0x294   : > { %2256 = vmatprep.subr.bf16.mxu1 %v2849_v0 }
 0x296   : > { %2241 = vmatmul.mubr.msk.bf16.vlgmr.msra.gmra.mrb[12].mxu0 %vm1098_vm3, %v1087_v48 }
 0x297   : > { %2252 = vmatprep.mubr.msk.bf16.mxu0 %vm2850_vm0, %v2849_v0 }
 0x2ee   : > { %v1139_v53 = vpop.f32.mrb[4].mxu1 }
 0x2ef   : > { %v1140_v54 = vadd.f32 %v1139_v53, %v1097_v52  ;;  %v2224_v55 = vpop.f32.mrb[5].mxu1 }
 0x2f0   : > { %v1142_v56 = vpop.f32.mrb[6].mxu1 }
 0x2f1   : > { %v2225_v57 = vpop.f32.mrb[7].mxu1  ;;  %v1283_v58 = vsel %vm1098_vm3, %v1140_v54, -inf }
 0x2f2   : > { %1284 = vmax.xlane.f32.xlu0 %v1283_v58 }
 0x361   : > { %v1185_v59 = vpop.f32.mrb[8].mxu0 }
 0x362   : > { %v1186_v60 = vadd.f32 %v1185_v59, %v1097_v52  ;;  %v2230_v61 = vpop.f32.mrb[9].mxu0 }
 0x363   : > { %v1188_v62 = vpop.f32.mrb[10].mxu0 }
 0x364   : > { %v2231_v63 = vpop.f32.mrb[11].mxu0  ;;  %v1286_v1 = vsel %vm1098_vm3, %v1186_v60, -inf }
 0x365   : > { %v1231_v2 = vpop.f32.mrb[8].mxu1  ;;  %1287 = vmax.xlane.f32.xlu1 %v1286_v1 }
 0x366   : > { %v1232_v3 = vadd.f32 %v1231_v2, %v1097_v52  ;;  %v2236_v4 = vpop.f32.mrb[9].mxu1  ;;  %v2447_v2 = vld [vmem:[%s3558_s9] sm:$0xff]  }
 0x367   : > { %v1234_v5 = vpop.f32.mrb[10].mxu1 }
 0x368   : > { %v2237_v7 = vpop.f32.mrb[11].mxu1  ;;  %v1289_v8 = vsel %vm1098_vm3, %v1232_v3, -inf }
 0x369   : > { %1290 = vmax.xlane.f32.xlu0 %v1289_v8  ;;  %v1277_v9 = vpop.f32.mrb[12].mxu0  ;;  %v2448_v7 = vld [vmem:[%s3558_s9 + $0x8] sm:$0xff]  }
 0x36a   : > { %v1278_v10 = vadd.f32 %v1277_v9, %v1097_v52  ;;  %v2242_v11 = vpop.f32.mrb[13].mxu0 }
 0x36b   : > { %v1280_v12 = vpop.f32.mrb[14].mxu0 }
 0x36c   : > { %v2243_v13 = vpop.f32.mrb[15].mxu0  ;;  %v1292_v14 = vsel %vm1098_vm3, %v1278_v10, -inf }
 0x36d   : > { %1293 = vmax.xlane.f32.xlu0 %v1292_v14 }
 0x376   : > { %969 = vrot.lane.b32.xlu1 %v3335_v32, %s2852_s10  ;;  %s2159_s10 = sshll.u32 %s2829_s24, 8 }
 0x377   : > { %s3460_s14 = scalar_lea.hbm %s3636_s26, %s2159_s10 }
 0x37f   : > { %v1285_v15 = vpop.xlane.xlu0 %1284 }
 0x380   : > { %v1295_v16 = vsub.f32 %v1140_v54, %v1285_v15 }
 0x382   : > { %v1299_v17 = vmul.f32 1.442695, %v1295_v16 }
 0x384   : > { %2455 = vpow2.f32 %v1299_v17 }
 0x38e   : > { %v2456_v18 = vpop.eup %2455 }
 0x38f   : > { %v1307_v19 = vsel %vm1098_vm3, %v2456_v18, 0.0 }
 0x39a   : > { %1308 = vadd.xlane.f32.xlu1 %v1307_v19 }
 0x3f2   : > { %v1288_v20 = vpop.xlane.xlu1 %1287 }
 0x3f3   : > { %v1296_v21 = vsub.f32 %v1186_v60, %v1288_v20 }
 0x3f5   : > { %v1301_v22 = vmul.f32 1.442695, %v1296_v21 }
 0x3f6   : > { %v1291_v23 = vpop.xlane.xlu0 %1290  ;;  %v970_v24 = vpop.permute.xlu1 %969 }
 0x3f7   : > { %2457 = vpow2.f32 %v1301_v22  ;;  %v1297_v25 = vsub.f32 %v1232_v3, %v1291_v23  ;;  %973 = vst.msk [vmem:[#allocation3 + $0x4] sm:$0xf] %vm954_vm2, %v970_v24  ;;  %v2128_v24 = vld [vmem:[#allocation15] ss:$0 sm:$0xff] }
 0x3f9   : > { %v1303_v26 = vmul.f32 1.442695, %v1297_v25 }
 0x3fa   : > { %v1294_v27 = vpop.xlane.xlu0 %1293 }
 0x3fb   : > { %2459 = vpow2.f32 %v1303_v26  ;;  %v1298_v28 = vsub.f32 %v1278_v10, %v1294_v27 }
 0x3fd   : > { %v1305_v29 = vmul.f32 1.442695, %v1298_v28 }
 0x3fe   : > { %v1093_v30 = vld [vmem:[#allocation3 + $0x4] sm:$0xf] }
 0x3ff   : > { %2461 = vpow2.f32 %v1305_v29  ;;  %v1386_v31 = vsel %vm1338_vm4, %v1093_v30, 0 }
 0x400   : > { %2251 = vmatpush3.bf16.msra.mxu0 %v1386_v31 }
 0x401   : > { %v2458_v33 = vpop.eup %2457  ;;  %2262 = vmatprep.subr.bf16.mxu0 %v2849_v0 }
 0x402   : > { %v1310_v34 = vsel %vm1098_vm3, %v2458_v33, 0.0 }
 0x403   : > { %1311 = vadd.xlane.f32.xlu0 %v1310_v34 }
 0x405   : > { %v2460_v35 = vpop.eup %2459 }
 0x406   : > { %v1313_v36 = vsel %vm1098_vm3, %v2460_v35, 0.0 }
 0x407   : > { %1314 = vadd.xlane.f32.xlu1 %v1313_v36 }
 0x409   : > { %v2462_v37 = vpop.eup %2461 }
 0x40a   : > { %v1316_v38 = vsel %vm1098_vm3, %v2462_v37, 0.0 }
 0x40b   : > { %1317 = vadd.xlane.f32.xlu0 %v1316_v38  ;;  %v2449_v38 = vld [vmem:[%s3562_s13] sm:$0xff]  }
 0x418   : > { %989 = vrot.lane.b32.xlu1 %v3335_v32, %s2851_s4  ;;  %s3635_s4 = sld [smem:[#allocation47_spill]] }
 0x421   : > { %979 = vrot.lane.b32.xlu0 %v3335_v32, %s2853_s3 }
 0x427   : > { %v1309_v39 = vpop.xlane.xlu1 %1308 }
 0x428   : > { %2463 = vrcp.f32 %v1309_v39  ;;  %v2451_v39 = vld [vmem:[%s3633_s20] sm:$0xff]  }
 0x432   : > { %v2464_v40 = vpop.eup %2463 }
 0x433   : > { %v1323_v41 = vmul.f32 %v2464_v40, %v2456_v18  ;;  %v2452_v40 = vld [vmem:[%s3633_s20 + $0x8] sm:$0xff]  }
 0x435   : > { %v1327_v42 = vpack.c.bf16 %v1323_v41, %v1323_v41 }
 0x437   : > { %1331 = vst.msk [vmem:[%s3381_s8] sm:$0xf] %vm954_vm2, %v1327_v42  ;;  %2247 = vmatmul.mubr.msk.bf16.vlgmr.msra.gmra.mrb[12].mxu1 %vm1098_vm3, %v1327_v42 }
 0x438   : > { %2258 = vmatprep.mubr.msk.bf16.mxu1 %vm2850_vm0, %v2849_v0 }
 0x490   : > { %v1312_v43 = vpop.xlane.xlu0 %1311 }
 0x491   : > { %2465 = vrcp.f32 %v1312_v43 }
 0x494   : > { %v1315_v32 = vpop.xlane.xlu1 %1314 }
 0x495   : > { %2467 = vrcp.f32 %v1315_v32 }
 0x498   : > { %v990_v44 = vpop.permute.xlu1 %989  ;;  %v1318_v45 = vpop.xlane.xlu0 %1317 }
 0x499   : > { %993 = vst.msk [vmem:[#allocation3 + $0xc] sm:$0xf] %vm954_vm2, %v990_v44  ;;  %2469 = vrcp.f32 %v1318_v45  ;;  %v2132_v44 = vld [vmem:[#allocation17] ss:$0 sm:$0xff] }
 0x49b   : > { %v2466_v46 = vpop.eup %2465 }
 0x49c   : > { %v1324_v47 = vmul.f32 %v2466_v46, %v2458_v33  ;;  %v980_v48 = vpop.permute.xlu0 %979  ;;  %v2133_v46 = vld [vmem:[#allocation18] ss:$0 sm:$0xff] }
 0x49d   : > { %983 = vst.msk [vmem:[#allocation3 + $0x8] sm:$0xf] %vm954_vm2, %v980_v48 }
 0x49e   : > { %v1328_v49 = vpack.c.bf16 %v1324_v47, %v1324_v47 }
 0x49f   : > { %v2468_v50 = vpop.eup %2467 }
 0x4a0   : > { %v1325_v51 = vmul.f32 %v2468_v50, %v2460_v35  ;;  %1332 = vst.msk [vmem:[%s3381_s8 + $0x4] sm:$0xf] %vm954_vm2, %v1328_v49  ;;  %2253 = vmatmul.mubr.msk.bf16.vlgmr.msra.gmra.mrb[16].mxu0 %vm1098_vm3, %v1328_v49  ;;  %v1095_v52 = vld [vmem:[#allocation3 + $0xc] sm:$0xf]  ;;  %v2453_v50 = vld [vmem:[%s3633_s20 + $0x10] sm:$0xff]  }
 0x4a1   : > { %v1478_v53 = vsel %vm1338_vm4, %v1095_v52, 0  ;;  %2264 = vmatprep.mubr.msk.bf16.mxu0 %vm2850_vm0, %v2849_v0 }
 0x4a2   : > { %2263 = vmatpush3.bf16.msra.mxu0 %v1478_v53  ;;  %v1329_v54 = vpack.c.bf16 %v1325_v51, %v1325_v51  ;;  %v2454_v51 = vld [vmem:[%s3633_s20 + $0x18] sm:$0xff]  }
 0x4a3   : > { %v2470_v55 = vpop.eup %2469  ;;  %2276 = vmatprep.subr.bf16.mxu0 %v2849_v0 }
 0x4a4   : > { %v1326_v56 = vmul.f32 %v2470_v55, %v2462_v37  ;;  %v1094_v57 = vld [vmem:[#allocation3 + $0x8] sm:$0xf]  ;;  %1333 = vst.msk [vmem:[%s3381_s8 + $0x8] sm:$0xf] %vm954_vm2, %v1329_v54 }
 0x4a5   : > { %v1432_v58 = vsel %vm1338_vm4, %v1094_v57, 0 }
 0x4a6   : > { %2257 = vmatpush3.bf16.msra.mxu1 %v1432_v58  ;;  %v1330_v59 = vpack.c.bf16 %v1326_v56, %v1326_v56 }
 0x4a7   : > { %2268 = vmatprep.subr.bf16.mxu1 %v2849_v0 }
 0x4a8   : > { %1334 = vst.msk [vmem:[%s3381_s8 + $0xc] sm:$0xf] %vm954_vm2, %v1330_v59  ;;  %2265 = vmatmul.mubr.msk.bf16.vlgmr.msra.gmra.mrb[20].mxu0 %vm1098_vm3, %v1330_v59 }
 0x4a9   : > { %2259 = vmatmul.mubr.msk.bf16.vlgmr.msra.gmra.mrb[16].mxu1 %vm1098_vm3, %v1329_v54  ;;  %2280 = vmatprep.mubr.msk.bf16.mxu0 %vm2850_vm0, %v2849_v0 }
 0x4aa   : > { %2272 = vmatprep.mubr.msk.bf16.mxu1 %vm2850_vm0, %v2849_v0  ;;  %2269 = vmatpush3.bf16.msra.mxu1 %v2447_v2 }
 0x4ab   : > { %2270 = vmatprep.subr.bf16.mxu1 %v2849_v0  ;;  %2277 = vmatpush3.bf16.msra.mxu0 %v2449_v38 }
 0x4ac   : > { %2278 = vmatprep.subr.bf16.mxu0 %v2849_v0 }
 0x4ae   : > { %2271 = vmatpush3.bf16.msra.mxu1 %v2448_v7 }
 0x4af   : > { %2284 = vmatprep.subr.bf16.mxu1 %v2849_v0 }
 0x50a   : > { %v1376_v60 = vpop.f32.mrb[12].mxu1 }
 0x50b   : > { %v1520_v61 = vpack.c.bf16 %v1376_v60, %v1376_v60  ;;  %v2248_v62 = vpop.f32.mrb[13].mxu1 }
 0x50c   : > { %v1379_v63 = vpop.f32.mrb[14].mxu1 }
 0x50d   : > { %1521 = vst.msk [vmem:[#allocation5] sm:$0xf] %vm954_vm2, %v1520_v61  ;;  %v2249_v1 = vpop.f32.mrb[15].mxu1 }
 0x573   : > { %v1422_v3 = vpop.f32.mrb[16].mxu0 }
 0x574   : > { %v2156_v4 = vpack.c.bf16 %v1422_v3, %v1422_v3  ;;  %v2254_v5 = vpop.f32.mrb[17].mxu0 }
 0x575   : > { %v1425_v8 = vpop.f32.mrb[18].mxu0 }
 0x576   : > { %1526 = vrot.lane.b32.xlu1 %v2156_v4, %s2854_s0  ;;  %v2255_v9 = vpop.f32.mrb[19].mxu0  ;;  %s2707_s0 = sshll.u32 %s2857_s27, 4  ;;  %s2708_s0 = int_to_ptr.vmem [resolvable:$false] %s2707_s0 }
 0x577   : > { %s2709_s8 = scalar_lea.vmem %s2708_s0, 512  ;;  %p2710_p7 = scmp.lt.s32.totalorder %s3462_s17, %s2708_s0 }
 0x578   : > { %p2711_p11 = scmp.lt.s32.totalorder %s2709_s8, %s2703_s2 }
 0x57a   : > { %p2712_p5 = por %p2711_p11, %p2710_p7 }
 0x57b   : > { %v1514_v10 = vpop.f32.mrb[20].mxu0 }
 0x57c   : > { %v2158_v11 = vpack.c.bf16 %v1514_v10, %v1514_v10  ;;  %v1468_v12 = vpop.f32.mrb[16].mxu1  ;;  %v2266_v13 = vpop.f32.mrb[21].mxu0  ;;  %p2713_p2 = pnand %p2712_p5, %p2706_p4 }
 0x57d   : > { %v2157_v14 = vpack.c.bf16 %v1468_v12, %v1468_v12  ;;  %v2260_v15 = vpop.f32.mrb[17].mxu1  ;;  %v1517_v16 = vpop.f32.mrb[22].mxu0 }
 0x57e   : > { %v1471_v17 = vpop.f32.mrb[18].mxu1  ;;  %1544 = vrot.lane.b32.xlu1 %v2158_v11, %s2855_s30  ;;  %v2267_v18 = vpop.f32.mrb[23].mxu0 }
 0x57f   : > { %1535 = vrot.lane.b32.xlu0 %v2157_v14, %s2856_s16  ;;  %v2261_v19 = vpop.f32.mrb[19].mxu1  ;;  %s3634_s16 = sld [smem:[#allocation45_spill]] }
 0x585   : > { %v2134_v52 = vld [vmem:[%s3634_s16] ss:$0 sm:$0xff] }
 0x5e8   : > { %v1527_v20 = vpop.permute.xlu1 %1526 }
 0x5e9   : > { %1530 = vst.msk [vmem:[#allocation5] sm:$0xf] %vm1529_vm5, %v1527_v20 }
 0x5f0   : > { %v1545_v22 = vpop.permute.xlu1 %1544 }
 0x5f1   : > { %v1536_v21 = vpop.permute.xlu0 %1535 }
 0x5f2   : > { %1539 = vst.msk [vmem:[#allocation5] sm:$0xf] %vm1538_vm6, %v1536_v21 }
 0x5f3   : > { %1548 = vst.msk [vmem:[#allocation5] sm:$0xf] %vm1547_vm7, %v1545_v22 }
 0x5fa   : > { %v1549_v23 = vld [vmem:[#allocation5] sm:$0xf] }
 0x5fb   : > { %2273 = vmatmul.mubr.msk.bf16.vlgmr.msra.gmra.mrb[20].mxu1 %vm846_vm1, %v1549_v23 }
 0x5fc   : > { %2292 = vmatprep.mubr.msk.bf16.mxu1 %vm2850_vm0, %v2849_v0  ;;  %2285 = vmatpush3.bf16.msra.mxu1 %v2451_v39 }
 0x5fd   : > { %2286 = vmatprep.subr.bf16.mxu1 %v2849_v0 }
 0x600   : > { %2287 = vmatpush3.bf16.msra.mxu1 %v2452_v40 }
 0x601   : > { %2288 = vmatprep.subr.bf16.mxu1 %v2849_v0 }
 0x604   : > { %2289 = vmatpush3.bf16.msra.mxu1 %v2453_v50 }
 0x605   : > { %2290 = vmatprep.subr.bf16.mxu1 %v2849_v0  ;;  %v2138_v0 = vld [vmem:[%s3635_s4] ss:$0 sm:$0xff] }
 0x608   : > { %2291 = vmatpush3.bf16.msra.mxu1 %v2454_v51 }
 0x6ce   : > { %v1610_v25 = vpop.f32.mrb[20].mxu1 }
 0x6cf   : > { %v1611_v26 = vadd.f32 %v2128_v24, %v1610_v25  ;;  %v2274_v27 = vpop.f32.mrb[21].mxu1 }
 0x6d0   : > { %v1613_v28 = vpop.f32.mrb[22].mxu1 }
 0x6d1   : > { %v2275_v29 = vpop.f32.mrb[23].mxu1  ;;  %v1616_v30 = vadd.f32 %v1611_v26, %v3302_v6  ;;  %v2450_v6 = vld [vmem:[%s3562_s13 + $0x8] sm:$0xff]  }
 0x6d2   : > { %2279 = vmatpush3.bf16.msra.mxu0 %v2450_v6 }
 0x6d3   : > { %v1619_v31 = vsel %vm846_vm1, %v1616_v30, 0.0 }
 0x6d4   : > { %1620 = vadd.xlane.f32.xlu0 %v1619_v31 }
 0x761   : > { %v1621_v33 = vpop.xlane.xlu0 %1620 }
 0x762   : > { %v1623_v34 = vmul.f32 0.03125, %v1621_v33 }
 0x764   : > { %v1624_v35 = vsub.f32 %v1616_v30, %v1623_v34 }
 0x766   : > { %v1625_v36 = vmul.f32 %v1624_v35, %v1624_v35 }
 0x768   : > { %v1626_v37 = vsel %vm846_vm1, %v1625_v36, 0.0 }
 0x769   : > { %1627 = vadd.xlane.f32.xlu1 %v1626_v37 }
 0x7f6   : > { %v1628_v41 = vpop.xlane.xlu1 %1627 }
 0x7f7   : > { %v1629_v42 = vmul.f32 0.03125, %v1628_v41 }
 0x7f9   : > { %v1630_v43 = vadd.f32 1e-05, %v1629_v42 }
 0x7fb   : > { %2471 = vrsqrt.f32 %v1630_v43 }
 0x805   : > { %v2472_v32 = vpop.eup %2471 }
 0x806   : > { %v1632_v45 = vmul.f32 %v2472_v32, %v1624_v35 }
 0x808   : > { %v1639_v47 = vmul.f32 %v2132_v44, %v1632_v45 }
 0x80a   : > { %v1646_v48 = vadd.f32 %v2133_v46, %v1639_v47 }
 0x80c   : > { %v1647_v49 = vpack.c.bf16 %v1646_v48, %v1646_v48 }
 0x80e   : > { %2281 = vmatmul.mubr.msk.bf16.vlgmr.msra.gmra.mrb[24].mxu0 %vm846_vm1, %v1647_v49 }
 0x8e1   : > { %v1708_v53 = vpop.f32.mrb[24].mxu0 }
 0x8e2   : > { %v1709_v54 = vadd.f32 %v2134_v52, %v1708_v53  ;;  %v2282_v55 = vpop.f32.mrb[25].mxu0 }
 0x8e3   : > { %v1711_v56 = vpop.f32.mrb[26].mxu0 }
 0x8e4   : > { %v1714_v57 = vmax.f32 %v1709_v54, 0.0  ;;  %v2283_v58 = vpop.f32.mrb[27].mxu0 }
 0x8e6   : > { %v1715_v59 = vpack.c.bf16 %v1714_v57, %v1714_v57 }
 0x8e8   : > { %2293 = vmatmul.mubr.msk.bf16.vlgmr.msra.gmra.mrb[24].mxu1 %vm1755_vm8, %v1715_v59 }
 0x9bb   : > { %v1793_v60 = vpop.f32.mrb[24].mxu1 }
 0x9bc   : > { %v1794_v61 = vadd.f32 %v2138_v0, %v1793_v60  ;;  %v2294_v62 = vpop.f32.mrb[25].mxu1 }
 0x9bd   : > { %v1796_v63 = vpop.f32.mrb[26].mxu1 }
 0x9be   : > { %v2295_v1 = vpop.f32.mrb[27].mxu1  ;;  %v1799_v2 = vadd.f32 %v1794_v61, %v1646_v48 }
 0x9c0   : > { %v1802_v3 = vsel %vm846_vm1, %v1799_v2, 0.0 }
 0x9c1   : > { %1803 = vadd.xlane.f32.xlu0 %v1802_v3 }
 0xa4e   : > { %v1804_v4 = vpop.xlane.xlu0 %1803 }
 0xa4f   : > { %v1805_v5 = vmul.f32 0.03125, %v1804_v4 }
 0xa51   : > { %v1806_v7 = vsub.f32 %v1799_v2, %v1805_v5 }
 0xa53   : > { %v1807_v8 = vmul.f32 %v1806_v7, %v1806_v7 }
 0xa55   : > { %v1808_v9 = vsel %vm846_vm1, %v1807_v8, 0.0 }
 0xa56   : > { %1809 = vadd.xlane.f32.xlu0 %v1808_v9 }
 0xa57   : > { %2716 = shalt.err (!%p2713_p2)
}
 0xa58   : > { %s2717_s30 = scalar_lea.hbm %s3460_s14, 256  ;;  %s2721_s7 = scalar_lea.hbm %s3636_s26, 512 }
 0xa59   : > { %p2718_p8 = scmp.ne.s32.totalorder %s3460_s14, %s2717_s30  ;;  %p2722_p6 = scmp.lt.u32.totalorder %s3460_s14, %s3636_s26 }
 0xa5a   : > { %p2723_p3 = scmp.lt.u32.totalorder %s2721_s7, %s2717_s30  ;;  %p2725_p0 = scmp.lt.u32.totalorder %s2717_s30, %s3460_s14 }
 0xa5b   : > { %p2719_p9 = pnand %p2718_p8, %p3637_p10 }
 0xa5c   : > { %p2724_p12 = por %p2723_p3, %p2722_p6 }
 0xa5d   : > { %p2720_p1 = pneg %p2719_p9 }
 0xa5e   : > { %p2726_p13 = por %p2725_p0, %p2724_p12 }
 0xa60   : > { %p2727_p4 = pnand %p2726_p13, %p2720_p1 }
 0xa62   : > { %2730 = shalt.err (!%p2727_p4)
}
 0xa63   : > { %s2858_s19 = smov 64   ;;  %s2859_s3 = smov 4  }
 0xa64   : > { %2325 = dma.vmem_to_hbm [thread:$0]  (%p3637_p10), %s3462_s17, 256, %s3460_s14, %s1836_s21, %s2858_s19, %s2858_s19, %s2859_s3  }
 0xa65   : > { %s2099_s2 = sshll.u32 %s3246_s12, 3  ;;  %s3638_s8 = sld [smem:[#allocation48_spill]] }
 0xa66   : > { %s3639_s18 = sld [smem:[#allocation49_spill]]  ;;  %s2148_s7 = sshll.u32 %s2829_s24, 7 }
 0xa67   : > { %s802_s4 = scalar_lea.vmem [#allocation20], %s2099_s2  ;;  %s3640_s10 = sld [smem:[#allocation50_spill]] }
 0xa68   : > { %s1850_s17 = sshll.u32 %s802_s4, 4  ;;  %s1831_s3 = scalar_lea.sflag [#allocation8], %s3246_s12  ;;  %s3501_s17 = int_to_ptr.vmem [resolvable:$true] %s1850_s17 }
 0xa69   : > { %s2731_s27 = scalar_lea.vmem %s3501_s17, 128  ;;  %s2860_s24 = smov [#allocation20]  }
 0xa6a   : > { %p2732_p7 = scmp.ne.s32.totalorder %s3501_s17, %s2731_s27  ;;  %s2735_s2 = sshll.u32 %s2860_s24, 4  ;;  %s2736_s2 = int_to_ptr.vmem [resolvable:$false] %s2735_s2 }
 0xa6b   : > { %v2144_v14 = vld [vmem:[%s3638_s8] ss:$0 sm:$0xff]  ;;  %s2737_s0 = scalar_lea.vmem %s2736_s2, 256  ;;  %p2738_p2 = scmp.lt.s32.totalorder %s3501_s17, %s2736_s2 }
 0xa6c   : > { %v2145_v16 = vld [vmem:[%s3639_s18] ss:$0 sm:$0xff]  ;;  %p2733_p11 = pnand %p2732_p7, %p3637_p10  ;;  %p2739_p8 = scmp.lt.s32.totalorder %s2737_s0, %s2731_s27 }
 0xa6d   : > { %s3499_s19 = scalar_lea.hbm %s3640_s10, %s2148_s7 }
 0xa6e   : > { %p2734_p5 = pneg %p2733_p11  ;;  %p2740_p9 = por %p2739_p8, %p2738_p2 }
 0xa70   : > { %p2741_p1 = pnand %p2740_p9, %p2734_p5 }
 0xae3   : > { %v1810_v10 = vpop.xlane.xlu0 %1809 }
 0xae4   : > { %v1811_v11 = vmul.f32 0.03125, %v1810_v10 }
 0xae6   : > { %v1812_v12 = vadd.f32 1e-05, %v1811_v11 }
 0xae8   : > { %2473 = vrsqrt.f32 %v1812_v12 }
 0xaf2   : > { %v2474_v13 = vpop.eup %2473 }
 0xaf3   : > { %v1814_v15 = vmul.f32 %v2474_v13, %v1806_v7 }
 0xaf5   : > { %v1821_v17 = vmul.f32 %v2144_v14, %v1814_v15 }
 0xaf7   : > { %v1828_v18 = vadd.f32 %v2145_v16, %v1821_v17 }
 0xaf9   : > { %1829 = vst.msk [vmem:[%s802_s4] sm:$0xff] %vm846_vm1, %v1828_v18 }
 0xafa   : > { %2744 = shalt.err (!%p2741_p1)
}
 0xafb   : > { %s2745_s12 = scalar_lea.hbm %s3499_s19, 128  ;;  %s2749_s16 = scalar_lea.hbm %s3640_s10, 256 }
 0xafc   : > { %p2746_p6 = scmp.ne.s32.totalorder %s3499_s19, %s2745_s12  ;;  %p2750_p0 = scmp.lt.u32.totalorder %s3499_s19, %s3640_s10 }
 0xafd   : > { %p2751_p13 = scmp.lt.u32.totalorder %s2749_s16, %s2745_s12  ;;  %p2753_p7 = scmp.lt.u32.totalorder %s2745_s12, %s3499_s19 }
 0xafe   : > { %p2747_p3 = pnand %p2746_p6, %p3637_p10 }
 0xaff   : > { %p2752_p4 = por %p2751_p13, %p2750_p0 }
 0xb00   : > { %p2748_p12 = pneg %p2747_p3 }
 0xb01   : > { %p2754_p11 = por %p2753_p7, %p2752_p4 }
 0xb03   : > { %p2755_p5 = pnand %p2754_p11, %p2748_p12 }
 0xb05   : > { %2758 = shalt.err (!%p2755_p5)
}
 0xb06   : > { %2324 = dma.vmem_to_hbm [thread:$0]  (%p3637_p10), %s3501_s17, 128, %s3499_s19, %s1831_s3  }
 0xb07 PF: > { %s1879_s4 = sand.u32 1, %s2817_s1   ;;  %p3641_p2 = scmp.ne.s32.totalorder %s3616_s29, 0 }
 0xb08   : > { %p3642_p8 = scmp.ge.s32.totalorder %s2837_s25, 2  ;;  %s1880_s14 = scalar_lea.sflag [#allocation8], %s1879_s4 }
 0xb0a   : > { %p2355_p9 = pnand %p3642_p8, %p3641_p2 }
 0xb0c   : > { %2808 = dma.done.wait (!%p2355_p9), %s1880_s14, 128  }
 0xb0d   : > { %2810 = vsyncadd (!%p2355_p9), %s1880_s14, 4294967168  ;;  %s1889_s21 = scalar_lea.sflag [#allocation22], %s1879_s4 }
 0xb0e   : > { %2812 = dma.done.wait (!%p2355_p9), %s1889_s21, 256  }
 0xb0f   : > { %2814 = vsyncadd (!%p2355_p9), %s1889_s21, 4294967040  ;;  %s46_s25 = sadd.s32 1, %s2837_s25   ;;  %s3643_s28 = sld [smem:[#allocation33_spill]] }
 0xb10   : > { %p43_p1 = scmp.ge.s32.totalorder %s46_s25, 4   ;;  %s3644_s24 = sld [smem:[#allocation31_spill]] }
 0xb11   : > { %s3645_s2 = sld [smem:[#allocation32_spill]]  ;;  %s3646_s1 = smov %s2821_s22 }
 0xb12   : > { %s3647_s22 = smov %s2825_s23  ;;  %45 = sbr.rel (!%p43_p1) target bundleno = 32 (0x20), region = 211 }
 0xb15   : > { %s3648_s23 = smov %s3643_s28 }
 0xb19   :  { %1894 = vsyncpa [#allocation7], 1 }
 0xb1a   :  { %1896 = vsyncpa [#allocation7 + $0x1], 1 }
 0xb1b   :  { %1897 = vsyncpa [#allocation10], 1 }
 0xb1c   :  { %1899 = vsyncpa [#allocation10 + $0x1], 1 }
 0xb1d   :  { %1900 = vsyncpa [#allocation13], 1 }
 0xb1e   :  { %1901 = vsyncpa [#allocation16], 1 }
 0xb1f   :  { %1902 = vsyncpa [#allocation19], 1 }
 0xb20   :  { %1903 = vsyncpa [#allocation8], 1 }
 0xb21   :  { %1905 = vsyncpa [#allocation8 + $0x1], 1 }
 0xb22   :  { %1906 = vsyncpa [#allocation22], 1 }
 0xb23   :  { %1908 = vsyncpa [#allocation22 + $0x1], 1 }

// kernel: tpu_custom_call.1
= control target key start
LH: loop header
LB: loop body
LE: loop exit
PB: predicated region body
PF: predicated region fallthrough
CT: control target
= control target key end

     0   :  { %s3549_s0 = inlined_call_operand.vmem [shape: f32[2,8,32], index: 0, kind: input, shape index: {}]   ;;  %s3550_s1 = inlined_call_operand.hbm [shape: bf16[2,8,32], index: 1, kind: input, shape index: {}]   ;;  %s3551_s2 = inlined_call_operand.hbm [shape: bf16[2,1,8,8], index: 2, kind: input, shape index: {}]   ;;  %s3552_s3 = inlined_call_operand.vmem [shape: bf16[32,32], index: 3, kind: input, shape index: {}]   ;;  %s3553_s4 = inlined_call_operand.vmem [shape: f32[1,32], index: 4, kind: input, shape index: {}]   ;;  %s3554_s5 = inlined_call_operand.vmem [shape: bf16[32,32], index: 5, kind: input, shape index: {}]   ;;  %s3555_s6 = inlined_call_operand.hbm [shape: f32[1,32], index: 6, kind: input, shape index: {}]   ;;  %s3556_s7 = inlined_call_operand.hbm [shape: bf16[32,32], index: 7, kind: input, shape index: {}]   ;;  %s3557_s8 = inlined_call_operand.hbm [shape: f32[1,32], index: 8, kind: input, shape index: {}]   ;;  %s3558_s9 = inlined_call_operand.vmem [shape: bf16[32,32], index: 9, kind: input, shape index: {}]   ;;  %s3559_s10 = inlined_call_operand.hbm [shape: f32[1,32], index: 10, kind: input, shape index: {}]   ;;  %s3560_s11 = inlined_call_operand.hbm [shape: f32[1,32], index: 11, kind: input, shape index: {}]   ;;  %s3561_s12 = inlined_call_operand.hbm [shape: f32[1,32], index: 12, kind: input, shape index: {}]   ;;  %s3562_s13 = inlined_call_operand.vmem [shape: bf16[32,64], index: 13, kind: input, shape index: {}]   ;;  %s3563_s14 = inlined_call_operand.vmem [shape: f32[1,64], index: 14, kind: input, shape index: {}]   ;;  %s3564_s15 = inlined_call_operand.vmem [shape: bf16[64,32], index: 15, kind: input, shape index: {}]   ;;  %s3565_s16 = inlined_call_operand.vmem [shape: f32[1,32], index: 16, kind: input, shape index: {}]   ;;  %s3566_s17 = inlined_call_operand.vmem [shape: f32[1,32], index: 17, kind: input, shape index: {}]   ;;  %s3567_s18 = inlined_call_operand.vmem [shape: f32[1,32], index: 18, kind: input, shape index: {}]   ;;  %s3568_s19 = inlined_call_operand.hbm [shape: f32[2,8,32], index: 19, kind: output, shape index: {0}]   ;;  %s3569_s20 = inlined_call_operand.hbm [shape: bf16[2,4,8,8], index: 20, kind: output, shape index: {1}]  }
   0x1   :  { %3582 = sst [smem:[#allocation34_spill]] %s3549_s0 }
   0x2   :  { %3583 = sst [smem:[#allocation35_spill]] %s3550_s1 }
   0x3   :  { %3584 = sst [smem:[#allocation36_spill]] %s3551_s2 }
   0x4   :  { %3585 = sst [smem:[#allocation37_spill]] %s3552_s3 }
   0x5   :  { %3586 = sst [smem:[#allocation38_spill]] %s3553_s4 }
   0x6   :  { %3587 = sst [smem:[#allocation39_spill]] %s3555_s6 }
   0x7   :  { %3588 = sst [smem:[#allocation40_spill]] %s3556_s7 }
   0x8   :  { %3589 = sst [smem:[#allocation41_spill]] %s3557_s8 }
   0x9   :  { %3590 = sst [smem:[#allocation42_spill]] %s3559_s10 }
   0xa   :  { %3591 = sst [smem:[#allocation43_spill]] %s3560_s11 }
   0xb   :  { %3592 = sst [smem:[#allocation44_spill]] %s3561_s12 }
   0xc   :  { %3593 = sst [smem:[#allocation45_spill]] %s3563_s14 }
   0xd   :  { %3594 = sst [smem:[#allocation46_spill]] %s3564_s15 }
   0xe   :  { %3595 = sst [smem:[#allocation47_spill]] %s3565_s16 }
   0xf   :  { %3596 = sst [smem:[#allocation48_spill]] %s3566_s17 }
  0x10   :  { %3597 = sst [smem:[#allocation49_spill]] %s3567_s18 }
  0x11   :  { %3598 = sst [smem:[#allocation50_spill]] %s3568_s19 }
  0x12   :  { %3599 = sst [smem:[#allocation51_spill]] %s3569_s20 }
  0x13   :  { %26 = vsyncpa [#allocation7], 0 }
  0x14   :  { %28 = vsyncpa [#allocation7 + $0x1], 0 }
  0x15   :  { %29 = vsyncpa [#allocation10], 0 }
  0x16   :  { %31 = vsyncpa [#allocation10 + $0x1], 0 }
  0x17   :  { %32 = vsyncpa [#allocation13], 0 }
  0x18   :  { %33 = vsyncpa [#allocation16], 0 }
  0x19   :  { %34 = vsyncpa [#allocation19], 0 }
  0x1a   :  { %35 = vsyncpa [#allocation8], 0 }
  0x1b   :  { %37 = vsyncpa [#allocation8 + $0x1], 0 }
  0x1c   :  { %38 = vsyncpa [#allocation22], 0 }
  0x1d   :  { %40 = vsyncpa [#allocation22 + $0x1], 0  ;;  %s2966_s1 = smov 0   ;;  %s2968_s22 = smov 0  }
  0x1e   :  { %s2970_s23 = smov 0   ;;  %s2972_s24 = smov 0  }
  0x1f   :  { %s2974_s2 = smov 0   ;;  %s2976_s25 = smov 0  }
  0x20 LB: > { %3600 = sst [smem:[#allocation31_spill]] %s2833_s2  ;;  %s2997_s3 = sadd.s32 4294967295, %s2837_s25   ;;  %s2837_s25 = sphi %s2976_s25, %s46_s25   ;;  %s2833_s2 = sphi %s2974_s2, %s3645_s2   ;;  %s2829_s24 = sphi %s2972_s24, %s3644_s24   ;;  %s2825_s23 = sphi %s2970_s23, %s3648_s23   ;;  %s2821_s22 = sphi %s2968_s22, %s3647_s22   ;;  %s2817_s1 = sphi %s2966_s1, %s3646_s1  }
  0x21   : > { %p2078_p0 = scmp.ge.s32.totalorder %s2837_s25, 1  ;;  %p3575_p1 = scmp.eq.s32.totalorder %s2997_s3, 0 }
  0x22   : > { %p537_p2 = scmp.lt.s32.totalorder %s2837_s25, 3  ;;  %s2839_s27 = smov [#allocation11]  }
  0x23   : > { %s559_s28 = sshll.u32 %s2839_s27, 4  ;;  %s2840_s4 = smov [#allocation12]   ;;  %s560_s28 = int_to_ptr.vmem [resolvable:$true] %s559_s28 }
  0x24   : > { %p3002_p3 = pnand %p2078_p0, %p537_p2  ;;  %s569_s29 = sshll.u32 %s2840_s4, 4  ;;  %s3015_s29 = int_to_ptr.vmem [resolvable:$true] %s569_s29 }
  0x25   : > { %s2841_s0 = smov [#allocation15]   ;;  %s3603_s6 = sld [smem:[#allocation39_spill]] }
  0x26   : > { %s3601_s26 = scalar_select %p3002_p3, 1, 0 }
  0x27   : > { %p2328_p5 = pneg %p3002_p3  ;;  %s3017_s21 = sshll.u32 %s2841_s0, 4  ;;  %s598_s21 = int_to_ptr.vmem [resolvable:$true] %s3017_s21 }
  0x29   : > { %p3011_p6 = pnand %p2328_p5, %p3575_p1 }
  0x2b   : > { %s2475_s27 = scalar_lea.hbm %s3603_s6, 16  ;;  %p3027_p8 = pneg %p3011_p6 }
  0x2c   : > { %p2476_p7 = scmp.ne.s32.totalorder %s3603_s6, %s2475_s27  ;;  %p2482_p11 = scmp.lt.u32.totalorder %s2475_s27, %s3603_s6 }
  0x2e   : > { %p2478_p9 = pnand %p3027_p8, %p2476_p7 }
  0x30   : > { %p2479_p10 = pneg %p2478_p9 }
  0x32   : > { %p2484_p12 = pnand %p2482_p11, %p2479_p10 }
  0x34   : > { %2487 = shalt.err (!%p2484_p12)
}
  0x35   : > { %s2488_s18 = scalar_lea.vmem %s560_s28, 16  ;;  %s2495_s17 = scalar_lea.vmem %s560_s28, 32 }
  0x36   : > { %p2489_p13 = scmp.ne.s32.totalorder %s560_s28, %s2488_s18  ;;  %p2496_p5 = scmp.lt.s32.totalorder %s560_s28, %s560_s28 }
  0x37   : > { %p2497_p4 = scmp.lt.s32.totalorder %s2495_s17, %s2488_s18 }
  0x38   : > { %p2491_p0 = pnand %p2489_p13, %p3027_p8 }
  0x39   : > { %p2498_p1 = por %p2497_p4, %p2496_p5 }
  0x3a   : > { %p2492_p2 = pneg %p2491_p0 }
  0x3c   : > { %p2499_p3 = pnand %p2498_p1, %p2492_p2 }
  0x3e   : > { %2502 = shalt.err (!%p2499_p3)
}
  0x3f   : > { %2331 = dma.hbm_to_vmem [thread:$0]  (!%p3011_p6), %s3603_s6, 16, %s560_s28, [#allocation10]  }
  0x40   : > { %s3605_s7 = sld [smem:[#allocation40_spill]] }
  0x46   : > { %s2503_s0 = scalar_lea.hbm %s3605_s7, 256 }
  0x47   : > { %p2504_p7 = scmp.ne.s32.totalorder %s3605_s7, %s2503_s0  ;;  %p2510_p1 = scmp.lt.u32.totalorder %s2503_s0, %s3605_s7 }
  0x49   : > { %p2506_p9 = pnand %p2504_p7, %p3027_p8 }
  0x4b   : > { %p2507_p4 = pneg %p2506_p9 }
  0x4d   : > { %p2512_p3 = pnand %p2510_p1, %p2507_p4 }
  0x4f   : > { %2515 = shalt.err (!%p2512_p3)
}
  0x50   : > { %s2516_s28 = scalar_lea.vmem %s3015_s29, 256  ;;  %p2524_p13 = scmp.lt.s32.totalorder %s3015_s29, %s3015_s29 }
  0x51   : > { %p2517_p10 = scmp.ne.s32.totalorder %s3015_s29, %s2516_s28  ;;  %p2525_p0 = scmp.lt.s32.totalorder %s2516_s28, %s2516_s28 }
  0x53   : > { %p2519_p11 = pnand %p2517_p10, %p3027_p8  ;;  %p2526_p2 = por %p2525_p0, %p2524_p13 }
  0x55   : > { %p2520_p12 = pneg %p2519_p11 }
  0x57   : > { %p2527_p5 = pnand %p2526_p2, %p2520_p12 }
  0x59   : > { %2530 = shalt.err (!%p2527_p5)
}
  0x5a   : > { %s2842_s14 = smov 64   ;;  %s2843_s15 = smov 4  }
  0x5b   : > { %2334 = dma.hbm_to_vmem [thread:$0]  (!%p3011_p6), %s3605_s7, 256, %s3015_s29, [#allocation13], %s2842_s14, %s2842_s14, %s2843_s15  }
  0x5c   : > { %s3606_s10 = sld [smem:[#allocation42_spill]] }
  0x62   : > { %s2531_s0 = scalar_lea.hbm %s3606_s10, 16 }
  0x63   : > { %p2532_p7 = scmp.ne.s32.totalorder %s3606_s10, %s2531_s0  ;;  %p2538_p1 = scmp.lt.u32.totalorder %s2531_s0, %s3606_s10 }
  0x65   : > { %p2534_p9 = pnand %p2532_p7, %p3027_p8 }
  0x67   : > { %p2535_p4 = pneg %p2534_p9 }
  0x69   : > { %p2540_p3 = pnand %p2538_p1, %p2535_p4 }
  0x6b   : > { %2543 = shalt.err (!%p2540_p3)
}
  0x6c   : > { %s2544_s19 = scalar_lea.vmem %s598_s21, 16  ;;  %s2551_s29 = scalar_lea.vmem %s598_s21, 32 }
  0x6d   : > { %p2545_p10 = scmp.ne.s32.totalorder %s598_s21, %s2544_s19  ;;  %p2552_p13 = scmp.lt.s32.totalorder %s598_s21, %s598_s21 }
  0x6e   : > { %p2553_p0 = scmp.lt.s32.totalorder %s2551_s29, %s2544_s19 }
  0x6f   : > { %p2547_p11 = pnand %p2545_p10, %p3027_p8 }
  0x70   : > { %p2554_p2 = por %p2553_p0, %p2552_p13 }
  0x71   : > { %p2548_p12 = pneg %p2547_p11 }
  0x73   : > { %p2555_p5 = pnand %p2554_p2, %p2548_p12 }
  0x75   : > { %2558 = shalt.err (!%p2555_p5)
}
  0x76   : > { %2340 = dma.hbm_to_vmem [thread:$0]  (!%p3011_p6), %s3606_s10, 16, %s598_s21, [#allocation16]  }
  0x77   : > { %s2844_s6 = smov [#allocation14]   ;;  %s2845_s16 = smov [#allocation17]  }
  0x78   : > { %s583_s20 = sshll.u32 %s2844_s6, 4  ;;  %s608_s27 = sshll.u32 %s2845_s16, 4  ;;  %s584_s20 = int_to_ptr.vmem [resolvable:$true] %s583_s20  ;;  %s609_s27 = int_to_ptr.vmem [resolvable:$true] %s608_s27 }
  0x79   : > { %s3607_s8 = sld [smem:[#allocation41_spill]] }
  0x7f   : > { %s2559_s17 = scalar_lea.hbm %s3607_s8, 16 }
  0x80   : > { %p2560_p7 = scmp.ne.s32.totalorder %s3607_s8, %s2559_s17  ;;  %p2566_p1 = scmp.lt.u32.totalorder %s2559_s17, %s3607_s8 }
  0x82   : > { %p2562_p9 = pnand %p2560_p7, %p3027_p8 }
  0x84   : > { %p2563_p4 = pneg %p2562_p9 }
  0x86   : > { %p2568_p3 = pnand %p2566_p1, %p2563_p4 }
  0x88   : > { %2571 = shalt.err (!%p2568_p3)
}
  0x89   : > { %s2572_s21 = scalar_lea.vmem %s584_s20, 16  ;;  %s2579_s15 = scalar_lea.vmem %s584_s20, 32 }
  0x8a   : > { %p2573_p10 = scmp.ne.s32.totalorder %s584_s20, %s2572_s21  ;;  %p2580_p13 = scmp.lt.s32.totalorder %s584_s20, %s584_s20 }
  0x8b   : > { %p2581_p0 = scmp.lt.s32.totalorder %s2579_s15, %s2572_s21 }
  0x8c   : > { %p2575_p11 = pnand %p2573_p10, %p3027_p8 }
  0x8d   : > { %p2582_p2 = por %p2581_p0, %p2580_p13 }
  0x8e   : > { %p2576_p12 = pneg %p2575_p11 }
  0x90   : > { %p2583_p5 = pnand %p2582_p2, %p2576_p12 }
  0x92   : > { %2586 = shalt.err (!%p2583_p5)
}
  0x93   : > { %2337 = dma.hbm_to_vmem [thread:$0]  (!%p3011_p6), %s3607_s8, 16, %s584_s20, [#allocation13]  }
  0x94   : > { %s3608_s11 = sld [smem:[#allocation43_spill]] }
  0x9a   : > { %s2587_s17 = scalar_lea.hbm %s3608_s11, 16 }
  0x9b   : > { %p2588_p7 = scmp.ne.s32.totalorder %s3608_s11, %s2587_s17  ;;  %p2594_p1 = scmp.lt.u32.totalorder %s2587_s17, %s3608_s11 }
  0x9d   : > { %p2590_p9 = pnand %p2588_p7, %p3027_p8 }
  0x9f   : > { %p2591_p4 = pneg %p2590_p9 }
  0xa1   : > { %p2596_p3 = pnand %p2594_p1, %p2591_p4 }
  0xa3   : > { %2599 = shalt.err (!%p2596_p3)
}
  0xa4   : > { %s2600_s21 = scalar_lea.vmem %s609_s27, 16  ;;  %s2607_s20 = scalar_lea.vmem %s609_s27, 32 }
  0xa5   : > { %p2601_p10 = scmp.ne.s32.totalorder %s609_s27, %s2600_s21  ;;  %p2608_p13 = scmp.lt.s32.totalorder %s609_s27, %s609_s27 }
  0xa6   : > { %p2609_p0 = scmp.lt.s32.totalorder %s2607_s20, %s2600_s21 }
  0xa7   : > { %p2603_p11 = pnand %p2601_p10, %p3027_p8 }
  0xa8   : > { %p2610_p2 = por %p2609_p0, %p2608_p13 }
  0xa9   : > { %p2604_p12 = pneg %p2603_p11 }
  0xab   : > { %p2611_p5 = pnand %p2610_p2, %p2604_p12 }
  0xad   : > { %2614 = shalt.err (!%p2611_p5)
}
  0xae   : > { %2343 = dma.hbm_to_vmem [thread:$0]  (!%p3011_p6), %s3608_s11, 16, %s609_s27, [#allocation16]  }
  0xaf   : > { %s2846_s16 = smov [#allocation18]   ;;  %s3609_s12 = sld [smem:[#allocation44_spill]] }
  0xb0   : > { %s619_s0 = sshll.u32 %s2846_s16, 4  ;;  %s620_s0 = int_to_ptr.vmem [resolvable:$true] %s619_s0 }
  0xb5   : > { %s2615_s28 = scalar_lea.hbm %s3609_s12, 16 }
  0xb6   : > { %p2616_p7 = scmp.ne.s32.totalorder %s3609_s12, %s2615_s28  ;;  %p2622_p1 = scmp.lt.u32.totalorder %s2615_s28, %s3609_s12 }
  0xb8   : > { %p2618_p9 = pnand %p2616_p7, %p3027_p8 }
  0xba   : > { %p2619_p4 = pneg %p2618_p9 }
  0xbc   : > { %p2624_p3 = pnand %p2622_p1, %p2619_p4 }
  0xbe   : > { %2627 = shalt.err (!%p2624_p3)
}
  0xbf   : > { %s2628_s27 = scalar_lea.vmem %s620_s0, 16  ;;  %s2635_s20 = scalar_lea.vmem %s620_s0, 32 }
  0xc0   : > { %p2629_p10 = scmp.ne.s32.totalorder %s620_s0, %s2628_s27  ;;  %p2636_p13 = scmp.lt.s32.totalorder %s620_s0, %s620_s0 }
  0xc1   : > { %p2637_p0 = scmp.lt.s32.totalorder %s2635_s20, %s2628_s27 }
  0xc2   : > { %p2631_p11 = pnand %p2629_p10, %p3027_p8 }
  0xc3   : > { %p2638_p2 = por %p2637_p0, %p2636_p13 }
  0xc4   : > { %p2632_p12 = pneg %p2631_p11 }
  0xc6   : > { %p2639_p5 = pnand %p2638_p2, %p2632_p12 }
  0xc8   : > { %2642 = shalt.err (!%p2639_p5)
}
  0xc9   : > { %2346 = dma.hbm_to_vmem [thread:$0]  (!%p3011_p6), %s3609_s12, 16, %s620_s0, [#allocation19]  }
  0xca   : > { %s2077_s4 = sadd.s32 4294967294, %s2837_s25   ;;  %s58_s16 = sadd.s32 1, %s2833_s2 }
  0xcb   : > { %p60_p8 = scmp.ge.s32.totalorder %s58_s16, 2  ;;  %s93_s30 = sadd.s32 1, %s2825_s23 }
  0xcc   : > { %p100_p7 = scmp.ne.s32.totalorder %s2825_s23, %s2821_s22  ;;  %p101_p9 = scmp.eq.s32.totalorder %s2837_s25, 0 }
  0xcd   : > { %s3650_s16 = smov (%p60_p8, %s58_s16), 0  ;;  %p106_p1 = scmp.ne.s32.totalorder %s2821_s22, %s2817_s1 }
  0xce   : > { %3610 = sst [smem:[#allocation32_spill]] %s3650_s16  ;;  %p3147_p4 = por %p101_p9, %p100_p7 }
  0xcf   : > { %s90_s0 = ssub.s32 %s2833_s2, %s3650_s16  ;;  %p496_p6 = scmp.eq.s32.totalorder %s2997_s3, 1 }
  0xd0   : > { %p91_p3 = scmp.eq.s32.totalorder %s90_s0, 0  ;;  %p3612_p10 = scmp.eq.s32.totalorder %s2997_s3, 0 }
  0xd1   : > { %p3162_p12 = por %p496_p6, %p100_p7  ;;  %p502_p13 = scmp.eq.s32.totalorder %s2077_s4, 1 }
  0xd2   : > { %p3158_p11 = por %p3612_p10, %p106_p1  ;;  %p2367_p2 = scmp.lt.s32.totalorder %s2837_s25, 2 }
  0xd3   : > { %s3614_s28 = scalar_select %p3162_p12, 1, 0 }
  0xd4   : > { %s3613_s17 = scalar_select %p3158_p11, 1, 0 }
  0xd5   : > { %s3167_s19 = scalar_select %p91_p3, %s2825_s23, %s93_s30  }
  0xd6   : > { %p3169_p0 = por %p502_p13, %p106_p1  ;;  %s658_s14 = sand.u32 1, %s2825_s23  }
  0xd7   : > { %3615 = sst [smem:[#allocation33_spill]] %s3167_s19  ;;  %s2087_s21 = sshll.u32 %s2833_s2, 6 }
  0xd8   : > { %s3616_s29 = scalar_select %p3169_p0, 1, 0 }
  0xd9   : > { %s3176_s27 = sshll.u32 %s658_s14, 2  ;;  %s3617_s6 = sld [smem:[#allocation35_spill]] }
  0xda   : > { %s662_s4 = scalar_lea.vmem [#allocation6], %s3176_s27  ;;  %p3186_p5 = pnand %p2367_p2, %p3147_p4 }
  0xdb   : > { %s669_s30 = sshll.u32 %s662_s4, 4  ;;  %s3619_s15 = sld [smem:[#allocation36_spill]]  ;;  %s3190_s30 = int_to_ptr.vmem [resolvable:$true] %s669_s30 }
  0xdc   : > { %s659_s11 = scalar_lea.sflag [#allocation7], %s658_s14  ;;  %p2645_p7 = pneg %p3186_p5 }
  0xdf   : > { %s3181_s0 = scalar_lea.hbm %s3617_s6, %s2087_s21  ;;  %s2648_s16 = scalar_lea.hbm %s3617_s6, 128 }
  0xe0   : > { %s2643_s12 = scalar_lea.hbm %s3181_s0, 64  ;;  %p2649_p1 = scmp.lt.u32.totalorder %s3181_s0, %s3617_s6 }
  0xe1   : > { %s3195_s10 = scalar_lea.hbm %s3619_s15, %s2087_s21  ;;  %p2644_p8 = scmp.ne.s32.totalorder %s3181_s0, %s2643_s12 }
  0xe2   : > { %p2650_p6 = scmp.lt.u32.totalorder %s2648_s16, %s2643_s12  ;;  %p2652_p10 = scmp.lt.u32.totalorder %s2643_s12, %s3181_s0 }
  0xe3   : > { %p2646_p9 = pnand %p2645_p7, %p2644_p8 }
  0xe4   : > { %p2651_p3 = por %p2650_p6, %p2649_p1 }
  0xe5   : > { %p2647_p4 = pneg %p2646_p9 }
  0xe6   : > { %p2653_p13 = por %p2652_p10, %p2651_p3 }
  0xe8   : > { %p2654_p2 = pnand %p2653_p13, %p2647_p4 }
  0xea   : > { %2657 = shalt.err (!%p2654_p2)
}
  0xeb   : > { %s2658_s8 = scalar_lea.vmem %s3190_s30, 64  ;;  %s2847_s14 = smov [#allocation6]  }
  0xec   : > { %p2659_p8 = scmp.ne.s32.totalorder %s3190_s30, %s2658_s8  ;;  %s2663_s21 = sshll.u32 %s2847_s14, 4  ;;  %s2664_s21 = int_to_ptr.vmem [resolvable:$false] %s2663_s21 }
  0xed   : > { %s2665_s2 = scalar_lea.vmem %s2664_s21, 128  ;;  %p2666_p12 = scmp.lt.s32.totalorder %s3190_s30, %s2664_s21 }
  0xee   : > { %p2661_p9 = pnand %p2659_p8, %p2645_p7  ;;  %p2667_p1 = scmp.lt.s32.totalorder %s2665_s2, %s2658_s8 }
  0xf0   : > { %p2662_p0 = pneg %p2661_p9  ;;  %p2668_p6 = por %p2667_p1, %p2666_p12 }
  0xf2   : > { %p2669_p3 = pnand %p2668_p6, %p2662_p0 }
  0xf4   : > { %2672 = shalt.err (!%p2669_p3)
}
  0xf5   : > { %2350 = dma.hbm_to_vmem [thread:$0]  (!%p3186_p5), %s3181_s0, 64, %s3190_s30, %s659_s11  }
  0xf6   : > { %s676_s12 = sand.u32 1, %s2837_s25   ;;  %s680_s16 = scalar_lea.vmem [#allocation9], %s3176_s27 }
  0xf7   : > { %s688_s19 = sshll.u32 %s680_s16, 4  ;;  %s677_s20 = scalar_lea.sflag [#allocation10], %s676_s12  ;;  %s689_s19 = int_to_ptr.vmem [resolvable:$true] %s688_s19 }
  0xf8   : > { %s2673_s18 = scalar_lea.hbm %s3195_s10, 64  ;;  %s2678_s14 = scalar_lea.hbm %s3619_s15, 128 }
  0xf9   : > { %p2674_p12 = scmp.ne.s32.totalorder %s3195_s10, %s2673_s18  ;;  %p2679_p10 = scmp.lt.u32.totalorder %s3195_s10, %s3619_s15 }
  0xfa   : > { %p2680_p13 = scmp.lt.u32.totalorder %s2678_s14, %s2673_s18  ;;  %p2682_p8 = scmp.lt.u32.totalorder %s2673_s18, %s3195_s10 }
  0xfb   : > { %p2676_p0 = pnand %p2674_p12, %p2645_p7 }
  0xfc   : > { %p2681_p2 = por %p2680_p13, %p2679_p10 }
  0xfd   : > { %p2677_p4 = pneg %p2676_p0 }
  0xfe   : > { %p2683_p9 = por %p2682_p8, %p2681_p2 }
 0x100   : > { %p2684_p1 = pnand %p2683_p9, %p2677_p4 }
 0x102   : > { %2687 = shalt.err (!%p2684_p1)
}
 0x103   : > { %s2688_s11 = scalar_lea.vmem %s689_s19, 64  ;;  %s2848_s27 = smov [#allocation9]  }
 0x104   : > { %p2689_p6 = scmp.ne.s32.totalorder %s689_s19, %s2688_s11  ;;  %s2693_s0 = sshll.u32 %s2848_s27, 4  ;;  %s2694_s0 = int_to_ptr.vmem [resolvable:$false] %s2693_s0 }
 0x105   : > { %s2695_s30 = scalar_lea.vmem %s2694_s0, 128  ;;  %p2696_p0 = scmp.lt.s32.totalorder %s689_s19, %s2694_s0 }
 0x106   : > { %p2691_p3 = pnand %p2689_p6, %p2645_p7  ;;  %p2697_p11 = scmp.lt.s32.totalorder %s2695_s30, %s2688_s11 }
 0x108   : > { %p2692_p12 = pneg %p2691_p3  ;;  %p2698_p10 = por %p2697_p11, %p2696_p0 }
 0x10a   : > { %p2699_p13 = pnand %p2698_p10, %p2692_p12 }
 0x10c   : > { %2702 = shalt.err (!%p2699_p13)
}
 0x10d   : > { %2353 = dma.hbm_to_vmem [thread:$0]  (!%p3186_p5), %s3195_s10, 64, %s689_s19, %s677_s20  }
 0x10e   : > { %p3620_p4 = scmp.ne.s32.totalorder %s3601_s26, 0 }
 0x10f   : > { %s3246_s12 = sand.u32 (!%p3620_p4), 1, %s2821_s22   ;;  %p3621_p7 = scmp.ne.s32.totalorder (!%p3620_p4), %s3613_s17, 0 }
 0x110   : > { %697 = sbr.rel (%p3620_p4) target bundleno = 2823 (0xb07), region = 96  ;;  %s2091_s16 = sshll.u32 (!%p3620_p4), %s3246_s12, 2 }
 0x111   : > { %s700_s18 = scalar_lea.sflag (!%p3620_p4), [#allocation7], %s3246_s12  ;;  %s703_s4 = scalar_lea.vmem (!%p3620_p4), [#allocation6], %s2091_s16 }
 0x117   : > { %2784 = dma.done.wait (%p3621_p7), %s700_s18, 64  }
 0x118   : > { %2786 = vsyncadd (%p3621_p7), %s700_s18, 4294967232  ;;  %s708_s7 = sand.u32 1, %s2997_s3   ;;  %s3255_s26 = scalar_lea.vmem [#allocation9], %s2091_s16 }
 0x119   : > { %s709_s10 = scalar_lea.sflag [#allocation10], %s708_s7 }
 0x11a   : > { %2788 = dma.done.wait (%p3621_p7), %s709_s10, 64  }
 0x11b   : > { %2790 = vsyncadd (%p3621_p7), %s709_s10, 4294967232  ;;  %p3622_p11 = scmp.eq.s32.totalorder %s2997_s3, 0 }
 0x11d   : > { %2792 = dma.done.wait (%p3622_p11), [#allocation10], 16   ;;  %p3623_p5 = pmov %p3622_p11 }
 0x11f   : > { %2794 = vsyncadd (%p3623_p5), [#allocation10], 4294967280  ;;  %p3624_p2 = pmov %p3623_p5 }
 0x121   : > { %2796 = dma.done.wait (%p3624_p2), [#allocation13], 272   ;;  %p3625_p8 = pmov %p3624_p2 }
 0x122   : > { %p3626_p9 = pmov %p3624_p2 }
 0x123   : > { %2798 = vsyncadd (%p3625_p8), [#allocation13], 4294967024 }
 0x124   : > { %2800 = dma.done.wait (%p3626_p9), [#allocation16], 32   ;;  %p3627_p1 = pmov %p3624_p2 }
 0x126   : > { %2802 = vsyncadd (%p3627_p1), [#allocation16], 4294967264  ;;  %p3628_p6 = pmov %p3627_p1 }
 0x127   : > { %p3629_p3 = pmov %p3627_p1 }
 0x128   : > { %2804 = dma.done.wait (%p3628_p6), [#allocation19], 16  }
 0x129   : > { %2806 = vsyncadd (%p3629_p3), [#allocation19], 4294967280  ;;  %v2849_v0 = vmov 0.0   ;;  %vm2850_vm0 = vmmov 0   ;;  %p810_p12 = scmp.lt.s32.totalorder %s2829_s24, 1  ;;  %v2441_v1 = vld [vmem:[%s3554_s5] sm:$0xff]  }
 0x12a   : > { %2196 = vmatprep.subr.bf16.mxu0 %v2849_v0  ;;  %2200 = vmatprep.mubr.msk.bf16.mxu0 %vm2850_vm0, %v2849_v0  ;;  %v2442_v2 = vld [vmem:[%s3554_s5 + $0x8] sm:$0xff]   ;;  %v822_v3 = vld [vmem:[%s703_s4] sm:$0xf]  ;;  %vm846_vm1 = vcmask 261120   ;;  %s3630_s11 = sld [smem:[#allocation37_spill]]  ;;  %s3631_s30 = sld [smem:[#allocation34_spill]] }
 0x12b   : > { %2204 = vmatprep.subr.bf16.mxu1 %v2849_v0  ;;  %2208 = vmatprep.mubr.msk.bf16.mxu1 %vm2850_vm0, %v2849_v0  ;;  %s811_s17 = scalar_select %p810_p12, %s2829_s24, 1  ;;  %v2445_v8 = vld [vmem:[#allocation12] sm:$0xff]   ;;  %v2446_v9 = vld [vmem:[#allocation12 + $0x8] sm:$0xff]   ;;  %v2102_v10 = vld [vmem:[#allocation11] ss:$0 sm:$0xff]  ;;  %vm954_vm2 = vcmask 60416  }
 0x12c   : > { %2197 = vmatpush3.bf16.msra.mxu0 %v2441_v1  ;;  %2205 = vmatpush3.bf16.msra.mxu1 %v2445_v8  ;;  %s2851_s4 = smov 104   ;;  %s2852_s10 = smov 120   ;;  %vm1098_vm3 = vcmask 64512   ;;  %v2106_v27 = vld [vmem:[#allocation14] ss:$0 sm:$0xff]  ;;  %vm1338_vm4 = vcmask 1043456  }
 0x12d   : > { %s2101_s14 = sshll.u32 %s811_s17, 3  ;;  %2198 = vmatprep.subr.bf16.mxu0 %v2849_v0  ;;  %2206 = vmatprep.subr.bf16.mxu1 %v2849_v0  ;;  %s3632_s20 = sld [smem:[#allocation38_spill]]  ;;  %v1096_v51 = vld [vmem:[%s3255_s26] sm:$0xf]  ;;  %vm1529_vm5 = vcmask 126016   ;;  %vm1538_vm6 = vcmask 191616  }
 0x12e   : > { %s2853_s3 = smov 112   ;;  %v1097_v52 = vunpack.c.l.bf16 %v1096_v51  ;;  %s2100_s26 = sshll.u32 %s3246_s12, 4  ;;  %vm1547_vm7 = vcmask 257216   ;;  %vm1755_vm8 = vcmask 523264  }
 0x12f   : > { %s3381_s8 = scalar_lea.vmem [#allocation21], %s2100_s26  ;;  %s2854_s0 = smov 8  }
 0x130   : > { %v2443_v4 = vld [vmem:[%s3630_s11] sm:$0xff]   ;;  %s816_s16 = scalar_lea.vmem %s3631_s30, %s2101_s14  ;;  %2199 = vmatpush3.bf16.msra.mxu0 %v2442_v2  ;;  %v2444_v5 = vld [vmem:[%s3630_s11 + $0x8] sm:$0xff]   ;;  %2207 = vmatpush3.bf16.msra.mxu1 %v2446_v9  ;;  %s2855_s30 = smov 24  }
 0x131   : > { %2212 = vmatprep.subr.bf16.mxu0 %v2849_v0  ;;  %v3302_v6 = vld [vmem:[%s816_s16] sm:$0xff]  ;;  %2220 = vmatprep.subr.bf16.mxu1 %v2849_v0  ;;  %s2856_s16 = smov 16   ;;  %s1864_s17 = sshll.u32 %s3381_s8, 4  ;;  %s3462_s17 = int_to_ptr.vmem [resolvable:$true] %s1864_s17 }
 0x132   : > { %v995_v7 = vpack.c.bf16 %v3302_v6, %v3302_v6  ;;  %s3636_s26 = sld [smem:[#allocation51_spill]]  ;;  %s1836_s21 = scalar_lea.sflag [#allocation22], %s3246_s12 }
 0x133   : > { %2201 = vmatmul.mubr.msk.bf16.vlgmr.msra.gmra.mrb[0].mxu0 %vm846_vm1, %v822_v3  ;;  %2209 = vmatmul.mubr.msk.bf16.vlgmr.msra.gmra.mrb[0].mxu1 %vm846_vm1, %v822_v3  ;;  %v2112_v17 = vld [vmem:[%s3632_s20] ss:$0 sm:$0xff]  ;;  %s3633_s20 = sld [smem:[#allocation46_spill]]  ;;  %s2703_s2 = scalar_lea.vmem %s3462_s17, 256 }
 0x134   : > { %2213 = vmatpush3.bf16.msra.mxu0 %v2443_v4  ;;  %2216 = vmatprep.mubr.msk.bf16.mxu0 %vm2850_vm0, %v2849_v0  ;;  %p2704_p0 = scmp.ne.s32.totalorder %s3462_s17, %s2703_s2  ;;  %p3637_p10 = scmp.ne.s32.totalorder %s3614_s28, 0 }
 0x135   : > { %2214 = vmatprep.subr.bf16.mxu0 %v2849_v0  ;;  %2222 = vmatprep.mubr.msk.bf16.mxu1 %vm2850_vm0, %v2849_v0  ;;  %s2857_s27 = smov [#allocation21]  }
 0x136   : > { %p2705_p13 = pnand %p2704_p0, %p3637_p10 }
 0x138   : > { %2215 = vmatpush3.bf16.msra.mxu0 %v2444_v5  ;;  %p2706_p4 = pneg %p2705_p13 }
 0x139   : > { %2226 = vmatprep.subr.bf16.mxu0 %v2849_v0 }
 0x13b   : > { %2217 = vmatmul.mubr.msk.bf16.vlgmr.msra.gmra.mrb[4].mxu0 %vm846_vm1, %v995_v7 }
 0x13c   : > { %2228 = vmatprep.mubr.msk.bf16.mxu0 %vm2850_vm0, %v2849_v0 }
 0x206   : > { %v884_v11 = vpop.f32.mrb[0].mxu0  ;;  %v947_v28 = vpop.f32.mrb[0].mxu1 }
 0x207   : > { %v885_v12 = vadd.f32 %v2102_v10, %v884_v11  ;;  %v2202_v13 = vpop.f32.mrb[1].mxu0  ;;  %v948_v29 = vadd.f32 %v2106_v27, %v947_v28  ;;  %v2210_v30 = vpop.f32.mrb[1].mxu1 }
 0x208   : > { %v887_v14 = vpop.f32.mrb[2].mxu0  ;;  %v950_v31 = vpop.f32.mrb[2].mxu1 }
 0x209   : > { %v953_v15 = vpack.c.bf16 %v885_v12, %v885_v12  ;;  %v2203_v16 = vpop.f32.mrb[3].mxu0  ;;  %v3335_v32 = vpack.c.bf16 %v948_v29, %v948_v29  ;;  %v2211_v33 = vpop.f32.mrb[3].mxu1 }
 0x20b   : > { %955 = vst.msk [vmem:[#allocation2] sm:$0xf] %vm954_vm2, %v953_v15  ;;  %984 = vrot.lane.b32.xlu1 %v953_v15, %s2851_s4  ;;  %961 = vrot.lane.b32.xlu0 %v953_v15, %s2852_s10  ;;  %957 = vst.msk [vmem:[#allocation3] sm:$0xf] %vm954_vm2, %v3335_v32 }
 0x20e   : > { %v1057_v18 = vpop.f32.mrb[4].mxu0 }
 0x20f   : > { %v1058_v19 = vadd.f32 %v2112_v17, %v1057_v18  ;;  %974 = vrot.lane.b32.xlu0 %v953_v15, %s2853_s3  ;;  %v2218_v20 = vpop.f32.mrb[5].mxu0 }
 0x210   : > { %v1060_v21 = vpop.f32.mrb[6].mxu0 }
 0x211   : > { %v1063_v22 = vpack.c.bf16 %v1058_v19, %v1058_v19  ;;  %v2219_v23 = vpop.f32.mrb[7].mxu0 }
 0x212   : > { %v1088_v24 = vld [vmem:[#allocation2] sm:$0xf]  ;;  %v1092_v49 = vld [vmem:[#allocation3] sm:$0xf] }
 0x213   : > { %1065 = vst.msk [vmem:[#allocation4] sm:$0xf] %vm954_vm2, %v1063_v22  ;;  %1074 = vrot.lane.b32.xlu0 %v1063_v22, %s2853_s3  ;;  %1069 = vrot.lane.b32.xlu1 %v1063_v22, %s2852_s10  ;;  %v1103_v25 = vsel %vm1098_vm3, %v1088_v24, 0  ;;  %v1340_v50 = vsel %vm1338_vm4, %v1092_v49, 0 }
 0x214   : > { %2221 = vmatpush3.bf16.xpose.msra.mxu1 %v1103_v25 }
 0x215   : > { %2232 = vmatprep.subr.bf16.mxu1 %v2849_v0 }
 0x217   : > { %1079 = vrot.lane.b32.xlu1 %v1063_v22, %s2851_s4 }
 0x21a   : > { %v1084_v26 = vld [vmem:[#allocation4] sm:$0xf] }
 0x21b   : > { %2223 = vmatmul.mubr.msk.bf16.vlgmr.msra.gmra.mrb[4].mxu1 %vm1098_vm3, %v1084_v26 }
 0x21c   : > { %2234 = vmatprep.mubr.msk.bf16.mxu1 %vm2850_vm0, %v2849_v0 }
 0x27d   : > { %v985_v34 = vpop.permute.xlu1 %984  ;;  %v962_v35 = vpop.permute.xlu0 %961 }
 0x27e   : > { %988 = vst.msk [vmem:[#allocation2 + $0xc] sm:$0xf] %vm954_vm2, %v985_v34  ;;  %965 = vst.msk [vmem:[#allocation2 + $0x4] sm:$0xf] %vm954_vm2, %v962_v35 }
 0x281   : > { %v975_v36 = vpop.permute.xlu0 %974 }
 0x282   : > { %978 = vst.msk [vmem:[#allocation2 + $0x8] sm:$0xf] %vm954_vm2, %v975_v36 }
 0x285   : > { %v1075_v37 = vpop.permute.xlu0 %1074  ;;  %v1070_v38 = vpop.permute.xlu1 %1069  ;;  %v1089_v39 = vld [vmem:[#allocation2 + $0x4] sm:$0xf]  ;;  %v1091_v44 = vld [vmem:[#allocation2 + $0xc] sm:$0xf] }
 0x286   : > { %1078 = vst.msk [vmem:[#allocation4 + $0x8] sm:$0xf] %vm954_vm2, %v1075_v37  ;;  %1073 = vst.msk [vmem:[#allocation4 + $0x4] sm:$0xf] %vm954_vm2, %v1070_v38  ;;  %v1149_v40 = vsel %vm1098_vm3, %v1089_v39, 0  ;;  %v1241_v46 = vsel %vm1098_vm3, %v1091_v44, 0 }
 0x287   : > { %2227 = vmatpush3.bf16.xpose.msra.mxu0 %v1149_v40 }
 0x288   : > { %2238 = vmatprep.subr.bf16.mxu0 %v2849_v0 }
 0x289   : > { %v1080_v41 = vpop.permute.xlu1 %1079  ;;  %v1090_v42 = vld [vmem:[#allocation2 + $0x8] sm:$0xf] }
 0x28a   : > { %1083 = vst.msk [vmem:[#allocation4 + $0xc] sm:$0xf] %vm954_vm2, %v1080_v41  ;;  %v1195_v43 = vsel %vm1098_vm3, %v1090_v42, 0 }
 0x28b   : > { %2233 = vmatpush3.bf16.xpose.msra.mxu1 %v1195_v43 }
 0x28c   : > { %2244 = vmatprep.subr.bf16.mxu1 %v2849_v0 }
 0x28d   : > { %v1085_v45 = vld [vmem:[#allocation4 + $0x4] sm:$0xf]  ;;  %v1086_v47 = vld [vmem:[#allocation4 + $0x8] sm:$0xf] }
 0x28e   : > { %2229 = vmatmul.mubr.msk.bf16.vlgmr.msra.gmra.mrb[8].mxu0 %vm1098_vm3, %v1085_v45 }
 0x28f   : > { %2239 = vmatpush3.bf16.xpose.msra.mxu0 %v1241_v46  ;;  %2240 = vmatprep.mubr.msk.bf16.mxu0 %vm2850_vm0, %v2849_v0 }
 0x290   : > { %2250 = vmatprep.subr.bf16.mxu0 %v2849_v0 }
 0x291   : > { %v1087_v48 = vld [vmem:[#allocation4 + $0xc] sm:$0xf] }
 0x292   : > { %2235 = vmatmul.mubr.msk.bf16.vlgmr.msra.gmra.mrb[8].mxu1 %vm1098_vm3, %v1086_v47 }
 0x293   : > { %2246 = vmatprep.mubr.msk.bf16.mxu1 %vm2850_vm0, %v2849_v0  ;;  %2245 = vmatpush3.bf16.msra.mxu1 %v1340_v50 }
 0x294   : > { %2256 = vmatprep.subr.bf16.mxu1 %v2849_v0 }
 0x296   : > { %2241 = vmatmul.mubr.msk.bf16.vlgmr.msra.gmra.mrb[12].mxu0 %vm1098_vm3, %v1087_v48 }
 0x297   : > { %2252 = vmatprep.mubr.msk.bf16.mxu0 %vm2850_vm0, %v2849_v0 }
 0x2ee   : > { %v1139_v53 = vpop.f32.mrb[4].mxu1 }
 0x2ef   : > { %v1140_v54 = vadd.f32 %v1139_v53, %v1097_v52  ;;  %v2224_v55 = vpop.f32.mrb[5].mxu1 }
 0x2f0   : > { %v1142_v56 = vpop.f32.mrb[6].mxu1 }
 0x2f1   : > { %v2225_v57 = vpop.f32.mrb[7].mxu1  ;;  %v1283_v58 = vsel %vm1098_vm3, %v1140_v54, -inf }
 0x2f2   : > { %1284 = vmax.xlane.f32.xlu0 %v1283_v58 }
 0x361   : > { %v1185_v59 = vpop.f32.mrb[8].mxu0 }
 0x362   : > { %v1186_v60 = vadd.f32 %v1185_v59, %v1097_v52  ;;  %v2230_v61 = vpop.f32.mrb[9].mxu0 }
 0x363   : > { %v1188_v62 = vpop.f32.mrb[10].mxu0 }
 0x364   : > { %v2231_v63 = vpop.f32.mrb[11].mxu0  ;;  %v1286_v1 = vsel %vm1098_vm3, %v1186_v60, -inf }
 0x365   : > { %v1231_v2 = vpop.f32.mrb[8].mxu1  ;;  %1287 = vmax.xlane.f32.xlu1 %v1286_v1 }
 0x366   : > { %v1232_v3 = vadd.f32 %v1231_v2, %v1097_v52  ;;  %v2236_v4 = vpop.f32.mrb[9].mxu1  ;;  %v2447_v2 = vld [vmem:[%s3558_s9] sm:$0xff]  }
 0x367   : > { %v1234_v5 = vpop.f32.mrb[10].mxu1 }
 0x368   : > { %v2237_v7 = vpop.f32.mrb[11].mxu1  ;;  %v1289_v8 = vsel %vm1098_vm3, %v1232_v3, -inf }
 0x369   : > { %1290 = vmax.xlane.f32.xlu0 %v1289_v8  ;;  %v1277_v9 = vpop.f32.mrb[12].mxu0  ;;  %v2448_v7 = vld [vmem:[%s3558_s9 + $0x8] sm:$0xff]  }
 0x36a   : > { %v1278_v10 = vadd.f32 %v1277_v9, %v1097_v52  ;;  %v2242_v11 = vpop.f32.mrb[13].mxu0 }
 0x36b   : > { %v1280_v12 = vpop.f32.mrb[14].mxu0 }
 0x36c   : > { %v2243_v13 = vpop.f32.mrb[15].mxu0  ;;  %v1292_v14 = vsel %vm1098_vm3, %v1278_v10, -inf }
 0x36d   : > { %1293 = vmax.xlane.f32.xlu0 %v1292_v14 }
 0x376   : > { %969 = vrot.lane.b32.xlu1 %v3335_v32, %s2852_s10  ;;  %s2159_s10 = sshll.u32 %s2829_s24, 8 }
 0x377   : > { %s3460_s14 = scalar_lea.hbm %s3636_s26, %s2159_s10 }
 0x37f   : > { %v1285_v15 = vpop.xlane.xlu0 %1284 }
 0x380   : > { %v1295_v16 = vsub.f32 %v1140_v54, %v1285_v15 }
 0x382   : > { %v1299_v17 = vmul.f32 1.442695, %v1295_v16 }
 0x384   : > { %2455 = vpow2.f32 %v1299_v17 }
 0x38e   : > { %v2456_v18 = vpop.eup %2455 }
 0x38f   : > { %v1307_v19 = vsel %vm1098_vm3, %v2456_v18, 0.0 }
 0x39a   : > { %1308 = vadd.xlane.f32.xlu1 %v1307_v19 }
 0x3f2   : > { %v1288_v20 = vpop.xlane.xlu1 %1287 }
 0x3f3   : > { %v1296_v21 = vsub.f32 %v1186_v60, %v1288_v20 }
 0x3f5   : > { %v1301_v22 = vmul.f32 1.442695, %v1296_v21 }
 0x3f6   : > { %v1291_v23 = vpop.xlane.xlu0 %1290  ;;  %v970_v24 = vpop.permute.xlu1 %969 }
 0x3f7   : > { %2457 = vpow2.f32 %v1301_v22  ;;  %v1297_v25 = vsub.f32 %v1232_v3, %v1291_v23  ;;  %973 = vst.msk [vmem:[#allocation3 + $0x4] sm:$0xf] %vm954_vm2, %v970_v24  ;;  %v2128_v24 = vld [vmem:[#allocation15] ss:$0 sm:$0xff] }
 0x3f9   : > { %v1303_v26 = vmul.f32 1.442695, %v1297_v25 }
 0x3fa   : > { %v1294_v27 = vpop.xlane.xlu0 %1293 }
 0x3fb   : > { %2459 = vpow2.f32 %v1303_v26  ;;  %v1298_v28 = vsub.f32 %v1278_v10, %v1294_v27 }
 0x3fd   : > { %v1305_v29 = vmul.f32 1.442695, %v1298_v28 }
 0x3fe   : > { %v1093_v30 = vld [vmem:[#allocation3 + $0x4] sm:$0xf] }
 0x3ff   : > { %2461 = vpow2.f32 %v1305_v29  ;;  %v1386_v31 = vsel %vm1338_vm4, %v1093_v30, 0 }
 0x400   : > { %2251 = vmatpush3.bf16.msra.mxu0 %v1386_v31 }
 0x401   : > { %v2458_v33 = vpop.eup %2457  ;;  %2262 = vmatprep.subr.bf16.mxu0 %v2849_v0 }
 0x402   : > { %v1310_v34 = vsel %vm1098_vm3, %v2458_v33, 0.0 }
 0x403   : > { %1311 = vadd.xlane.f32.xlu0 %v1310_v34 }
 0x405   : > { %v2460_v35 = vpop.eup %2459 }
 0x406   : > { %v1313_v36 = vsel %vm1098_vm3, %v2460_v35, 0.0 }
 0x407   : > { %1314 = vadd.xlane.f32.xlu1 %v1313_v36 }
 0x409   : > { %v2462_v37 = vpop.eup %2461 }
 0x40a   : > { %v1316_v38 = vsel %vm1098_vm3, %v2462_v37, 0.0 }
 0x40b   : > { %1317 = vadd.xlane.f32.xlu0 %v1316_v38  ;;  %v2449_v38 = vld [vmem:[%s3562_s13] sm:$0xff]  }
 0x418   : > { %989 = vrot.lane.b32.xlu1 %v3335_v32, %s2851_s4  ;;  %s3635_s4 = sld [smem:[#allocation47_spill]] }
 0x421   : > { %979 = vrot.lane.b32.xlu0 %v3335_v32, %s2853_s3 }
 0x427   : > { %v1309_v39 = vpop.xlane.xlu1 %1308 }
 0x428   : > { %2463 = vrcp.f32 %v1309_v39  ;;  %v2451_v39 = vld [vmem:[%s3633_s20] sm:$0xff]  }
 0x432   : > { %v2464_v40 = vpop.eup %2463 }
 0x433   : > { %v1323_v41 = vmul.f32 %v2464_v40, %v2456_v18  ;;  %v2452_v40 = vld [vmem:[%s3633_s20 + $0x8] sm:$0xff]  }
 0x435   : > { %v1327_v42 = vpack.c.bf16 %v1323_v41, %v1323_v41 }
 0x437   : > { %1331 = vst.msk [vmem:[%s3381_s8] sm:$0xf] %vm954_vm2, %v1327_v42  ;;  %2247 = vmatmul.mubr.msk.bf16.vlgmr.msra.gmra.mrb[12].mxu1 %vm1098_vm3, %v1327_v42 }
 0x438   : > { %2258 = vmatprep.mubr.msk.bf16.mxu1 %vm2850_vm0, %v2849_v0 }
 0x490   : > { %v1312_v43 = vpop.xlane.xlu0 %1311 }
 0x491   : > { %2465 = vrcp.f32 %v1312_v43 }
 0x494   : > { %v1315_v32 = vpop.xlane.xlu1 %1314 }
 0x495   : > { %2467 = vrcp.f32 %v1315_v32 }
 0x498   : > { %v990_v44 = vpop.permute.xlu1 %989  ;;  %v1318_v45 = vpop.xlane.xlu0 %1317 }
 0x499   : > { %993 = vst.msk [vmem:[#allocation3 + $0xc] sm:$0xf] %vm954_vm2, %v990_v44  ;;  %2469 = vrcp.f32 %v1318_v45  ;;  %v2132_v44 = vld [vmem:[#allocation17] ss:$0 sm:$0xff] }
 0x49b   : > { %v2466_v46 = vpop.eup %2465 }
 0x49c   : > { %v1324_v47 = vmul.f32 %v2466_v46, %v2458_v33  ;;  %v980_v48 = vpop.permute.xlu0 %979  ;;  %v2133_v46 = vld [vmem:[#allocation18] ss:$0 sm:$0xff] }
 0x49d   : > { %983 = vst.msk [vmem:[#allocation3 + $0x8] sm:$0xf] %vm954_vm2, %v980_v48 }
 0x49e   : > { %v1328_v49 = vpack.c.bf16 %v1324_v47, %v1324_v47 }
 0x49f   : > { %v2468_v50 = vpop.eup %2467 }
 0x4a0   : > { %v1325_v51 = vmul.f32 %v2468_v50, %v2460_v35  ;;  %1332 = vst.msk [vmem:[%s3381_s8 + $0x4] sm:$0xf] %vm954_vm2, %v1328_v49  ;;  %2253 = vmatmul.mubr.msk.bf16.vlgmr.msra.gmra.mrb[16].mxu0 %vm1098_vm3, %v1328_v49  ;;  %v1095_v52 = vld [vmem:[#allocation3 + $0xc] sm:$0xf]  ;;  %v2453_v50 = vld [vmem:[%s3633_s20 + $0x10] sm:$0xff]  }
 0x4a1   : > { %v1478_v53 = vsel %vm1338_vm4, %v1095_v52, 0  ;;  %2264 = vmatprep.mubr.msk.bf16.mxu0 %vm2850_vm0, %v2849_v0 }
 0x4a2   : > { %2263 = vmatpush3.bf16.msra.mxu0 %v1478_v53  ;;  %v1329_v54 = vpack.c.bf16 %v1325_v51, %v1325_v51  ;;  %v2454_v51 = vld [vmem:[%s3633_s20 + $0x18] sm:$0xff]  }
 0x4a3   : > { %v2470_v55 = vpop.eup %2469  ;;  %2276 = vmatprep.subr.bf16.mxu0 %v2849_v0 }
 0x4a4   : > { %v1326_v56 = vmul.f32 %v2470_v55, %v2462_v37  ;;  %v1094_v57 = vld [vmem:[#allocation3 + $0x8] sm:$0xf]  ;;  %1333 = vst.msk [vmem:[%s3381_s8 + $0x8] sm:$0xf] %vm954_vm2, %v1329_v54 }
 0x4a5   : > { %v1432_v58 = vsel %vm1338_vm4, %v1094_v57, 0 }
 0x4a6   : > { %2257 = vmatpush3.bf16.msra.mxu1 %v1432_v58  ;;  %v1330_v59 = vpack.c.bf16 %v1326_v56, %v1326_v56 }
 0x4a7   : > { %2268 = vmatprep.subr.bf16.mxu1 %v2849_v0 }
 0x4a8   : > { %1334 = vst.msk [vmem:[%s3381_s8 + $0xc] sm:$0xf] %vm954_vm2, %v1330_v59  ;;  %2265 = vmatmul.mubr.msk.bf16.vlgmr.msra.gmra.mrb[20].mxu0 %vm1098_vm3, %v1330_v59 }
 0x4a9   : > { %2259 = vmatmul.mubr.msk.bf16.vlgmr.msra.gmra.mrb[16].mxu1 %vm1098_vm3, %v1329_v54  ;;  %2280 = vmatprep.mubr.msk.bf16.mxu0 %vm2850_vm0, %v2849_v0 }
 0x4aa   : > { %2272 = vmatprep.mubr.msk.bf16.mxu1 %vm2850_vm0, %v2849_v0  ;;  %2269 = vmatpush3.bf16.msra.mxu1 %v2447_v2 }
 0x4ab   : > { %2270 = vmatprep.subr.bf16.mxu1 %v2849_v0  ;;  %2277 = vmatpush3.bf16.msra.mxu0 %v2449_v38 }
 0x4ac   : > { %2278 = vmatprep.subr.bf16.mxu0 %v2849_v0 }
 0x4ae   : > { %2271 = vmatpush3.bf16.msra.mxu1 %v2448_v7 }
 0x4af   : > { %2284 = vmatprep.subr.bf16.mxu1 %v2849_v0 }
 0x50a   : > { %v1376_v60 = vpop.f32.mrb[12].mxu1 }
 0x50b   : > { %v1520_v61 = vpack.c.bf16 %v1376_v60, %v1376_v60  ;;  %v2248_v62 = vpop.f32.mrb[13].mxu1 }
 0x50c   : > { %v1379_v63 = vpop.f32.mrb[14].mxu1 }
 0x50d   : > { %1521 = vst.msk [vmem:[#allocation5] sm:$0xf] %vm954_vm2, %v1520_v61  ;;  %v2249_v1 = vpop.f32.mrb[15].mxu1 }
 0x573   : > { %v1422_v3 = vpop.f32.mrb[16].mxu0 }
 0x574   : > { %v2156_v4 = vpack.c.bf16 %v1422_v3, %v1422_v3  ;;  %v2254_v5 = vpop.f32.mrb[17].mxu0 }
 0x575   : > { %v1425_v8 = vpop.f32.mrb[18].mxu0 }
 0x576   : > { %1526 = vrot.lane.b32.xlu1 %v2156_v4, %s2854_s0  ;;  %v2255_v9 = vpop.f32.mrb[19].mxu0  ;;  %s2707_s0 = sshll.u32 %s2857_s27, 4  ;;  %s2708_s0 = int_to_ptr.vmem [resolvable:$false] %s2707_s0 }
 0x577   : > { %s2709_s8 = scalar_lea.vmem %s2708_s0, 512  ;;  %p2710_p7 = scmp.lt.s32.totalorder %s3462_s17, %s2708_s0 }
 0x578   : > { %p2711_p11 = scmp.lt.s32.totalorder %s2709_s8, %s2703_s2 }
 0x57a   : > { %p2712_p5 = por %p2711_p11, %p2710_p7 }
 0x57b   : > { %v1514_v10 = vpop.f32.mrb[20].mxu0 }
 0x57c   : > { %v2158_v11 = vpack.c.bf16 %v1514_v10, %v1514_v10  ;;  %v1468_v12 = vpop.f32.mrb[16].mxu1  ;;  %v2266_v13 = vpop.f32.mrb[21].mxu0  ;;  %p2713_p2 = pnand %p2712_p5, %p2706_p4 }
 0x57d   : > { %v2157_v14 = vpack.c.bf16 %v1468_v12, %v1468_v12  ;;  %v2260_v15 = vpop.f32.mrb[17].mxu1  ;;  %v1517_v16 = vpop.f32.mrb[22].mxu0 }
 0x57e   : > { %v1471_v17 = vpop.f32.mrb[18].mxu1  ;;  %1544 = vrot.lane.b32.xlu1 %v2158_v11, %s2855_s30  ;;  %v2267_v18 = vpop.f32.mrb[23].mxu0 }
 0x57f   : > { %1535 = vrot.lane.b32.xlu0 %v2157_v14, %s2856_s16  ;;  %v2261_v19 = vpop.f32.mrb[19].mxu1  ;;  %s3634_s16 = sld [smem:[#allocation45_spill]] }
 0x585   : > { %v2134_v52 = vld [vmem:[%s3634_s16] ss:$0 sm:$0xff] }
 0x5e8   : > { %v1527_v20 = vpop.permute.xlu1 %1526 }
 0x5e9   : > { %1530 = vst.msk [vmem:[#allocation5] sm:$0xf] %vm1529_vm5, %v1527_v20 }
 0x5f0   : > { %v1545_v22 = vpop.permute.xlu1 %1544 }
 0x5f1   : > { %v1536_v21 = vpop.permute.xlu0 %1535 }
 0x5f2   : > { %1539 = vst.msk [vmem:[#allocation5] sm:$0xf] %vm1538_vm6, %v1536_v21 }
 0x5f3   : > { %1548 = vst.msk [vmem:[#allocation5] sm:$0xf] %vm1547_vm7, %v1545_v22 }
 0x5fa   : > { %v1549_v23 = vld [vmem:[#allocation5] sm:$0xf] }
 0x5fb   : > { %2273 = vmatmul.mubr.msk.bf16.vlgmr.msra.gmra.mrb[20].mxu1 %vm846_vm1, %v1549_v23 }
 0x5fc   : > { %2292 = vmatprep.mubr.msk.bf16.mxu1 %vm2850_vm0, %v2849_v0  ;;  %2285 = vmatpush3.bf16.msra.mxu1 %v2451_v39 }
 0x5fd   : > { %2286 = vmatprep.subr.bf16.mxu1 %v2849_v0 }
 0x600   : > { %2287 = vmatpush3.bf16.msra.mxu1 %v2452_v40 }
 0x601   : > { %2288 = vmatprep.subr.bf16.mxu1 %v2849_v0 }
 0x604   : > { %2289 = vmatpush3.bf16.msra.mxu1 %v2453_v50 }
 0x605   : > { %2290 = vmatprep.subr.bf16.mxu1 %v2849_v0  ;;  %v2138_v0 = vld [vmem:[%s3635_s4] ss:$0 sm:$0xff] }
 0x608   : > { %2291 = vmatpush3.bf16.msra.mxu1 %v2454_v51 }
 0x6ce   : > { %v1610_v25 = vpop.f32.mrb[20].mxu1 }
 0x6cf   : > { %v1611_v26 = vadd.f32 %v2128_v24, %v1610_v25  ;;  %v2274_v27 = vpop.f32.mrb[21].mxu1 }
 0x6d0   : > { %v1613_v28 = vpop.f32.mrb[22].mxu1 }
 0x6d1   : > { %v2275_v29 = vpop.f32.mrb[23].mxu1  ;;  %v1616_v30 = vadd.f32 %v1611_v26, %v3302_v6  ;;  %v2450_v6 = vld [vmem:[%s3562_s13 + $0x8] sm:$0xff]  }
 0x6d2   : > { %2279 = vmatpush3.bf16.msra.mxu0 %v2450_v6 }
 0x6d3   : > { %v1619_v31 = vsel %vm846_vm1, %v1616_v30, 0.0 }
 0x6d4   : > { %1620 = vadd.xlane.f32.xlu0 %v1619_v31 }
 0x761   : > { %v1621_v33 = vpop.xlane.xlu0 %1620 }
 0x762   : > { %v1623_v34 = vmul.f32 0.03125, %v1621_v33 }
 0x764   : > { %v1624_v35 = vsub.f32 %v1616_v30, %v1623_v34 }
 0x766   : > { %v1625_v36 = vmul.f32 %v1624_v35, %v1624_v35 }
 0x768   : > { %v1626_v37 = vsel %vm846_vm1, %v1625_v36, 0.0 }
 0x769   : > { %1627 = vadd.xlane.f32.xlu1 %v1626_v37 }
 0x7f6   : > { %v1628_v41 = vpop.xlane.xlu1 %1627 }
 0x7f7   : > { %v1629_v42 = vmul.f32 0.03125, %v1628_v41 }
 0x7f9   : > { %v1630_v43 = vadd.f32 1e-05, %v1629_v42 }
 0x7fb   : > { %2471 = vrsqrt.f32 %v1630_v43 }
 0x805   : > { %v2472_v32 = vpop.eup %2471 }
 0x806   : > { %v1632_v45 = vmul.f32 %v2472_v32, %v1624_v35 }
 0x808   : > { %v1639_v47 = vmul.f32 %v2132_v44, %v1632_v45 }
 0x80a   : > { %v1646_v48 = vadd.f32 %v2133_v46, %v1639_v47 }
 0x80c   : > { %v1647_v49 = vpack.c.bf16 %v1646_v48, %v1646_v48 }
 0x80e   : > { %2281 = vmatmul.mubr.msk.bf16.vlgmr.msra.gmra.mrb[24].mxu0 %vm846_vm1, %v1647_v49 }
 0x8e1   : > { %v1708_v53 = vpop.f32.mrb[24].mxu0 }
 0x8e2   : > { %v1709_v54 = vadd.f32 %v2134_v52, %v1708_v53  ;;  %v2282_v55 = vpop.f32.mrb[25].mxu0 }
 0x8e3   : > { %v1711_v56 = vpop.f32.mrb[26].mxu0 }
 0x8e4   : > { %v1714_v57 = vmax.f32 %v1709_v54, 0.0  ;;  %v2283_v58 = vpop.f32.mrb[27].mxu0 }
 0x8e6   : > { %v1715_v59 = vpack.c.bf16 %v1714_v57, %v1714_v57 }
 0x8e8   : > { %2293 = vmatmul.mubr.msk.bf16.vlgmr.msra.gmra.mrb[24].mxu1 %vm1755_vm8, %v1715_v59 }
 0x9bb   : > { %v1793_v60 = vpop.f32.mrb[24].mxu1 }
 0x9bc   : > { %v1794_v61 = vadd.f32 %v2138_v0, %v1793_v60  ;;  %v2294_v62 = vpop.f32.mrb[25].mxu1 }
 0x9bd   : > { %v1796_v63 = vpop.f32.mrb[26].mxu1 }
 0x9be   : > { %v2295_v1 = vpop.f32.mrb[27].mxu1  ;;  %v1799_v2 = vadd.f32 %v1794_v61, %v1646_v48 }
 0x9c0   : > { %v1802_v3 = vsel %vm846_vm1, %v1799_v2, 0.0 }
 0x9c1   : > { %1803 = vadd.xlane.f32.xlu0 %v1802_v3 }
 0xa4e   : > { %v1804_v4 = vpop.xlane.xlu0 %1803 }
 0xa4f   : > { %v1805_v5 = vmul.f32 0.03125, %v1804_v4 }
 0xa51   : > { %v1806_v7 = vsub.f32 %v1799_v2, %v1805_v5 }
 0xa53   : > { %v1807_v8 = vmul.f32 %v1806_v7, %v1806_v7 }
 0xa55   : > { %v1808_v9 = vsel %vm846_vm1, %v1807_v8, 0.0 }
 0xa56   : > { %1809 = vadd.xlane.f32.xlu0 %v1808_v9 }
 0xa57   : > { %2716 = shalt.err (!%p2713_p2)
}
 0xa58   : > { %s2717_s30 = scalar_lea.hbm %s3460_s14, 256  ;;  %s2721_s7 = scalar_lea.hbm %s3636_s26, 512 }
 0xa59   : > { %p2718_p8 = scmp.ne.s32.totalorder %s3460_s14, %s2717_s30  ;;  %p2722_p6 = scmp.lt.u32.totalorder %s3460_s14, %s3636_s26 }
 0xa5a   : > { %p2723_p3 = scmp.lt.u32.totalorder %s2721_s7, %s2717_s30  ;;  %p2725_p0 = scmp.lt.u32.totalorder %s2717_s30, %s3460_s14 }
 0xa5b   : > { %p2719_p9 = pnand %p2718_p8, %p3637_p10 }
 0xa5c   : > { %p2724_p12 = por %p2723_p3, %p2722_p6 }
 0xa5d   : > { %p2720_p1 = pneg %p2719_p9 }
 0xa5e   : > { %p2726_p13 = por %p2725_p0, %p2724_p12 }
 0xa60   : > { %p2727_p4 = pnand %p2726_p13, %p2720_p1 }
 0xa62   : > { %2730 = shalt.err (!%p2727_p4)
}
 0xa63   : > { %s2858_s19 = smov 64   ;;  %s2859_s3 = smov 4  }
 0xa64   : > { %2325 = dma.vmem_to_hbm [thread:$0]  (%p3637_p10), %s3462_s17, 256, %s3460_s14, %s1836_s21, %s2858_s19, %s2858_s19, %s2859_s3  }
 0xa65   : > { %s2099_s2 = sshll.u32 %s3246_s12, 3  ;;  %s3638_s8 = sld [smem:[#allocation48_spill]] }
 0xa66   : > { %s3639_s18 = sld [smem:[#allocation49_spill]]  ;;  %s2148_s7 = sshll.u32 %s2829_s24, 7 }
 0xa67   : > { %s802_s4 = scalar_lea.vmem [#allocation20], %s2099_s2  ;;  %s3640_s10 = sld [smem:[#allocation50_spill]] }
 0xa68   : > { %s1850_s17 = sshll.u32 %s802_s4, 4  ;;  %s1831_s3 = scalar_lea.sflag [#allocation8], %s3246_s12  ;;  %s3501_s17 = int_to_ptr.vmem [resolvable:$true] %s1850_s17 }
 0xa69   : > { %s2731_s27 = scalar_lea.vmem %s3501_s17, 128  ;;  %s2860_s24 = smov [#allocation20]  }
 0xa6a   : > { %p2732_p7 = scmp.ne.s32.totalorder %s3501_s17, %s2731_s27  ;;  %s2735_s2 = sshll.u32 %s2860_s24, 4  ;;  %s2736_s2 = int_to_ptr.vmem [resolvable:$false] %s2735_s2 }
 0xa6b   : > { %v2144_v14 = vld [vmem:[%s3638_s8] ss:$0 sm:$0xff]  ;;  %s2737_s0 = scalar_lea.vmem %s2736_s2, 256  ;;  %p2738_p2 = scmp.lt.s32.totalorder %s3501_s17, %s2736_s2 }
 0xa6c   : > { %v2145_v16 = vld [vmem:[%s3639_s18] ss:$0 sm:$0xff]  ;;  %p2733_p11 = pnand %p2732_p7, %p3637_p10  ;;  %p2739_p8 = scmp.lt.s32.totalorder %s2737_s0, %s2731_s27 }
 0xa6d   : > { %s3499_s19 = scalar_lea.hbm %s3640_s10, %s2148_s7 }
 0xa6e   : > { %p2734_p5 = pneg %p2733_p11  ;;  %p2740_p9 = por %p2739_p8, %p2738_p2 }
 0xa70   : > { %p2741_p1 = pnand %p2740_p9, %p2734_p5 }
 0xae3   : > { %v1810_v10 = vpop.xlane.xlu0 %1809 }
 0xae4   : > { %v1811_v11 = vmul.f32 0.03125, %v1810_v10 }
 0xae6   : > { %v1812_v12 = vadd.f32 1e-05, %v1811_v11 }
 0xae8   : > { %2473 = vrsqrt.f32 %v1812_v12 }
 0xaf2   : > { %v2474_v13 = vpop.eup %2473 }
 0xaf3   : > { %v1814_v15 = vmul.f32 %v2474_v13, %v1806_v7 }
 0xaf5   : > { %v1821_v17 = vmul.f32 %v2144_v14, %v1814_v15 }
 0xaf7   : > { %v1828_v18 = vadd.f32 %v2145_v16, %v1821_v17 }
 0xaf9   : > { %1829 = vst.msk [vmem:[%s802_s4] sm:$0xff] %vm846_vm1, %v1828_v18 }
 0xafa   : > { %2744 = shalt.err (!%p2741_p1)
}
 0xafb   : > { %s2745_s12 = scalar_lea.hbm %s3499_s19, 128  ;;  %s2749_s16 = scalar_lea.hbm %s3640_s10, 256 }
 0xafc   : > { %p2746_p6 = scmp.ne.s32.totalorder %s3499_s19, %s2745_s12  ;;  %p2750_p0 = scmp.lt.u32.totalorder %s3499_s19, %s3640_s10 }
 0xafd   : > { %p2751_p13 = scmp.lt.u32.totalorder %s2749_s16, %s2745_s12  ;;  %p2753_p7 = scmp.lt.u32.totalorder %s2745_s12, %s3499_s19 }
 0xafe   : > { %p2747_p3 = pnand %p2746_p6, %p3637_p10 }
 0xaff   : > { %p2752_p4 = por %p2751_p13, %p2750_p0 }
 0xb00   : > { %p2748_p12 = pneg %p2747_p3 }
 0xb01   : > { %p2754_p11 = por %p2753_p7, %p2752_p4 }
 0xb03   : > { %p2755_p5 = pnand %p2754_p11, %p2748_p12 }
 0xb05   : > { %2758 = shalt.err (!%p2755_p5)
}
 0xb06   : > { %2324 = dma.vmem_to_hbm [thread:$0]  (%p3637_p10), %s3501_s17, 128, %s3499_s19, %s1831_s3  }
 0xb07 PF: > { %s1879_s4 = sand.u32 1, %s2817_s1   ;;  %p3641_p2 = scmp.ne.s32.totalorder %s3616_s29, 0 }
 0xb08   : > { %p3642_p8 = scmp.ge.s32.totalorder %s2837_s25, 2  ;;  %s1880_s14 = scalar_lea.sflag [#allocation8], %s1879_s4 }
 0xb0a   : > { %p2355_p9 = pnand %p3642_p8, %p3641_p2 }
 0xb0c   : > { %2808 = dma.done.wait (!%p2355_p9), %s1880_s14, 128  }
 0xb0d   : > { %2810 = vsyncadd (!%p2355_p9), %s1880_s14, 4294967168  ;;  %s1889_s21 = scalar_lea.sflag [#allocation22], %s1879_s4 }
 0xb0e   : > { %2812 = dma.done.wait (!%p2355_p9), %s1889_s21, 256  }
 0xb0f   : > { %2814 = vsyncadd (!%p2355_p9), %s1889_s21, 4294967040  ;;  %s46_s25 = sadd.s32 1, %s2837_s25   ;;  %s3643_s28 = sld [smem:[#allocation33_spill]] }
 0xb10   : > { %p43_p1 = scmp.ge.s32.totalorder %s46_s25, 4   ;;  %s3644_s24 = sld [smem:[#allocation31_spill]] }
 0xb11   : > { %s3645_s2 = sld [smem:[#allocation32_spill]]  ;;  %s3646_s1 = smov %s2821_s22 }
 0xb12   : > { %s3647_s22 = smov %s2825_s23  ;;  %45 = sbr.rel (!%p43_p1) target bundleno = 32 (0x20), region = 211 }
 0xb15   : > { %s3648_s23 = smov %s3643_s28 }
 0xb19   :  { %1894 = vsyncpa [#allocation7], 1 }
 0xb1a   :  { %1896 = vsyncpa [#allocation7 + $0x1], 1 }
 0xb1b   :  { %1897 = vsyncpa [#allocation10], 1 }
 0xb1c   :  { %1899 = vsyncpa [#allocation10 + $0x1], 1 }
 0xb1d   :  { %1900 = vsyncpa [#allocation13], 1 }
 0xb1e   :  { %1901 = vsyncpa [#allocation16], 1 }
 0xb1f   :  { %1902 = vsyncpa [#allocation19], 1 }
 0xb20   :  { %1903 = vsyncpa [#allocation8], 1 }
 0xb21   :  { %1905 = vsyncpa [#allocation8 + $0x1], 1 }
 0xb22   :  { %1906 = vsyncpa [#allocation22], 1 }
 0xb23   :  { %1908 = vsyncpa [#allocation22 + $0x1], 1 }

</bundles_post_ra>
